<compile_context>
chip_gen: v6e
topology: v6e:2x2x1
jax: 0.10.0
libtpu: 0.0.40
codegen_flags: <defaults>
</compile_context>

<pallas_src>
import functools

import jax
import jax.numpy as jnp
from jax.experimental import pallas as pl
from jax.experimental.pallas import tpu as pltpu

F32 = jnp.float32
BF16 = jnp.bfloat16
_NEG = 1e30  # finite "-inf" stand-in for max-pool padding (avoids 0*inf NaNs)


# ---------------------------------------------------------------------------
# Small in-kernel helpers
# ---------------------------------------------------------------------------
def _take_rows(x, d):
    """y[i] = x[(i + d) % N] via an XLU sublane rotation (d is a static int)."""
    n = x.shape[0]
    return pltpu.roll(x, shift=(-d) % n, axis=0)


# ---------------------------------------------------------------------------
# Fused kernel: BT batch elements per grid step, everything channels-last,
# activations flattened to (BT*L, C) rows.
# ---------------------------------------------------------------------------
def resnet_kernel(x_ref, l0_ref, l1_ref, l2_ref, ds1_ref, ds2_ref, avg_ref,
                  wc1, bc1,
                  w1_2, b1_2, w2_2, b2_2, wsk_2, bsk_2, s3_2,
                  w1_3, b1_3, w2_3, b2_3, wsk_3, bsk_3, s3_3,
                  w1h, b1h, w2h, b2h,
                  out_ref, *, seq_lens):
    L0, L1, L2 = seq_lens

    # Hoisted per-row "position within element" indices (DMA'd constants).
    l0 = l0_ref[...]           # (BT*L0, 1) int32
    l1 = l1_ref[...]           # (BT*L1, 1) int32
    l2 = l2_ref[...]           # (BT*L2, 1) int32

    def conv3(x, w_ref, b_ref, l_idx, L):
        # Conv1d(kernel=3, padding=1), channels-last, batch-flattened rows.
        # Shift taps use XLU rolls + VPU boundary masks (no one-hot matmuls).
        xm = jnp.where(l_idx > 0,     _take_rows(x, -1), 0.0).astype(BF16)  # x[l-1]
        xp = jnp.where(l_idx < L - 1, _take_rows(x, +1), 0.0).astype(BF16)  # x[l+1]
        xc = x.astype(BF16)
        acc = jnp.dot(xc, w_ref[1], preferred_element_type=F32)
        acc = acc + jnp.dot(xm, w_ref[0], preferred_element_type=F32)
        acc = acc + jnp.dot(xp, w_ref[2], preferred_element_type=F32)
        return acc + b_ref[...]

    def maxpool(h, l_idx, L, k, p, dsel):
        # Sliding-window max at every input row (rolls + select), then a single
        # hoisted block-diagonal one-hot matmul does the strided down-sample.
        m = h
        for d in range(-p, k - p):
            if d == 0:
                continue
            valid = jnp.logical_and(l_idx + d >= 0, l_idx + d < L)
            m = jnp.maximum(m, jnp.where(valid, _take_rows(h, d), -_NEG))
        return jnp.dot(dsel, m, preferred_element_type=F32)

    def resblock(x, w1, b1, w2, b2, wsk, bsk, s3, l_idx, L):
        # (conv3+BN+ReLU) x2 ; + 1x1 skip ; BN ; ReLU.
        # BN1/BN2 folded into w1/b1, w2/b2; BN3 folded into wsk/bsk + one s3 mul.
        h = jnp.maximum(conv3(x, w1, b1, l_idx, L), 0.0)
        h = jnp.maximum(conv3(h, w2, b2, l_idx, L), 0.0)
        skip = jnp.dot(x.astype(BF16), wsk[...], preferred_element_type=F32) + bsk[...]
        return jnp.maximum(s3[...] * h + skip, 0.0)

    x = x_ref[...].astype(F32)                                       # (BT*L0, Cin)

    h = conv3(x, wc1, bc1, l0, L0)                                   # (BT*L0, 64)
    h = maxpool(h, l0, L0, k=3, p=1, dsel=ds1_ref[...])              # (BT*L1, 64)
    h = resblock(h, w1_2, b1_2, w2_2, b2_2, wsk_2, bsk_2, s3_2, l1, L1)  # (BT*L1, 128)
    h = maxpool(h, l1, L1, k=5, p=2, dsel=ds2_ref[...])              # (BT*L2, 128)
    h = resblock(h, w1_3, b1_3, w2_3, b2_3, wsk_3, bsk_3, s3_3, l2, L2)  # (BT*L2, 256)

    # AdaptiveAvgPool1d(1): per-element mean via one hoisted (BT, BT*L2) matmul.
    pooled = jnp.dot(avg_ref[...], h, preferred_element_type=F32)    # (BT, 256)

    # Fused FC heads: [fc_1 | fc_2] first layer, block-diagonal second layer.
    z = jnp.maximum(jnp.dot(pooled.astype(BF16), w1h[...],
                            preferred_element_type=F32) + b1h[...], 0.0)
    # Dropout(0.2) is identity in eval mode.
    out_ref[...] = jnp.dot(z.astype(BF16), w2h[...],
                           preferred_element_type=F32) + b2h[...]    # (BT, 128)


# ---------------------------------------------------------------------------
# Wrapper-side hoisted constants (compile-time; DMA'd once)
# ---------------------------------------------------------------------------
def _pos_idx(bt, L):
    # Per-element position index, flattened over the batch tile: (BT*L, 1) int32.
    return jnp.tile(jnp.arange(L, dtype=jnp.int32), bt).reshape(bt * L, 1)


def _down_sel(bt, L_in, L_out, stride):
    # Block-diagonal one-hot: out[e*L_out + j] = in[e*L_in + stride*j].
    rows = jnp.arange(bt * L_out)
    src = (rows // L_out) * L_in + (rows % L_out) * stride
    return (src[:, None] == jnp.arange(bt * L_in)[None, :]).astype(jnp.float32)


def _avg_sel(bt, L_in):
    # Block row-mean selector: (BT, BT*L_in) with 1/L_in on each element's rows.
    rows = jnp.arange(bt)[:, None]
    cols = jnp.arange(bt * L_in)[None, :]
    sel = jnp.logical_and(cols >= rows * L_in, cols < (rows + 1) * L_in)
    return sel.astype(jnp.float32) * (1.0 / L_in)


def _const_spec(shape):
    nd = len(shape)

    def idx(g):
        return (0,) * nd

    return pl.BlockSpec(shape, idx)


# ---------------------------------------------------------------------------
# pallas_call wrapper
# ---------------------------------------------------------------------------
@functools.partial(jax.jit, static_argnames=("n1", "n2", "bt"))
def resnet_forward(x, params, *, n1, n2, bt=8):
    """x: (B, n_channels, L) float32 (PyTorch NCL layout). Returns (out1, out2)."""
    B, Cin, L0 = x.shape
    L1 = (L0 + 2 * 1 - 3) // 2 + 1          # MaxPool1d(kernel=3, stride=2, pad=1)
    L2 = (L1 + 2 * 2 - 5) // 3 + 1          # MaxPool1d(kernel=5, stride=3, pad=2)
    assert bt % 8 == 0 and L2 >= 1

    G = pl.cdiv(B, bt)
    B_pad = G * bt

    # Channels-last + batch-flattened rows: the DMA'd tile is sublane-dense.
    x_cl = jnp.transpose(x, (0, 2, 1))                       # (B, L0, Cin)
    if B_pad != B:
        x_cl = jnp.pad(x_cl, ((0, B_pad - B), (0, 0), (0, 0)))
    x_flat = x_cl.reshape(B_pad * L0, Cin)

    consts = [
        _pos_idx(bt, L0), _pos_idx(bt, L1), _pos_idx(bt, L2),
        _down_sel(bt, L0, L1, 2), _down_sel(bt, L1, L2, 3), _avg_sel(bt, L2),
    ]
    weights = [
        params["wc1"], params["bc1"],
        params["rb2"]["w1"], params["rb2"]["b1"], params["rb2"]["w2"], params["rb2"]["b2"],
        params["rb2"]["wsk"], params["rb2"]["bsk"], params["rb2"]["s3"],
        params["rb3"]["w1"], params["rb3"]["b1"], params["rb3"]["w2"], params["rb3"]["b2"],
        params["rb3"]["wsk"], params["rb3"]["bsk"], params["rb3"]["s3"],
        params["w1h"], params["b1h"], params["w2h"], params["b2h"],
    ]

    kern = functools.partial(resnet_kernel, seq_lens=(L0, L1, L2))

    out = pl.pallas_call(
        kern,
        out_shape=jax.ShapeDtypeStruct((B_pad, 128), jnp.float32),
        grid=(G,),
        in_specs=[pl.BlockSpec((bt * L0, Cin), lambda g: (g, 0))]
                 + [_const_spec(c.shape) for c in consts]
                 + [_const_spec(w.shape) for w in weights],
        out_specs=pl.BlockSpec((bt, 128), lambda g: (g, 0)),
        compiler_params=pltpu.CompilerParams(dimension_semantics=("parallel",)),
    )(x_flat, *consts, *weights)

    out = out[:B]                                            # drop batch padding
    return out[:, :n1], out[:, n1:n1 + n2]


# ---------------------------------------------------------------------------
# Deterministic parameter construction (BN folded at build time, weights bf16)
# ---------------------------------------------------------------------------
def conv_taps(key, cout, cin, k):
    kw, kb = jax.random.split(key)
    w = jax.random.normal(kw, (cout, cin, k), jnp.float32) * 0.1     # PyTorch layout
    b = jax.random.normal(kb, (cout,), jnp.float32) * 0.1
    return jnp.transpose(w, (2, 1, 0)), b.reshape(1, cout)           # (K, Cin, Cout), (1, Cout)


def bn_affine(key, c, eps=1e-5):
    k1, k2, k3, k4 = jax.random.split(key, 4)
    gamma = jax.random.uniform(k1, (c,), jnp.float32, 0.5, 1.5)
    beta = jax.random.normal(k2, (c,), jnp.float32) * 0.1
    mean = jax.random.normal(k3, (c,), jnp.float32) * 0.1
    var = jax.random.uniform(k4, (c,), jnp.float32, 0.5, 1.5)
    scale = gamma / jnp.sqrt(var + eps)
    shift = beta - mean * scale
    return scale.reshape(1, c), shift.reshape(1, c)


def linear_params(key, cin, cout):
    kw, kb = jax.random.split(key)
    w = jax.random.normal(kw, (cout, cin), jnp.float32) * 0.1
    b = jax.random.normal(kb, (cout,), jnp.float32) * 0.1
    return w.T, b.reshape(1, cout)                                   # (Cin, Cout), (1, Cout)


def resblock_params(key, cin, cout):
    ks = jax.random.split(key, 6)
    w1, b1 = conv_taps(ks[0], cout, cin, 3)
    s1, t1 = bn_affine(ks[1], cout)
    w2, b2 = conv_taps(ks[2], cout, cout, 3)
    s2, t2 = bn_affine(ks[3], cout)
    wsk, bsk = conv_taps(ks[4], cout, cin, 1)
    s3, t3 = bn_affine(ks[5], cout)
    # Fold BN1/BN2 into the convs, BN3 into the skip conv; s3 stays for the conv branch.
    return dict(
        w1=(w1 * s1).astype(BF16), b1=b1 * s1 + t1,
        w2=(w2 * s2).astype(BF16), b2=b2 * s2 + t2,
        wsk=(wsk[0] * s3).astype(BF16), bsk=bsk * s3 + t3,
        s3=s3,
    )


def head_params(key, n1, n2):
    assert n1 + n2 <= 128
    k1, k2, k3, k4 = jax.random.split(key, 4)
    w1a, b1a = linear_params(k1, 256, 128)
    w2a, b2a = linear_params(k2, 128, n1)
    w1b, b1b = linear_params(k3, 256, 128)
    w2b, b2b = linear_params(k4, 128, n2)
    w1h = jnp.concatenate([w1a, w1b], axis=1)                        # (256, 256)
    b1h = jnp.concatenate([b1a, b1b], axis=1)                        # (1, 256)
    w2h = jnp.zeros((256, 128), jnp.float32)                         # block-diag, lane-padded
    w2h = w2h.at[:128, :n1].set(w2a).at[128:, n1:n1 + n2].set(w2b)
    b2h = jnp.zeros((1, 128), jnp.float32)
    b2h = b2h.at[:, :n1].set(b2a).at[:, n1:n1 + n2].set(b2b)
    return dict(w1h=w1h.astype(BF16), b1h=b1h, w2h=w2h.astype(BF16), b2h=b2h)


def make_params(key, n_channels, n1, n2):
    ks = jax.random.split(key, 4)
    wc1, bc1 = conv_taps(ks[0], 64, n_channels, 3)
    return dict(wc1=wc1.astype(BF16), bc1=bc1,
                rb2=resblock_params(ks[1], 64, 128),
                rb3=resblock_params(ks[2], 128, 256),
                **head_params(ks[3], n1, n2))


# ---------------------------------------------------------------------------
if __name__ == "__main__":
    key = jax.random.PRNGKey(0)
    kx, kp = jax.random.split(key)

    B, n_channels, L = 2, 4, 16
    n_classes, n_classes_1 = 5, 3

    x = jax.random.normal(kx, (B, n_channels, L), jnp.float32)
    params = make_params(kp, n_channels, n_classes, n_classes_1)

    out1, out2 = resnet_forward(x, params, n1=n_classes, n2=n_classes_1)
    jax.block_until_ready((out1, out2))

    assert out1.shape == (B, n_classes) and out2.shape == (B, n_classes_1)
    print("KERNEL_OK")
</pallas_src>

<mosaic_0001>
module attributes {stable_mosaic.version = 11 : i64} {
  func.func @resnet_kernel(%arg0: i32, %arg1: memref<128x4xf32, #tpu.memory_space<vmem>>, %arg2: memref<128x1xi32, #tpu.memory_space<vmem>>, %arg3: memref<64x1xi32, #tpu.memory_space<vmem>>, %arg4: memref<24x1xi32, #tpu.memory_space<vmem>>, %arg5: memref<64x128xf32, #tpu.memory_space<vmem>>, %arg6: memref<24x64xf32, #tpu.memory_space<vmem>>, %arg7: memref<8x24xf32, #tpu.memory_space<vmem>>, %arg8: memref<3x4x64xbf16, #tpu.memory_space<vmem>>, %arg9: memref<1x64xf32, #tpu.memory_space<vmem>>, %arg10: memref<3x64x128xbf16, #tpu.memory_space<vmem>>, %arg11: memref<1x128xf32, #tpu.memory_space<vmem>>, %arg12: memref<3x128x128xbf16, #tpu.memory_space<vmem>>, %arg13: memref<1x128xf32, #tpu.memory_space<vmem>>, %arg14: memref<64x128xbf16, #tpu.memory_space<vmem>>, %arg15: memref<1x128xf32, #tpu.memory_space<vmem>>, %arg16: memref<1x128xf32, #tpu.memory_space<vmem>>, %arg17: memref<3x128x256xbf16, #tpu.memory_space<vmem>>, %arg18: memref<1x256xf32, #tpu.memory_space<vmem>>, %arg19: memref<3x256x256xbf16, #tpu.memory_space<vmem>>, %arg20: memref<1x256xf32, #tpu.memory_space<vmem>>, %arg21: memref<128x256xbf16, #tpu.memory_space<vmem>>, %arg22: memref<1x256xf32, #tpu.memory_space<vmem>>, %arg23: memref<1x256xf32, #tpu.memory_space<vmem>>, %arg24: memref<256x256xbf16, #tpu.memory_space<vmem>>, %arg25: memref<1x256xf32, #tpu.memory_space<vmem>>, %arg26: memref<256x128xbf16, #tpu.memory_space<vmem>>, %arg27: memref<1x128xf32, #tpu.memory_space<vmem>>, %arg28: memref<8x128xf32, #tpu.memory_space<vmem>>) attributes {dimension_semantics = [#tpu.dimension_semantics<parallel>], iteration_bounds = array<i64: 1>, scalar_prefetch = 0 : i64, scratch_operands = 0 : i64, tpu.core_type = #tpu.core_type<tc>, window_params = [{transform_indices = @transform_0, window_bounds = array<i64: 128, 4>}, {pipeline_mode = #tpu.pipeline_mode<synchronous>, transform_indices = @transform_1, window_bounds = array<i64: 128, 1>}, {pipeline_mode = #tpu.pipeline_mode<synchronous>, transform_indices = @transform_2, window_bounds = array<i64: 64, 1>}, {pipeline_mode = #tpu.pipeline_mode<synchronous>, transform_indices = @transform_3, window_bounds = array<i64: 24, 1>}, {pipeline_mode = #tpu.pipeline_mode<synchronous>, transform_indices = @transform_4, window_bounds = array<i64: 64, 128>}, {pipeline_mode = #tpu.pipeline_mode<synchronous>, transform_indices = @transform_5, window_bounds = array<i64: 24, 64>}, {pipeline_mode = #tpu.pipeline_mode<synchronous>, transform_indices = @transform_6, window_bounds = array<i64: 8, 24>}, {pipeline_mode = #tpu.pipeline_mode<synchronous>, transform_indices = @transform_7, window_bounds = array<i64: 3, 4, 64>}, {pipeline_mode = #tpu.pipeline_mode<synchronous>, transform_indices = @transform_8, window_bounds = array<i64: 1, 64>}, {pipeline_mode = #tpu.pipeline_mode<synchronous>, transform_indices = @transform_9, window_bounds = array<i64: 3, 64, 128>}, {pipeline_mode = #tpu.pipeline_mode<synchronous>, transform_indices = @transform_10, window_bounds = array<i64: 1, 128>}, {pipeline_mode = #tpu.pipeline_mode<synchronous>, transform_indices = @transform_11, window_bounds = array<i64: 3, 128, 128>}, {pipeline_mode = #tpu.pipeline_mode<synchronous>, transform_indices = @transform_12, window_bounds = array<i64: 1, 128>}, {pipeline_mode = #tpu.pipeline_mode<synchronous>, transform_indices = @transform_13, window_bounds = array<i64: 64, 128>}, {pipeline_mode = #tpu.pipeline_mode<synchronous>, transform_indices = @transform_14, window_bounds = array<i64: 1, 128>}, {pipeline_mode = #tpu.pipeline_mode<synchronous>, transform_indices = @transform_15, window_bounds = array<i64: 1, 128>}, {pipeline_mode = #tpu.pipeline_mode<synchronous>, transform_indices = @transform_16, window_bounds = array<i64: 3, 128, 256>}, {pipeline_mode = #tpu.pipeline_mode<synchronous>, transform_indices = @transform_17, window_bounds = array<i64: 1, 256>}, {pipeline_mode = #tpu.pipeline_mode<synchronous>, transform_indices = @transform_18, window_bounds = array<i64: 3, 256, 256>}, {pipeline_mode = #tpu.pipeline_mode<synchronous>, transform_indices = @transform_19, window_bounds = array<i64: 1, 256>}, {pipeline_mode = #tpu.pipeline_mode<synchronous>, transform_indices = @transform_20, window_bounds = array<i64: 128, 256>}, {pipeline_mode = #tpu.pipeline_mode<synchronous>, transform_indices = @transform_21, window_bounds = array<i64: 1, 256>}, {pipeline_mode = #tpu.pipeline_mode<synchronous>, transform_indices = @transform_22, window_bounds = array<i64: 1, 256>}, {pipeline_mode = #tpu.pipeline_mode<synchronous>, transform_indices = @transform_23, window_bounds = array<i64: 256, 256>}, {pipeline_mode = #tpu.pipeline_mode<synchronous>, transform_indices = @transform_24, window_bounds = array<i64: 1, 256>}, {pipeline_mode = #tpu.pipeline_mode<synchronous>, transform_indices = @transform_25, window_bounds = array<i64: 256, 128>}, {pipeline_mode = #tpu.pipeline_mode<synchronous>, transform_indices = @transform_26, window_bounds = array<i64: 1, 128>}, {transform_indices = @transform_27, window_bounds = array<i64: 8, 128>}]} {
    %c0 = arith.constant 0 : index
    %c0_0 = arith.constant 0 : index
    %0 = vector.load %arg2[%c0, %c0_0] : memref<128x1xi32, #tpu.memory_space<vmem>>, vector<128x1xi32>
    %c0_1 = arith.constant 0 : index
    %c0_2 = arith.constant 0 : index
    %1 = vector.load %arg3[%c0_1, %c0_2] : memref<64x1xi32, #tpu.memory_space<vmem>>, vector<64x1xi32>
    %c0_3 = arith.constant 0 : index
    %c0_4 = arith.constant 0 : index
    %2 = vector.load %arg4[%c0_3, %c0_4] : memref<24x1xi32, #tpu.memory_space<vmem>>, vector<24x1xi32>
    %c0_5 = arith.constant 0 : index
    %c0_6 = arith.constant 0 : index
    %3 = vector.load %arg1[%c0_5, %c0_6] : memref<128x4xf32, #tpu.memory_space<vmem>>, vector<128x4xf32>
    %c0_i32 = arith.constant 0 : i32
    %4 = vector.broadcast %c0_i32 : i32 to vector<128x1xi32>
    %5 = arith.cmpi sgt, %0, %4 : vector<128x1xi32>
    %c1_i32 = arith.constant 1 : i32
    %6 = tpu.dynamic_rotate %3 by %c1_i32 dim 0 : vector<128x4xf32>, i32 -> vector<128x4xf32>
    %cst = arith.constant 0.000000e+00 : f32
    %7 = vector.shape_cast %5 : vector<128x1xi1> to vector<128x1xi1>
    %8 = vector.broadcast %7 : vector<128x1xi1> to vector<128x4xi1>
    %9 = vector.broadcast %cst : f32 to vector<128x4xf32>
    %10 = arith.select %8, %6, %9 : vector<128x4xi1>, vector<128x4xf32>
    %11 = arith.truncf %10 : vector<128x4xf32> to vector<128x4xbf16>
    %c15_i32 = arith.constant 15 : i32
    %12 = vector.broadcast %c15_i32 : i32 to vector<128x1xi32>
    %13 = arith.cmpi slt, %0, %12 : vector<128x1xi32>
    %c127_i32 = arith.constant 127 : i32
    %14 = tpu.dynamic_rotate %3 by %c127_i32 dim 0 : vector<128x4xf32>, i32 -> vector<128x4xf32>
    %cst_7 = arith.constant 0.000000e+00 : f32
    %15 = vector.shape_cast %13 : vector<128x1xi1> to vector<128x1xi1>
    %16 = vector.broadcast %15 : vector<128x1xi1> to vector<128x4xi1>
    %17 = vector.broadcast %cst_7 : f32 to vector<128x4xf32>
    %18 = arith.select %16, %14, %17 : vector<128x4xi1>, vector<128x4xf32>
    %19 = arith.truncf %18 : vector<128x4xf32> to vector<128x4xbf16>
    %20 = arith.truncf %3 : vector<128x4xf32> to vector<128x4xbf16>
    %c1 = arith.constant 1 : index
    %c0_8 = arith.constant 0 : index
    %c0_9 = arith.constant 0 : index
    %21 = vector.load %arg8[%c1, %c0_8, %c0_9] : memref<3x4x64xbf16, #tpu.memory_space<vmem>>, vector<1x4x64xbf16>
    %22 = vector.shape_cast %21 : vector<1x4x64xbf16> to vector<4x64xbf16>
    %cst_10 = arith.constant dense<0.000000e+00> : vector<128x64xf32>
    %23 = tpu.matmul %20, %22, %cst_10 {dimension_numbers = #tpu.dot_dimension_numbers<[1], [0], [0], [1], [0, 0, 1, 1], [], []>} : vector<128x4xbf16>, vector<4x64xbf16>, vector<128x64xf32> -> vector<128x64xf32>
    %c0_11 = arith.constant 0 : index
    %c0_12 = arith.constant 0 : index
    %c0_13 = arith.constant 0 : index
    %24 = vector.load %arg8[%c0_11, %c0_12, %c0_13] : memref<3x4x64xbf16, #tpu.memory_space<vmem>>, vector<1x4x64xbf16>
    %25 = vector.shape_cast %24 : vector<1x4x64xbf16> to vector<4x64xbf16>
    %cst_14 = arith.constant dense<0.000000e+00> : vector<128x64xf32>
    %26 = tpu.matmul %11, %25, %cst_14 {dimension_numbers = #tpu.dot_dimension_numbers<[1], [0], [0], [1], [0, 0, 1, 1], [], []>} : vector<128x4xbf16>, vector<4x64xbf16>, vector<128x64xf32> -> vector<128x64xf32>
    %27 = arith.addf %23, %26 : vector<128x64xf32>
    %c2 = arith.constant 2 : index
    %c0_15 = arith.constant 0 : index
    %c0_16 = arith.constant 0 : index
    %28 = vector.load %arg8[%c2, %c0_15, %c0_16] : memref<3x4x64xbf16, #tpu.memory_space<vmem>>, vector<1x4x64xbf16>
    %29 = vector.shape_cast %28 : vector<1x4x64xbf16> to vector<4x64xbf16>
    %cst_17 = arith.constant dense<0.000000e+00> : vector<128x64xf32>
    %30 = tpu.matmul %19, %29, %cst_17 {dimension_numbers = #tpu.dot_dimension_numbers<[1], [0], [0], [1], [0, 0, 1, 1], [], []>} : vector<128x4xbf16>, vector<4x64xbf16>, vector<128x64xf32> -> vector<128x64xf32>
    %31 = arith.addf %27, %30 : vector<128x64xf32>
    %c0_18 = arith.constant 0 : index
    %c0_19 = arith.constant 0 : index
    %32 = vector.load %arg9[%c0_18, %c0_19] : memref<1x64xf32, #tpu.memory_space<vmem>>, vector<1x64xf32>
    %33 = vector.broadcast %32 : vector<1x64xf32> to vector<128x64xf32>
    %34 = arith.addf %31, %33 : vector<128x64xf32>
    %c0_20 = arith.constant 0 : index
    %c0_21 = arith.constant 0 : index
    %35 = vector.load %arg5[%c0_20, %c0_21] : memref<64x128xf32, #tpu.memory_space<vmem>>, vector<64x128xf32>
    %c-1_i32 = arith.constant -1 : i32
    %36 = vector.broadcast %c-1_i32 : i32 to vector<128x1xi32>
    %37 = arith.addi %0, %36 : vector<128x1xi32>
    %c0_i32_22 = arith.constant 0 : i32
    %38 = vector.broadcast %c0_i32_22 : i32 to vector<128x1xi32>
    %39 = arith.cmpi sge, %37, %38 : vector<128x1xi32>
    %c-1_i32_23 = arith.constant -1 : i32
    %40 = vector.broadcast %c-1_i32_23 : i32 to vector<128x1xi32>
    %41 = arith.addi %0, %40 : vector<128x1xi32>
    %c16_i32 = arith.constant 16 : i32
    %42 = vector.broadcast %c16_i32 : i32 to vector<128x1xi32>
    %43 = arith.cmpi slt, %41, %42 : vector<128x1xi32>
    %44 = arith.andi %39, %43 : vector<128x1xi1>
    %c1_i32_24 = arith.constant 1 : i32
    %45 = tpu.dynamic_rotate %34 by %c1_i32_24 dim 0 : vector<128x64xf32>, i32 -> vector<128x64xf32>
    %cst_25 = arith.constant -1.000000e+30 : f32
    %46 = vector.shape_cast %44 : vector<128x1xi1> to vector<128x1xi1>
    %47 = vector.broadcast %46 : vector<128x1xi1> to vector<128x64xi1>
    %48 = vector.broadcast %cst_25 : f32 to vector<128x64xf32>
    %49 = arith.select %47, %45, %48 : vector<128x64xi1>, vector<128x64xf32>
    %50 = arith.maximumf %34, %49 : vector<128x64xf32>
    %c1_i32_26 = arith.constant 1 : i32
    %51 = vector.broadcast %c1_i32_26 : i32 to vector<128x1xi32>
    %52 = arith.addi %0, %51 : vector<128x1xi32>
    %c0_i32_27 = arith.constant 0 : i32
    %53 = vector.broadcast %c0_i32_27 : i32 to vector<128x1xi32>
    %54 = arith.cmpi sge, %52, %53 : vector<128x1xi32>
    %c1_i32_28 = arith.constant 1 : i32
    %55 = vector.broadcast %c1_i32_28 : i32 to vector<128x1xi32>
    %56 = arith.addi %0, %55 : vector<128x1xi32>
    %c16_i32_29 = arith.constant 16 : i32
    %57 = vector.broadcast %c16_i32_29 : i32 to vector<128x1xi32>
    %58 = arith.cmpi slt, %56, %57 : vector<128x1xi32>
    %59 = arith.andi %54, %58 : vector<128x1xi1>
    %c127_i32_30 = arith.constant 127 : i32
    %60 = tpu.dynamic_rotate %34 by %c127_i32_30 dim 0 : vector<128x64xf32>, i32 -> vector<128x64xf32>
    %cst_31 = arith.constant -1.000000e+30 : f32
    %61 = vector.shape_cast %59 : vector<128x1xi1> to vector<128x1xi1>
    %62 = vector.broadcast %61 : vector<128x1xi1> to vector<128x64xi1>
    %63 = vector.broadcast %cst_31 : f32 to vector<128x64xf32>
    %64 = arith.select %62, %60, %63 : vector<128x64xi1>, vector<128x64xf32>
    %65 = arith.maximumf %50, %64 : vector<128x64xf32>
    %cst_32 = arith.constant dense<0.000000e+00> : vector<64x64xf32>
    %66 = tpu.matmul %35, %65, %cst_32 {dimension_numbers = #tpu.dot_dimension_numbers<[1], [0], [0], [1], [0, 0, 1, 1], [], []>} : vector<64x128xf32>, vector<128x64xf32>, vector<64x64xf32> -> vector<64x64xf32>
    %c0_i32_33 = arith.constant 0 : i32
    %67 = vector.broadcast %c0_i32_33 : i32 to vector<64x1xi32>
    %68 = arith.cmpi sgt, %1, %67 : vector<64x1xi32>
    %c1_i32_34 = arith.constant 1 : i32
    %69 = tpu.dynamic_rotate %66 by %c1_i32_34 dim 0 : vector<64x64xf32>, i32 -> vector<64x64xf32>
    %cst_35 = arith.constant 0.000000e+00 : f32
    %70 = vector.shape_cast %68 : vector<64x1xi1> to vector<64x1xi1>
    %71 = vector.broadcast %70 : vector<64x1xi1> to vector<64x64xi1>
    %72 = vector.broadcast %cst_35 : f32 to vector<64x64xf32>
    %73 = arith.select %71, %69, %72 : vector<64x64xi1>, vector<64x64xf32>
    %74 = arith.truncf %73 : vector<64x64xf32> to vector<64x64xbf16>
    %c7_i32 = arith.constant 7 : i32
    %75 = vector.broadcast %c7_i32 : i32 to vector<64x1xi32>
    %76 = arith.cmpi slt, %1, %75 : vector<64x1xi32>
    %c63_i32 = arith.constant 63 : i32
    %77 = tpu.dynamic_rotate %66 by %c63_i32 dim 0 : vector<64x64xf32>, i32 -> vector<64x64xf32>
    %cst_36 = arith.constant 0.000000e+00 : f32
    %78 = vector.shape_cast %76 : vector<64x1xi1> to vector<64x1xi1>
    %79 = vector.broadcast %78 : vector<64x1xi1> to vector<64x64xi1>
    %80 = vector.broadcast %cst_36 : f32 to vector<64x64xf32>
    %81 = arith.select %79, %77, %80 : vector<64x64xi1>, vector<64x64xf32>
    %82 = arith.truncf %81 : vector<64x64xf32> to vector<64x64xbf16>
    %83 = arith.truncf %66 : vector<64x64xf32> to vector<64x64xbf16>
    %c1_37 = arith.constant 1 : index
    %c0_38 = arith.constant 0 : index
    %c0_39 = arith.constant 0 : index
    %84 = vector.load %arg10[%c1_37, %c0_38, %c0_39] : memref<3x64x128xbf16, #tpu.memory_space<vmem>>, vector<1x64x128xbf16>
    %85 = vector.shape_cast %84 : vector<1x64x128xbf16> to vector<64x128xbf16>
    %cst_40 = arith.constant dense<0.000000e+00> : vector<64x128xf32>
    %86 = tpu.matmul %83, %85, %cst_40 {dimension_numbers = #tpu.dot_dimension_numbers<[1], [0], [0], [1], [0, 0, 1, 1], [], []>} : vector<64x64xbf16>, vector<64x128xbf16>, vector<64x128xf32> -> vector<64x128xf32>
    %c0_41 = arith.constant 0 : index
    %c0_42 = arith.constant 0 : index
    %c0_43 = arith.constant 0 : index
    %87 = vector.load %arg10[%c0_41, %c0_42, %c0_43] : memref<3x64x128xbf16, #tpu.memory_space<vmem>>, vector<1x64x128xbf16>
    %88 = vector.shape_cast %87 : vector<1x64x128xbf16> to vector<64x128xbf16>
    %cst_44 = arith.constant dense<0.000000e+00> : vector<64x128xf32>
    %89 = tpu.matmul %74, %88, %cst_44 {dimension_numbers = #tpu.dot_dimension_numbers<[1], [0], [0], [1], [0, 0, 1, 1], [], []>} : vector<64x64xbf16>, vector<64x128xbf16>, vector<64x128xf32> -> vector<64x128xf32>
    %90 = arith.addf %86, %89 : vector<64x128xf32>
    %c2_45 = arith.constant 2 : index
    %c0_46 = arith.constant 0 : index
    %c0_47 = arith.constant 0 : index
    %91 = vector.load %arg10[%c2_45, %c0_46, %c0_47] : memref<3x64x128xbf16, #tpu.memory_space<vmem>>, vector<1x64x128xbf16>
    %92 = vector.shape_cast %91 : vector<1x64x128xbf16> to vector<64x128xbf16>
    %cst_48 = arith.constant dense<0.000000e+00> : vector<64x128xf32>
    %93 = tpu.matmul %82, %92, %cst_48 {dimension_numbers = #tpu.dot_dimension_numbers<[1], [0], [0], [1], [0, 0, 1, 1], [], []>} : vector<64x64xbf16>, vector<64x128xbf16>, vector<64x128xf32> -> vector<64x128xf32>
    %94 = arith.addf %90, %93 : vector<64x128xf32>
    %c0_49 = arith.constant 0 : index
    %c0_50 = arith.constant 0 : index
    %95 = vector.load %arg11[%c0_49, %c0_50] : memref<1x128xf32, #tpu.memory_space<vmem>>, vector<1x128xf32>
    %96 = vector.broadcast %95 : vector<1x128xf32> to vector<64x128xf32>
    %97 = arith.addf %94, %96 : vector<64x128xf32>
    %cst_51 = arith.constant 0.000000e+00 : f32
    %98 = vector.broadcast %cst_51 : f32 to vector<64x128xf32>
    %99 = arith.maximumf %97, %98 : vector<64x128xf32>
    %c0_i32_52 = arith.constant 0 : i32
    %100 = vector.broadcast %c0_i32_52 : i32 to vector<64x1xi32>
    %101 = arith.cmpi sgt, %1, %100 : vector<64x1xi32>
    %c1_i32_53 = arith.constant 1 : i32
    %102 = tpu.dynamic_rotate %99 by %c1_i32_53 dim 0 : vector<64x128xf32>, i32 -> vector<64x128xf32>
    %cst_54 = arith.constant 0.000000e+00 : f32
    %103 = vector.shape_cast %101 : vector<64x1xi1> to vector<64x1xi1>
    %104 = vector.broadcast %103 : vector<64x1xi1> to vector<64x128xi1>
    %105 = vector.broadcast %cst_54 : f32 to vector<64x128xf32>
    %106 = arith.select %104, %102, %105 : vector<64x128xi1>, vector<64x128xf32>
    %107 = arith.truncf %106 : vector<64x128xf32> to vector<64x128xbf16>
    %c7_i32_55 = arith.constant 7 : i32
    %108 = vector.broadcast %c7_i32_55 : i32 to vector<64x1xi32>
    %109 = arith.cmpi slt, %1, %108 : vector<64x1xi32>
    %c63_i32_56 = arith.constant 63 : i32
    %110 = tpu.dynamic_rotate %99 by %c63_i32_56 dim 0 : vector<64x128xf32>, i32 -> vector<64x128xf32>
    %cst_57 = arith.constant 0.000000e+00 : f32
    %111 = vector.shape_cast %109 : vector<64x1xi1> to vector<64x1xi1>
    %112 = vector.broadcast %111 : vector<64x1xi1> to vector<64x128xi1>
    %113 = vector.broadcast %cst_57 : f32 to vector<64x128xf32>
    %114 = arith.select %112, %110, %113 : vector<64x128xi1>, vector<64x128xf32>
    %115 = arith.truncf %114 : vector<64x128xf32> to vector<64x128xbf16>
    %116 = arith.truncf %99 : vector<64x128xf32> to vector<64x128xbf16>
    %c1_58 = arith.constant 1 : index
    %c0_59 = arith.constant 0 : index
    %c0_60 = arith.constant 0 : index
    %117 = vector.load %arg12[%c1_58, %c0_59, %c0_60] : memref<3x128x128xbf16, #tpu.memory_space<vmem>>, vector<1x128x128xbf16>
    %118 = vector.shape_cast %117 : vector<1x128x128xbf16> to vector<128x128xbf16>
    %cst_61 = arith.constant dense<0.000000e+00> : vector<64x128xf32>
    %119 = tpu.matmul %116, %118, %cst_61 {dimension_numbers = #tpu.dot_dimension_numbers<[1], [0], [0], [1], [0, 0, 1, 1], [], []>} : vector<64x128xbf16>, vector<128x128xbf16>, vector<64x128xf32> -> vector<64x128xf32>
    %c0_62 = arith.constant 0 : index
    %c0_63 = arith.constant 0 : index
    %c0_64 = arith.constant 0 : index
    %120 = vector.load %arg12[%c0_62, %c0_63, %c0_64] : memref<3x128x128xbf16, #tpu.memory_space<vmem>>, vector<1x128x128xbf16>
    %121 = vector.shape_cast %120 : vector<1x128x128xbf16> to vector<128x128xbf16>
    %cst_65 = arith.constant dense<0.000000e+00> : vector<64x128xf32>
    %122 = tpu.matmul %107, %121, %cst_65 {dimension_numbers = #tpu.dot_dimension_numbers<[1], [0], [0], [1], [0, 0, 1, 1], [], []>} : vector<64x128xbf16>, vector<128x128xbf16>, vector<64x128xf32> -> vector<64x128xf32>
    %123 = arith.addf %119, %122 : vector<64x128xf32>
    %c2_66 = arith.constant 2 : index
    %c0_67 = arith.constant 0 : index
    %c0_68 = arith.constant 0 : index
    %124 = vector.load %arg12[%c2_66, %c0_67, %c0_68] : memref<3x128x128xbf16, #tpu.memory_space<vmem>>, vector<1x128x128xbf16>
    %125 = vector.shape_cast %124 : vector<1x128x128xbf16> to vector<128x128xbf16>
    %cst_69 = arith.constant dense<0.000000e+00> : vector<64x128xf32>
    %126 = tpu.matmul %115, %125, %cst_69 {dimension_numbers = #tpu.dot_dimension_numbers<[1], [0], [0], [1], [0, 0, 1, 1], [], []>} : vector<64x128xbf16>, vector<128x128xbf16>, vector<64x128xf32> -> vector<64x128xf32>
    %127 = arith.addf %123, %126 : vector<64x128xf32>
    %c0_70 = arith.constant 0 : index
    %c0_71 = arith.constant 0 : index
    %128 = vector.load %arg13[%c0_70, %c0_71] : memref<1x128xf32, #tpu.memory_space<vmem>>, vector<1x128xf32>
    %129 = vector.broadcast %128 : vector<1x128xf32> to vector<64x128xf32>
    %130 = arith.addf %127, %129 : vector<64x128xf32>
    %cst_72 = arith.constant 0.000000e+00 : f32
    %131 = vector.broadcast %cst_72 : f32 to vector<64x128xf32>
    %132 = arith.maximumf %130, %131 : vector<64x128xf32>
    %133 = arith.truncf %66 : vector<64x64xf32> to vector<64x64xbf16>
    %c0_73 = arith.constant 0 : index
    %c0_74 = arith.constant 0 : index
    %134 = vector.load %arg14[%c0_73, %c0_74] : memref<64x128xbf16, #tpu.memory_space<vmem>>, vector<64x128xbf16>
    %cst_75 = arith.constant dense<0.000000e+00> : vector<64x128xf32>
    %135 = tpu.matmul %133, %134, %cst_75 {dimension_numbers = #tpu.dot_dimension_numbers<[1], [0], [0], [1], [0, 0, 1, 1], [], []>} : vector<64x64xbf16>, vector<64x128xbf16>, vector<64x128xf32> -> vector<64x128xf32>
    %c0_76 = arith.constant 0 : index
    %c0_77 = arith.constant 0 : index
    %136 = vector.load %arg15[%c0_76, %c0_77] : memref<1x128xf32, #tpu.memory_space<vmem>>, vector<1x128xf32>
    %137 = vector.broadcast %136 : vector<1x128xf32> to vector<64x128xf32>
    %138 = arith.addf %135, %137 : vector<64x128xf32>
    %c0_78 = arith.constant 0 : index
    %c0_79 = arith.constant 0 : index
    %139 = vector.load %arg16[%c0_78, %c0_79] : memref<1x128xf32, #tpu.memory_space<vmem>>, vector<1x128xf32>
    %140 = vector.broadcast %139 : vector<1x128xf32> to vector<64x128xf32>
    %141 = arith.mulf %140, %132 : vector<64x128xf32>
    %142 = arith.addf %141, %138 : vector<64x128xf32>
    %cst_80 = arith.constant 0.000000e+00 : f32
    %143 = vector.broadcast %cst_80 : f32 to vector<64x128xf32>
    %144 = arith.maximumf %142, %143 : vector<64x128xf32>
    %c0_81 = arith.constant 0 : index
    %c0_82 = arith.constant 0 : index
    %145 = vector.load %arg6[%c0_81, %c0_82] : memref<24x64xf32, #tpu.memory_space<vmem>>, vector<24x64xf32>
    %c-2_i32 = arith.constant -2 : i32
    %146 = vector.broadcast %c-2_i32 : i32 to vector<64x1xi32>
    %147 = arith.addi %1, %146 : vector<64x1xi32>
    %c0_i32_83 = arith.constant 0 : i32
    %148 = vector.broadcast %c0_i32_83 : i32 to vector<64x1xi32>
    %149 = arith.cmpi sge, %147, %148 : vector<64x1xi32>
    %c-2_i32_84 = arith.constant -2 : i32
    %150 = vector.broadcast %c-2_i32_84 : i32 to vector<64x1xi32>
    %151 = arith.addi %1, %150 : vector<64x1xi32>
    %c8_i32 = arith.constant 8 : i32
    %152 = vector.broadcast %c8_i32 : i32 to vector<64x1xi32>
    %153 = arith.cmpi slt, %151, %152 : vector<64x1xi32>
    %154 = arith.andi %149, %153 : vector<64x1xi1>
    %c2_i32 = arith.constant 2 : i32
    %155 = tpu.dynamic_rotate %144 by %c2_i32 dim 0 : vector<64x128xf32>, i32 -> vector<64x128xf32>
    %cst_85 = arith.constant -1.000000e+30 : f32
    %156 = vector.shape_cast %154 : vector<64x1xi1> to vector<64x1xi1>
    %157 = vector.broadcast %156 : vector<64x1xi1> to vector<64x128xi1>
    %158 = vector.broadcast %cst_85 : f32 to vector<64x128xf32>
    %159 = arith.select %157, %155, %158 : vector<64x128xi1>, vector<64x128xf32>
    %160 = arith.maximumf %144, %159 : vector<64x128xf32>
    %c-1_i32_86 = arith.constant -1 : i32
    %161 = vector.broadcast %c-1_i32_86 : i32 to vector<64x1xi32>
    %162 = arith.addi %1, %161 : vector<64x1xi32>
    %c0_i32_87 = arith.constant 0 : i32
    %163 = vector.broadcast %c0_i32_87 : i32 to vector<64x1xi32>
    %164 = arith.cmpi sge, %162, %163 : vector<64x1xi32>
    %c-1_i32_88 = arith.constant -1 : i32
    %165 = vector.broadcast %c-1_i32_88 : i32 to vector<64x1xi32>
    %166 = arith.addi %1, %165 : vector<64x1xi32>
    %c8_i32_89 = arith.constant 8 : i32
    %167 = vector.broadcast %c8_i32_89 : i32 to vector<64x1xi32>
    %168 = arith.cmpi slt, %166, %167 : vector<64x1xi32>
    %169 = arith.andi %164, %168 : vector<64x1xi1>
    %c1_i32_90 = arith.constant 1 : i32
    %170 = tpu.dynamic_rotate %144 by %c1_i32_90 dim 0 : vector<64x128xf32>, i32 -> vector<64x128xf32>
    %cst_91 = arith.constant -1.000000e+30 : f32
    %171 = vector.shape_cast %169 : vector<64x1xi1> to vector<64x1xi1>
    %172 = vector.broadcast %171 : vector<64x1xi1> to vector<64x128xi1>
    %173 = vector.broadcast %cst_91 : f32 to vector<64x128xf32>
    %174 = arith.select %172, %170, %173 : vector<64x128xi1>, vector<64x128xf32>
    %175 = arith.maximumf %160, %174 : vector<64x128xf32>
    %c1_i32_92 = arith.constant 1 : i32
    %176 = vector.broadcast %c1_i32_92 : i32 to vector<64x1xi32>
    %177 = arith.addi %1, %176 : vector<64x1xi32>
    %c0_i32_93 = arith.constant 0 : i32
    %178 = vector.broadcast %c0_i32_93 : i32 to vector<64x1xi32>
    %179 = arith.cmpi sge, %177, %178 : vector<64x1xi32>
    %c1_i32_94 = arith.constant 1 : i32
    %180 = vector.broadcast %c1_i32_94 : i32 to vector<64x1xi32>
    %181 = arith.addi %1, %180 : vector<64x1xi32>
    %c8_i32_95 = arith.constant 8 : i32
    %182 = vector.broadcast %c8_i32_95 : i32 to vector<64x1xi32>
    %183 = arith.cmpi slt, %181, %182 : vector<64x1xi32>
    %184 = arith.andi %179, %183 : vector<64x1xi1>
    %c63_i32_96 = arith.constant 63 : i32
    %185 = tpu.dynamic_rotate %144 by %c63_i32_96 dim 0 : vector<64x128xf32>, i32 -> vector<64x128xf32>
    %cst_97 = arith.constant -1.000000e+30 : f32
    %186 = vector.shape_cast %184 : vector<64x1xi1> to vector<64x1xi1>
    %187 = vector.broadcast %186 : vector<64x1xi1> to vector<64x128xi1>
    %188 = vector.broadcast %cst_97 : f32 to vector<64x128xf32>
    %189 = arith.select %187, %185, %188 : vector<64x128xi1>, vector<64x128xf32>
    %190 = arith.maximumf %175, %189 : vector<64x128xf32>
    %c2_i32_98 = arith.constant 2 : i32
    %191 = vector.broadcast %c2_i32_98 : i32 to vector<64x1xi32>
    %192 = arith.addi %1, %191 : vector<64x1xi32>
    %c0_i32_99 = arith.constant 0 : i32
    %193 = vector.broadcast %c0_i32_99 : i32 to vector<64x1xi32>
    %194 = arith.cmpi sge, %192, %193 : vector<64x1xi32>
    %c2_i32_100 = arith.constant 2 : i32
    %195 = vector.broadcast %c2_i32_100 : i32 to vector<64x1xi32>
    %196 = arith.addi %1, %195 : vector<64x1xi32>
    %c8_i32_101 = arith.constant 8 : i32
    %197 = vector.broadcast %c8_i32_101 : i32 to vector<64x1xi32>
    %198 = arith.cmpi slt, %196, %197 : vector<64x1xi32>
    %199 = arith.andi %194, %198 : vector<64x1xi1>
    %c62_i32 = arith.constant 62 : i32
    %200 = tpu.dynamic_rotate %144 by %c62_i32 dim 0 : vector<64x128xf32>, i32 -> vector<64x128xf32>
    %cst_102 = arith.constant -1.000000e+30 : f32
    %201 = vector.shape_cast %199 : vector<64x1xi1> to vector<64x1xi1>
    %202 = vector.broadcast %201 : vector<64x1xi1> to vector<64x128xi1>
    %203 = vector.broadcast %cst_102 : f32 to vector<64x128xf32>
    %204 = arith.select %202, %200, %203 : vector<64x128xi1>, vector<64x128xf32>
    %205 = arith.maximumf %190, %204 : vector<64x128xf32>
    %cst_103 = arith.constant dense<0.000000e+00> : vector<24x128xf32>
    %206 = tpu.matmul %145, %205, %cst_103 {dimension_numbers = #tpu.dot_dimension_numbers<[1], [0], [0], [1], [0, 0, 1, 1], [], []>} : vector<24x64xf32>, vector<64x128xf32>, vector<24x128xf32> -> vector<24x128xf32>
    %c0_i32_104 = arith.constant 0 : i32
    %207 = vector.broadcast %c0_i32_104 : i32 to vector<24x1xi32>
    %208 = arith.cmpi sgt, %2, %207 : vector<24x1xi32>
    %c1_i32_105 = arith.constant 1 : i32
    %209 = tpu.dynamic_rotate %206 by %c1_i32_105 dim 0 : vector<24x128xf32>, i32 -> vector<24x128xf32>
    %cst_106 = arith.constant 0.000000e+00 : f32
    %210 = vector.shape_cast %208 : vector<24x1xi1> to vector<24x1xi1>
    %211 = vector.broadcast %210 : vector<24x1xi1> to vector<24x128xi1>
    %212 = vector.broadcast %cst_106 : f32 to vector<24x128xf32>
    %213 = arith.select %211, %209, %212 : vector<24x128xi1>, vector<24x128xf32>
    %214 = arith.truncf %213 : vector<24x128xf32> to vector<24x128xbf16>
    %c2_i32_107 = arith.constant 2 : i32
    %215 = vector.broadcast %c2_i32_107 : i32 to vector<24x1xi32>
    %216 = arith.cmpi slt, %2, %215 : vector<24x1xi32>
    %c23_i32 = arith.constant 23 : i32
    %217 = tpu.dynamic_rotate %206 by %c23_i32 dim 0 : vector<24x128xf32>, i32 -> vector<24x128xf32>
    %cst_108 = arith.constant 0.000000e+00 : f32
    %218 = vector.shape_cast %216 : vector<24x1xi1> to vector<24x1xi1>
    %219 = vector.broadcast %218 : vector<24x1xi1> to vector<24x128xi1>
    %220 = vector.broadcast %cst_108 : f32 to vector<24x128xf32>
    %221 = arith.select %219, %217, %220 : vector<24x128xi1>, vector<24x128xf32>
    %222 = arith.truncf %221 : vector<24x128xf32> to vector<24x128xbf16>
    %223 = arith.truncf %206 : vector<24x128xf32> to vector<24x128xbf16>
    %c1_109 = arith.constant 1 : index
    %c0_110 = arith.constant 0 : index
    %c0_111 = arith.constant 0 : index
    %224 = vector.load %arg17[%c1_109, %c0_110, %c0_111] : memref<3x128x256xbf16, #tpu.memory_space<vmem>>, vector<1x128x256xbf16>
    %225 = vector.shape_cast %224 : vector<1x128x256xbf16> to vector<128x256xbf16>
    %cst_112 = arith.constant dense<0.000000e+00> : vector<24x256xf32>
    %226 = tpu.matmul %223, %225, %cst_112 {dimension_numbers = #tpu.dot_dimension_numbers<[1], [0], [0], [1], [0, 0, 1, 1], [], []>} : vector<24x128xbf16>, vector<128x256xbf16>, vector<24x256xf32> -> vector<24x256xf32>
    %c0_113 = arith.constant 0 : index
    %c0_114 = arith.constant 0 : index
    %c0_115 = arith.constant 0 : index
    %227 = vector.load %arg17[%c0_113, %c0_114, %c0_115] : memref<3x128x256xbf16, #tpu.memory_space<vmem>>, vector<1x128x256xbf16>
    %228 = vector.shape_cast %227 : vector<1x128x256xbf16> to vector<128x256xbf16>
    %cst_116 = arith.constant dense<0.000000e+00> : vector<24x256xf32>
    %229 = tpu.matmul %214, %228, %cst_116 {dimension_numbers = #tpu.dot_dimension_numbers<[1], [0], [0], [1], [0, 0, 1, 1], [], []>} : vector<24x128xbf16>, vector<128x256xbf16>, vector<24x256xf32> -> vector<24x256xf32>
    %230 = arith.addf %226, %229 : vector<24x256xf32>
    %c2_117 = arith.constant 2 : index
    %c0_118 = arith.constant 0 : index
    %c0_119 = arith.constant 0 : index
    %231 = vector.load %arg17[%c2_117, %c0_118, %c0_119] : memref<3x128x256xbf16, #tpu.memory_space<vmem>>, vector<1x128x256xbf16>
    %232 = vector.shape_cast %231 : vector<1x128x256xbf16> to vector<128x256xbf16>
    %cst_120 = arith.constant dense<0.000000e+00> : vector<24x256xf32>
    %233 = tpu.matmul %222, %232, %cst_120 {dimension_numbers = #tpu.dot_dimension_numbers<[1], [0], [0], [1], [0, 0, 1, 1], [], []>} : vector<24x128xbf16>, vector<128x256xbf16>, vector<24x256xf32> -> vector<24x256xf32>
    %234 = arith.addf %230, %233 : vector<24x256xf32>
    %c0_121 = arith.constant 0 : index
    %c0_122 = arith.constant 0 : index
    %235 = vector.load %arg18[%c0_121, %c0_122] : memref<1x256xf32, #tpu.memory_space<vmem>>, vector<1x256xf32>
    %236 = vector.broadcast %235 : vector<1x256xf32> to vector<24x256xf32>
    %237 = arith.addf %234, %236 : vector<24x256xf32>
    %cst_123 = arith.constant 0.000000e+00 : f32
    %238 = vector.broadcast %cst_123 : f32 to vector<24x256xf32>
    %239 = arith.maximumf %237, %238 : vector<24x256xf32>
    %c0_i32_124 = arith.constant 0 : i32
    %240 = vector.broadcast %c0_i32_124 : i32 to vector<24x1xi32>
    %241 = arith.cmpi sgt, %2, %240 : vector<24x1xi32>
    %c1_i32_125 = arith.constant 1 : i32
    %242 = tpu.dynamic_rotate %239 by %c1_i32_125 dim 0 : vector<24x256xf32>, i32 -> vector<24x256xf32>
    %cst_126 = arith.constant 0.000000e+00 : f32
    %243 = vector.shape_cast %241 : vector<24x1xi1> to vector<24x1xi1>
    %244 = vector.broadcast %243 : vector<24x1xi1> to vector<24x256xi1>
    %245 = vector.broadcast %cst_126 : f32 to vector<24x256xf32>
    %246 = arith.select %244, %242, %245 : vector<24x256xi1>, vector<24x256xf32>
    %247 = arith.truncf %246 : vector<24x256xf32> to vector<24x256xbf16>
    %c2_i32_127 = arith.constant 2 : i32
    %248 = vector.broadcast %c2_i32_127 : i32 to vector<24x1xi32>
    %249 = arith.cmpi slt, %2, %248 : vector<24x1xi32>
    %c23_i32_128 = arith.constant 23 : i32
    %250 = tpu.dynamic_rotate %239 by %c23_i32_128 dim 0 : vector<24x256xf32>, i32 -> vector<24x256xf32>
    %cst_129 = arith.constant 0.000000e+00 : f32
    %251 = vector.shape_cast %249 : vector<24x1xi1> to vector<24x1xi1>
    %252 = vector.broadcast %251 : vector<24x1xi1> to vector<24x256xi1>
    %253 = vector.broadcast %cst_129 : f32 to vector<24x256xf32>
    %254 = arith.select %252, %250, %253 : vector<24x256xi1>, vector<24x256xf32>
    %255 = arith.truncf %254 : vector<24x256xf32> to vector<24x256xbf16>
    %256 = arith.truncf %239 : vector<24x256xf32> to vector<24x256xbf16>
    %c1_130 = arith.constant 1 : index
    %c0_131 = arith.constant 0 : index
    %c0_132 = arith.constant 0 : index
    %257 = vector.load %arg19[%c1_130, %c0_131, %c0_132] : memref<3x256x256xbf16, #tpu.memory_space<vmem>>, vector<1x256x256xbf16>
    %258 = vector.shape_cast %257 : vector<1x256x256xbf16> to vector<256x256xbf16>
    %cst_133 = arith.constant dense<0.000000e+00> : vector<24x256xf32>
    %259 = tpu.matmul %256, %258, %cst_133 {dimension_numbers = #tpu.dot_dimension_numbers<[1], [0], [0], [1], [0, 0, 1, 1], [], []>} : vector<24x256xbf16>, vector<256x256xbf16>, vector<24x256xf32> -> vector<24x256xf32>
    %c0_134 = arith.constant 0 : index
    %c0_135 = arith.constant 0 : index
    %c0_136 = arith.constant 0 : index
    %260 = vector.load %arg19[%c0_134, %c0_135, %c0_136] : memref<3x256x256xbf16, #tpu.memory_space<vmem>>, vector<1x256x256xbf16>
    %261 = vector.shape_cast %260 : vector<1x256x256xbf16> to vector<256x256xbf16>
    %cst_137 = arith.constant dense<0.000000e+00> : vector<24x256xf32>
    %262 = tpu.matmul %247, %261, %cst_137 {dimension_numbers = #tpu.dot_dimension_numbers<[1], [0], [0], [1], [0, 0, 1, 1], [], []>} : vector<24x256xbf16>, vector<256x256xbf16>, vector<24x256xf32> -> vector<24x256xf32>
    %263 = arith.addf %259, %262 : vector<24x256xf32>
    %c2_138 = arith.constant 2 : index
    %c0_139 = arith.constant 0 : index
    %c0_140 = arith.constant 0 : index
    %264 = vector.load %arg19[%c2_138, %c0_139, %c0_140] : memref<3x256x256xbf16, #tpu.memory_space<vmem>>, vector<1x256x256xbf16>
    %265 = vector.shape_cast %264 : vector<1x256x256xbf16> to vector<256x256xbf16>
    %cst_141 = arith.constant dense<0.000000e+00> : vector<24x256xf32>
    %266 = tpu.matmul %255, %265, %cst_141 {dimension_numbers = #tpu.dot_dimension_numbers<[1], [0], [0], [1], [0, 0, 1, 1], [], []>} : vector<24x256xbf16>, vector<256x256xbf16>, vector<24x256xf32> -> vector<24x256xf32>
    %267 = arith.addf %263, %266 : vector<24x256xf32>
    %c0_142 = arith.constant 0 : index
    %c0_143 = arith.constant 0 : index
    %268 = vector.load %arg20[%c0_142, %c0_143] : memref<1x256xf32, #tpu.memory_space<vmem>>, vector<1x256xf32>
    %269 = vector.broadcast %268 : vector<1x256xf32> to vector<24x256xf32>
    %270 = arith.addf %267, %269 : vector<24x256xf32>
    %cst_144 = arith.constant 0.000000e+00 : f32
    %271 = vector.broadcast %cst_144 : f32 to vector<24x256xf32>
    %272 = arith.maximumf %270, %271 : vector<24x256xf32>
    %273 = arith.truncf %206 : vector<24x128xf32> to vector<24x128xbf16>
    %c0_145 = arith.constant 0 : index
    %c0_146 = arith.constant 0 : index
    %274 = vector.load %arg21[%c0_145, %c0_146] : memref<128x256xbf16, #tpu.memory_space<vmem>>, vector<128x256xbf16>
    %cst_147 = arith.constant dense<0.000000e+00> : vector<24x256xf32>
    %275 = tpu.matmul %273, %274, %cst_147 {dimension_numbers = #tpu.dot_dimension_numbers<[1], [0], [0], [1], [0, 0, 1, 1], [], []>} : vector<24x128xbf16>, vector<128x256xbf16>, vector<24x256xf32> -> vector<24x256xf32>
    %c0_148 = arith.constant 0 : index
    %c0_149 = arith.constant 0 : index
    %276 = vector.load %arg22[%c0_148, %c0_149] : memref<1x256xf32, #tpu.memory_space<vmem>>, vector<1x256xf32>
    %277 = vector.broadcast %276 : vector<1x256xf32> to vector<24x256xf32>
    %278 = arith.addf %275, %277 : vector<24x256xf32>
    %c0_150 = arith.constant 0 : index
    %c0_151 = arith.constant 0 : index
    %279 = vector.load %arg23[%c0_150, %c0_151] : memref<1x256xf32, #tpu.memory_space<vmem>>, vector<1x256xf32>
    %280 = vector.broadcast %279 : vector<1x256xf32> to vector<24x256xf32>
    %281 = arith.mulf %280, %272 : vector<24x256xf32>
    %282 = arith.addf %281, %278 : vector<24x256xf32>
    %cst_152 = arith.constant 0.000000e+00 : f32
    %283 = vector.broadcast %cst_152 : f32 to vector<24x256xf32>
    %284 = arith.maximumf %282, %283 : vector<24x256xf32>
    %c0_153 = arith.constant 0 : index
    %c0_154 = arith.constant 0 : index
    %285 = vector.load %arg7[%c0_153, %c0_154] : memref<8x24xf32, #tpu.memory_space<vmem>>, vector<8x24xf32>
    %cst_155 = arith.constant dense<0.000000e+00> : vector<8x256xf32>
    %286 = tpu.matmul %285, %284, %cst_155 {dimension_numbers = #tpu.dot_dimension_numbers<[1], [0], [0], [1], [0, 0, 1, 1], [], []>} : vector<8x24xf32>, vector<24x256xf32>, vector<8x256xf32> -> vector<8x256xf32>
    %287 = arith.truncf %286 : vector<8x256xf32> to vector<8x256xbf16>
    %c0_156 = arith.constant 0 : index
    %c0_157 = arith.constant 0 : index
    %288 = vector.load %arg24[%c0_156, %c0_157] : memref<256x256xbf16, #tpu.memory_space<vmem>>, vector<256x256xbf16>
    %cst_158 = arith.constant dense<0.000000e+00> : vector<8x256xf32>
    %289 = tpu.matmul %287, %288, %cst_158 {dimension_numbers = #tpu.dot_dimension_numbers<[1], [0], [0], [1], [0, 0, 1, 1], [], []>} : vector<8x256xbf16>, vector<256x256xbf16>, vector<8x256xf32> -> vector<8x256xf32>
    %c0_159 = arith.constant 0 : index
    %c0_160 = arith.constant 0 : index
    %290 = vector.load %arg25[%c0_159, %c0_160] : memref<1x256xf32, #tpu.memory_space<vmem>>, vector<1x256xf32>
    %291 = vector.broadcast %290 : vector<1x256xf32> to vector<8x256xf32>
    %292 = arith.addf %289, %291 : vector<8x256xf32>
    %cst_161 = arith.constant 0.000000e+00 : f32
    %293 = vector.broadcast %cst_161 : f32 to vector<8x256xf32>
    %294 = arith.maximumf %292, %293 : vector<8x256xf32>
    %295 = arith.truncf %294 : vector<8x256xf32> to vector<8x256xbf16>
    %c0_162 = arith.constant 0 : index
    %c0_163 = arith.constant 0 : index
    %296 = vector.load %arg26[%c0_162, %c0_163] : memref<256x128xbf16, #tpu.memory_space<vmem>>, vector<256x128xbf16>
    %cst_164 = arith.constant dense<0.000000e+00> : vector<8x128xf32>
    %297 = tpu.matmul %295, %296, %cst_164 {dimension_numbers = #tpu.dot_dimension_numbers<[1], [0], [0], [1], [0, 0, 1, 1], [], []>} : vector<8x256xbf16>, vector<256x128xbf16>, vector<8x128xf32> -> vector<8x128xf32>
    %c0_165 = arith.constant 0 : index
    %c0_166 = arith.constant 0 : index
    %298 = vector.load %arg27[%c0_165, %c0_166] : memref<1x128xf32, #tpu.memory_space<vmem>>, vector<1x128xf32>
    %299 = vector.broadcast %298 : vector<1x128xf32> to vector<8x128xf32>
    %300 = arith.addf %297, %299 : vector<8x128xf32>
    %c0_167 = arith.constant 0 : index
    %c0_168 = arith.constant 0 : index
    %301 = vector.load %arg28[%c0_167, %c0_168] : memref<8x128xf32, #tpu.memory_space<vmem>>, vector<8x128xf32>
    tpu.vector_store %arg28[%c0_167, %c0_168], %300 {strides = array<i32>} : memref<8x128xf32, #tpu.memory_space<vmem>>, vector<8x128xf32>,
    return
  }
  func.func @transform_0(%arg0: i32) -> (i32, i32) {
    %c0_i32 = arith.constant 0 : i32
    %c0_i32_0 = arith.constant 0 : i32
    return %arg0, %c0_i32 : i32, i32
  }
  func.func @transform_1(%arg0: i32) -> (i32, i32) {
    %c0_i32 = arith.constant 0 : i32
    %c0_i32_0 = arith.constant 0 : i32
    %c0_i32_1 = arith.constant 0 : i32
    return %c0_i32, %c0_i32_0 : i32, i32
  }
  func.func @transform_2(%arg0: i32) -> (i32, i32) {
    %c0_i32 = arith.constant 0 : i32
    %c0_i32_0 = arith.constant 0 : i32
    %c0_i32_1 = arith.constant 0 : i32
    return %c0_i32, %c0_i32_0 : i32, i32
  }
  func.func @transform_3(%arg0: i32) -> (i32, i32) {
    %c0_i32 = arith.constant 0 : i32
    %c0_i32_0 = arith.constant 0 : i32
    %c0_i32_1 = arith.constant 0 : i32
    return %c0_i32, %c0_i32_0 : i32, i32
  }
  func.func @transform_4(%arg0: i32) -> (i32, i32) {
    %c0_i32 = arith.constant 0 : i32
    %c0_i32_0 = arith.constant 0 : i32
    %c0_i32_1 = arith.constant 0 : i32
    return %c0_i32, %c0_i32_0 : i32, i32
  }
  func.func @transform_5(%arg0: i32) -> (i32, i32) {
    %c0_i32 = arith.constant 0 : i32
    %c0_i32_0 = arith.constant 0 : i32
    %c0_i32_1 = arith.constant 0 : i32
    return %c0_i32, %c0_i32_0 : i32, i32
  }
  func.func @transform_6(%arg0: i32) -> (i32, i32) {
    %c0_i32 = arith.constant 0 : i32
    %c0_i32_0 = arith.constant 0 : i32
    %c0_i32_1 = arith.constant 0 : i32
    return %c0_i32, %c0_i32_0 : i32, i32
  }
  func.func @transform_7(%arg0: i32) -> (i32, i32, i32) {
    %c0_i32 = arith.constant 0 : i32
    %c0_i32_0 = arith.constant 0 : i32
    %c0_i32_1 = arith.constant 0 : i32
    %c0_i32_2 = arith.constant 0 : i32
    return %c0_i32, %c0_i32_0, %c0_i32_1 : i32, i32, i32
  }
  func.func @transform_8(%arg0: i32) -> (i32, i32) {
    %c0_i32 = arith.constant 0 : i32
    %c0_i32_0 = arith.constant 0 : i32
    %c0_i32_1 = arith.constant 0 : i32
    return %c0_i32, %c0_i32_0 : i32, i32
  }
  func.func @transform_9(%arg0: i32) -> (i32, i32, i32) {
    %c0_i32 = arith.constant 0 : i32
    %c0_i32_0 = arith.constant 0 : i32
    %c0_i32_1 = arith.constant 0 : i32
    %c0_i32_2 = arith.constant 0 : i32
    return %c0_i32, %c0_i32_0, %c0_i32_1 : i32, i32, i32
  }
  func.func @transform_10(%arg0: i32) -> (i32, i32) {
    %c0_i32 = arith.constant 0 : i32
    %c0_i32_0 = arith.constant 0 : i32
    %c0_i32_1 = arith.constant 0 : i32
    return %c0_i32, %c0_i32_0 : i32, i32
  }
  func.func @transform_11(%arg0: i32) -> (i32, i32, i32) {
    %c0_i32 = arith.constant 0 : i32
    %c0_i32_0 = arith.constant 0 : i32
    %c0_i32_1 = arith.constant 0 : i32
    %c0_i32_2 = arith.constant 0 : i32
    return %c0_i32, %c0_i32_0, %c0_i32_1 : i32, i32, i32
  }
  func.func @transform_12(%arg0: i32) -> (i32, i32) {
    %c0_i32 = arith.constant 0 : i32
    %c0_i32_0 = arith.constant 0 : i32
    %c0_i32_1 = arith.constant 0 : i32
    return %c0_i32, %c0_i32_0 : i32, i32
  }
  func.func @transform_13(%arg0: i32) -> (i32, i32) {
    %c0_i32 = arith.constant 0 : i32
    %c0_i32_0 = arith.constant 0 : i32
    %c0_i32_1 = arith.constant 0 : i32
    return %c0_i32, %c0_i32_0 : i32, i32
  }
  func.func @transform_14(%arg0: i32) -> (i32, i32) {
    %c0_i32 = arith.constant 0 : i32
    %c0_i32_0 = arith.constant 0 : i32
    %c0_i32_1 = arith.constant 0 : i32
    return %c0_i32, %c0_i32_0 : i32, i32
  }
  func.func @transform_15(%arg0: i32) -> (i32, i32) {
    %c0_i32 = arith.constant 0 : i32
    %c0_i32_0 = arith.constant 0 : i32
    %c0_i32_1 = arith.constant 0 : i32
    return %c0_i32, %c0_i32_0 : i32, i32
  }
  func.func @transform_16(%arg0: i32) -> (i32, i32, i32) {
    %c0_i32 = arith.constant 0 : i32
    %c0_i32_0 = arith.constant 0 : i32
    %c0_i32_1 = arith.constant 0 : i32
    %c0_i32_2 = arith.constant 0 : i32
    return %c0_i32, %c0_i32_0, %c0_i32_1 : i32, i32, i32
  }
  func.func @transform_17(%arg0: i32) -> (i32, i32) {
    %c0_i32 = arith.constant 0 : i32
    %c0_i32_0 = arith.constant 0 : i32
    %c0_i32_1 = arith.constant 0 : i32
    return %c0_i32, %c0_i32_0 : i32, i32
  }
  func.func @transform_18(%arg0: i32) -> (i32, i32, i32) {
    %c0_i32 = arith.constant 0 : i32
    %c0_i32_0 = arith.constant 0 : i32
    %c0_i32_1 = arith.constant 0 : i32
    %c0_i32_2 = arith.constant 0 : i32
    return %c0_i32, %c0_i32_0, %c0_i32_1 : i32, i32, i32
  }
  func.func @transform_19(%arg0: i32) -> (i32, i32) {
    %c0_i32 = arith.constant 0 : i32
    %c0_i32_0 = arith.constant 0 : i32
    %c0_i32_1 = arith.constant 0 : i32
    return %c0_i32, %c0_i32_0 : i32, i32
  }
  func.func @transform_20(%arg0: i32) -> (i32, i32) {
    %c0_i32 = arith.constant 0 : i32
    %c0_i32_0 = arith.constant 0 : i32
    %c0_i32_1 = arith.constant 0 : i32
    return %c0_i32, %c0_i32_0 : i32, i32
  }
  func.func @transform_21(%arg0: i32) -> (i32, i32) {
    %c0_i32 = arith.constant 0 : i32
    %c0_i32_0 = arith.constant 0 : i32
    %c0_i32_1 = arith.constant 0 : i32
    return %c0_i32, %c0_i32_0 : i32, i32
  }
  func.func @transform_22(%arg0: i32) -> (i32, i32) {
    %c0_i32 = arith.constant 0 : i32
    %c0_i32_0 = arith.constant 0 : i32
    %c0_i32_1 = arith.constant 0 : i32
    return %c0_i32, %c0_i32_0 : i32, i32
  }
  func.func @transform_23(%arg0: i32) -> (i32, i32) {
    %c0_i32 = arith.constant 0 : i32
    %c0_i32_0 = arith.constant 0 : i32
    %c0_i32_1 = arith.constant 0 : i32
    return %c0_i32, %c0_i32_0 : i32, i32
  }
  func.func @transform_24(%arg0: i32) -> (i32, i32) {
    %c0_i32 = arith.constant 0 : i32
    %c0_i32_0 = arith.constant 0 : i32
    %c0_i32_1 = arith.constant 0 : i32
    return %c0_i32, %c0_i32_0 : i32, i32
  }
  func.func @transform_25(%arg0: i32) -> (i32, i32) {
    %c0_i32 = arith.constant 0 : i32
    %c0_i32_0 = arith.constant 0 : i32
    %c0_i32_1 = arith.constant 0 : i32
    return %c0_i32, %c0_i32_0 : i32, i32
  }
  func.func @transform_26(%arg0: i32) -> (i32, i32) {
    %c0_i32 = arith.constant 0 : i32
    %c0_i32_0 = arith.constant 0 : i32
    %c0_i32_1 = arith.constant 0 : i32
    return %c0_i32, %c0_i32_0 : i32, i32
  }
  func.func @transform_27(%arg0: i32) -> (i32, i32) {
    %c0_i32 = arith.constant 0 : i32
    %c0_i32_0 = arith.constant 0 : i32
    return %arg0, %c0_i32 : i32, i32
  }
}

</mosaic_0001>

<bundles_post_ra>
// kernel: tile.2
= control target key start
LH: loop header
LB: loop body
LE: loop exit
PB: predicated region body
PF: predicated region fallthrough
CT: control target
= control target key end

     0   :  { %vm3_vm0 = vcmask 7168   ;;  %s22_s10 = smov 126   ;;  %s45_s0 = inlined_call_operand.vmem [shape: s32[8,3], index: 0, kind: input, shape index: {}]   ;;  %s46_s1 = inlined_call_operand.vmem [shape: s32[24,1], index: 1, kind: output, shape index: {}]  }
   0x1   :  { %v5_v0 = vld [vmem:[%s45_s0] sm:$0xff]   ;;  %s21_s0 = smov 127  }
   0x2   :  { %6 = vrot.lane.b32.xlu0 %v5_v0, %s21_s0  ;;  %4 = vst.msk [vmem:[%s46_s1] ss:$3 sm:$0xff] %vm3_vm0, %v5_v0  }
   0x6   :  { %12 = vrot.lane.b32.xlu0 %v5_v0, %s22_s10 }
  0x74   :  { %v7_v1 = vpop.permute.xlu0 %6  }
  0x75   :  { %17 = vst.msk [vmem:[%s46_s1 + $0x1] ss:$3 sm:$0xff] %vm3_vm0, %v7_v1  }
  0x78   :  { %v13_v2 = vpop.permute.xlu0 %12  }
  0x79   :  { %18 = vst.msk [vmem:[%s46_s1 + $0x2] ss:$3 sm:$0xff] %vm3_vm0, %v13_v2  }

// kernel: tile.1
= control target key start
LH: loop header
LB: loop body
LE: loop exit
PB: predicated region body
PF: predicated region fallthrough
CT: control target
= control target key end

     0   :  { %vm3_vm0 = vcmask 7168   ;;  %s84_s8 = smov 125   ;;  %s85_s13 = smov 126   ;;  %s167_s0 = inlined_call_operand.vmem [shape: s32[8,8], index: 0, kind: input, shape index: {}]   ;;  %s168_s1 = inlined_call_operand.vmem [shape: s32[64,1], index: 1, kind: output, shape index: {}]  }
   0x1   :  { %v6_v0 = vld [vmem:[%s167_s0] sm:$0xff]   ;;  %s83_s0 = smov 127   ;;  %s86_s14 = smov 124  }
   0x2   :  { %7 = vrot.lane.b32.xlu0 %v6_v0, %s83_s0  ;;  %23 = vrot.lane.b32.xlu1 %v6_v0, %s84_s8  ;;  %4 = vst.msk [vmem:[%s168_s1] ss:$8 sm:$0xf] %vm3_vm0, %v6_v0   ;;  %5 = vst.msk [vmem:[%s168_s1] ss:$8 sm:$0xf0] %vm3_vm0, %v6_v0  }
   0x3   :  { %s87_s15 = smov 123   ;;  %s88_s16 = smov 122  }
   0x4   :  { %s89_s17 = smov 121  }
   0x6   :  { %15 = vrot.lane.b32.xlu0 %v6_v0, %s85_s13  ;;  %31 = vrot.lane.b32.xlu1 %v6_v0, %s86_s14 }
   0xa   :  { %39 = vrot.lane.b32.xlu0 %v6_v0, %s87_s15  ;;  %47 = vrot.lane.b32.xlu1 %v6_v0, %s88_s16 }
   0xe   :  { %55 = vrot.lane.b32.xlu0 %v6_v0, %s89_s17 }
  0x74   :  { %v8_v1 = vpop.permute.xlu0 %7   ;;  %v24_v2 = vpop.permute.xlu1 %23  }
  0x75   :  { %62 = vst.msk [vmem:[%s168_s1 + $0x1] ss:$8 sm:$0xf] %vm3_vm0, %v8_v1   ;;  %63 = vst.msk [vmem:[%s168_s1 + $0x1] ss:$8 sm:$0xf0] %vm3_vm0, %v8_v1  }
  0x76   :  { %66 = vst.msk [vmem:[%s168_s1 + $0x3] ss:$8 sm:$0xf] %vm3_vm0, %v24_v2   ;;  %67 = vst.msk [vmem:[%s168_s1 + $0x3] ss:$8 sm:$0xf0] %vm3_vm0, %v24_v2  }
  0x78   :  { %v16_v3 = vpop.permute.xlu0 %15   ;;  %v32_v4 = vpop.permute.xlu1 %31  }
  0x79   :  { %64 = vst.msk [vmem:[%s168_s1 + $0x2] ss:$8 sm:$0xf] %vm3_vm0, %v16_v3   ;;  %65 = vst.msk [vmem:[%s168_s1 + $0x2] ss:$8 sm:$0xf0] %vm3_vm0, %v16_v3  }
  0x7a   :  { %68 = vst.msk [vmem:[%s168_s1 + $0x4] ss:$8 sm:$0xf] %vm3_vm0, %v32_v4   ;;  %69 = vst.msk [vmem:[%s168_s1 + $0x4] ss:$8 sm:$0xf0] %vm3_vm0, %v32_v4  }
  0x7c   :  { %v40_v5 = vpop.permute.xlu0 %39   ;;  %v48_v6 = vpop.permute.xlu1 %47  }
  0x7d   :  { %70 = vst.msk [vmem:[%s168_s1 + $0x5] ss:$8 sm:$0xf] %vm3_vm0, %v40_v5   ;;  %71 = vst.msk [vmem:[%s168_s1 + $0x5] ss:$8 sm:$0xf0] %vm3_vm0, %v40_v5  }
  0x7e   :  { %72 = vst.msk [vmem:[%s168_s1 + $0x6] ss:$8 sm:$0xf] %vm3_vm0, %v48_v6   ;;  %73 = vst.msk [vmem:[%s168_s1 + $0x6] ss:$8 sm:$0xf0] %vm3_vm0, %v48_v6  }
  0x80   :  { %v56_v7 = vpop.permute.xlu0 %55  }
  0x81   :  { %74 = vst.msk [vmem:[%s168_s1 + $0x7] ss:$8 sm:$0xf] %vm3_vm0, %v56_v7   ;;  %75 = vst.msk [vmem:[%s168_s1 + $0x7] ss:$8 sm:$0xf0] %vm3_vm0, %v56_v7  }

// kernel: tile.0
= control target key start
LH: loop header
LB: loop body
LE: loop exit
PB: predicated region body
PF: predicated region fallthrough
CT: control target
= control target key end

     0   :  { %vm3_vm0 = vcmask 7168   ;;  %s264_s8 = smov 125   ;;  %s265_s17 = smov 126   ;;  %s547_s0 = inlined_call_operand.vmem [shape: s32[8,16], index: 0, kind: input, shape index: {}]   ;;  %s548_s1 = inlined_call_operand.vmem [shape: s32[128,1], index: 1, kind: output, shape index: {}]  }
   0x1   :  { %v8_v0 = vld [vmem:[%s547_s0] sm:$0xff]   ;;  %s263_s0 = smov 127   ;;  %s266_s18 = smov 124  }
   0x2   :  { %9 = vrot.lane.b32.xlu0 %v8_v0, %s263_s0  ;;  %33 = vrot.lane.b32.xlu1 %v8_v0, %s264_s8  ;;  %4 = vst.msk [vmem:[%s548_s1] ss:$16 sm:$0x3] %vm3_vm0, %v8_v0   ;;  %5 = vst.msk [vmem:[%s548_s1] ss:$16 sm:$0xc] %vm3_vm0, %v8_v0  }
   0x3   :  { %6 = vst.msk [vmem:[%s548_s1] ss:$16 sm:$0x30] %vm3_vm0, %v8_v0   ;;  %7 = vst.msk [vmem:[%s548_s1] ss:$16 sm:$0xc0] %vm3_vm0, %v8_v0  }
   0x4   :  { %s267_s19 = smov 123   ;;  %s268_s20 = smov 122  }
   0x5   :  { %s269_s21 = smov 121   ;;  %s270_s22 = smov 120  }
   0x6   :  { %21 = vrot.lane.b32.xlu0 %v8_v0, %s265_s17  ;;  %45 = vrot.lane.b32.xlu1 %v8_v0, %s266_s18  ;;  %s271_s23 = smov 119   ;;  %s272_s24 = smov 118  }
   0x7   :  { %s273_s25 = smov 117   ;;  %s274_s26 = smov 116  }
   0x8   :  { %s275_s27 = smov 115   ;;  %s276_s28 = smov 114  }
   0x9   :  { %s277_s29 = smov 113  }
   0xa   :  { %57 = vrot.lane.b32.xlu0 %v8_v0, %s267_s19  ;;  %69 = vrot.lane.b32.xlu1 %v8_v0, %s268_s20 }
   0xe   :  { %81 = vrot.lane.b32.xlu0 %v8_v0, %s269_s21  ;;  %93 = vrot.lane.b32.xlu1 %v8_v0, %s270_s22 }
  0x12   :  { %105 = vrot.lane.b32.xlu0 %v8_v0, %s271_s23  ;;  %117 = vrot.lane.b32.xlu1 %v8_v0, %s272_s24 }
  0x16   :  { %129 = vrot.lane.b32.xlu0 %v8_v0, %s273_s25  ;;  %141 = vrot.lane.b32.xlu1 %v8_v0, %s274_s26 }
  0x1a   :  { %153 = vrot.lane.b32.xlu0 %v8_v0, %s275_s27  ;;  %165 = vrot.lane.b32.xlu1 %v8_v0, %s276_s28 }
  0x1e   :  { %177 = vrot.lane.b32.xlu0 %v8_v0, %s277_s29 }
  0x74   :  { %v10_v1 = vpop.permute.xlu0 %9   ;;  %v34_v2 = vpop.permute.xlu1 %33  }
  0x75   :  { %188 = vst.msk [vmem:[%s548_s1 + $0x1] ss:$16 sm:$0x3] %vm3_vm0, %v10_v1   ;;  %189 = vst.msk [vmem:[%s548_s1 + $0x1] ss:$16 sm:$0xc] %vm3_vm0, %v10_v1  }
  0x76   :  { %190 = vst.msk [vmem:[%s548_s1 + $0x1] ss:$16 sm:$0x30] %vm3_vm0, %v10_v1   ;;  %191 = vst.msk [vmem:[%s548_s1 + $0x1] ss:$16 sm:$0xc0] %vm3_vm0, %v10_v1  }
  0x77   :  { %196 = vst.msk [vmem:[%s548_s1 + $0x3] ss:$16 sm:$0x3] %vm3_vm0, %v34_v2   ;;  %197 = vst.msk [vmem:[%s548_s1 + $0x3] ss:$16 sm:$0xc] %vm3_vm0, %v34_v2  }
  0x78   :  { %198 = vst.msk [vmem:[%s548_s1 + $0x3] ss:$16 sm:$0x30] %vm3_vm0, %v34_v2   ;;  %199 = vst.msk [vmem:[%s548_s1 + $0x3] ss:$16 sm:$0xc0] %vm3_vm0, %v34_v2   ;;  %v22_v3 = vpop.permute.xlu0 %21   ;;  %v46_v4 = vpop.permute.xlu1 %45  }
  0x79   :  { %192 = vst.msk [vmem:[%s548_s1 + $0x2] ss:$16 sm:$0x3] %vm3_vm0, %v22_v3   ;;  %193 = vst.msk [vmem:[%s548_s1 + $0x2] ss:$16 sm:$0xc] %vm3_vm0, %v22_v3  }
  0x7a   :  { %194 = vst.msk [vmem:[%s548_s1 + $0x2] ss:$16 sm:$0x30] %vm3_vm0, %v22_v3   ;;  %195 = vst.msk [vmem:[%s548_s1 + $0x2] ss:$16 sm:$0xc0] %vm3_vm0, %v22_v3  }
  0x7b   :  { %200 = vst.msk [vmem:[%s548_s1 + $0x4] ss:$16 sm:$0x3] %vm3_vm0, %v46_v4   ;;  %201 = vst.msk [vmem:[%s548_s1 + $0x4] ss:$16 sm:$0xc] %vm3_vm0, %v46_v4  }
  0x7c   :  { %202 = vst.msk [vmem:[%s548_s1 + $0x4] ss:$16 sm:$0x30] %vm3_vm0, %v46_v4   ;;  %203 = vst.msk [vmem:[%s548_s1 + $0x4] ss:$16 sm:$0xc0] %vm3_vm0, %v46_v4   ;;  %v58_v5 = vpop.permute.xlu0 %57   ;;  %v70_v6 = vpop.permute.xlu1 %69  }
  0x7d   :  { %204 = vst.msk [vmem:[%s548_s1 + $0x5] ss:$16 sm:$0x3] %vm3_vm0, %v58_v5   ;;  %205 = vst.msk [vmem:[%s548_s1 + $0x5] ss:$16 sm:$0xc] %vm3_vm0, %v58_v5  }
  0x7e   :  { %206 = vst.msk [vmem:[%s548_s1 + $0x5] ss:$16 sm:$0x30] %vm3_vm0, %v58_v5   ;;  %207 = vst.msk [vmem:[%s548_s1 + $0x5] ss:$16 sm:$0xc0] %vm3_vm0, %v58_v5  }
  0x7f   :  { %208 = vst.msk [vmem:[%s548_s1 + $0x6] ss:$16 sm:$0x3] %vm3_vm0, %v70_v6   ;;  %209 = vst.msk [vmem:[%s548_s1 + $0x6] ss:$16 sm:$0xc] %vm3_vm0, %v70_v6  }
  0x80   :  { %210 = vst.msk [vmem:[%s548_s1 + $0x6] ss:$16 sm:$0x30] %vm3_vm0, %v70_v6   ;;  %211 = vst.msk [vmem:[%s548_s1 + $0x6] ss:$16 sm:$0xc0] %vm3_vm0, %v70_v6   ;;  %v82_v7 = vpop.permute.xlu0 %81   ;;  %v94_v8 = vpop.permute.xlu1 %93  }
  0x81   :  { %212 = vst.msk [vmem:[%s548_s1 + $0x7] ss:$16 sm:$0x3] %vm3_vm0, %v82_v7   ;;  %213 = vst.msk [vmem:[%s548_s1 + $0x7] ss:$16 sm:$0xc] %vm3_vm0, %v82_v7  }
  0x82   :  { %214 = vst.msk [vmem:[%s548_s1 + $0x7] ss:$16 sm:$0x30] %vm3_vm0, %v82_v7   ;;  %215 = vst.msk [vmem:[%s548_s1 + $0x7] ss:$16 sm:$0xc0] %vm3_vm0, %v82_v7  }
  0x83   :  { %216 = vst.msk [vmem:[%s548_s1 + $0x8] ss:$16 sm:$0x3] %vm3_vm0, %v94_v8   ;;  %217 = vst.msk [vmem:[%s548_s1 + $0x8] ss:$16 sm:$0xc] %vm3_vm0, %v94_v8  }
  0x84   :  { %218 = vst.msk [vmem:[%s548_s1 + $0x8] ss:$16 sm:$0x30] %vm3_vm0, %v94_v8   ;;  %219 = vst.msk [vmem:[%s548_s1 + $0x8] ss:$16 sm:$0xc0] %vm3_vm0, %v94_v8   ;;  %v106_v9 = vpop.permute.xlu0 %105   ;;  %v118_v10 = vpop.permute.xlu1 %117  }
  0x85   :  { %220 = vst.msk [vmem:[%s548_s1 + $0x9] ss:$16 sm:$0x3] %vm3_vm0, %v106_v9   ;;  %221 = vst.msk [vmem:[%s548_s1 + $0x9] ss:$16 sm:$0xc] %vm3_vm0, %v106_v9  }
  0x86   :  { %222 = vst.msk [vmem:[%s548_s1 + $0x9] ss:$16 sm:$0x30] %vm3_vm0, %v106_v9   ;;  %223 = vst.msk [vmem:[%s548_s1 + $0x9] ss:$16 sm:$0xc0] %vm3_vm0, %v106_v9  }
  0x87   :  { %224 = vst.msk [vmem:[%s548_s1 + $0xa] ss:$16 sm:$0x3] %vm3_vm0, %v118_v10   ;;  %225 = vst.msk [vmem:[%s548_s1 + $0xa] ss:$16 sm:$0xc] %vm3_vm0, %v118_v10  }
  0x88   :  { %226 = vst.msk [vmem:[%s548_s1 + $0xa] ss:$16 sm:$0x30] %vm3_vm0, %v118_v10   ;;  %227 = vst.msk [vmem:[%s548_s1 + $0xa] ss:$16 sm:$0xc0] %vm3_vm0, %v118_v10   ;;  %v130_v11 = vpop.permute.xlu0 %129   ;;  %v142_v12 = vpop.permute.xlu1 %141  }
  0x89   :  { %228 = vst.msk [vmem:[%s548_s1 + $0xb] ss:$16 sm:$0x3] %vm3_vm0, %v130_v11   ;;  %229 = vst.msk [vmem:[%s548_s1 + $0xb] ss:$16 sm:$0xc] %vm3_vm0, %v130_v11  }
  0x8a   :  { %230 = vst.msk [vmem:[%s548_s1 + $0xb] ss:$16 sm:$0x30] %vm3_vm0, %v130_v11   ;;  %231 = vst.msk [vmem:[%s548_s1 + $0xb] ss:$16 sm:$0xc0] %vm3_vm0, %v130_v11  }
  0x8b   :  { %232 = vst.msk [vmem:[%s548_s1 + $0xc] ss:$16 sm:$0x3] %vm3_vm0, %v142_v12   ;;  %233 = vst.msk [vmem:[%s548_s1 + $0xc] ss:$16 sm:$0xc] %vm3_vm0, %v142_v12  }
  0x8c   :  { %234 = vst.msk [vmem:[%s548_s1 + $0xc] ss:$16 sm:$0x30] %vm3_vm0, %v142_v12   ;;  %235 = vst.msk [vmem:[%s548_s1 + $0xc] ss:$16 sm:$0xc0] %vm3_vm0, %v142_v12   ;;  %v154_v13 = vpop.permute.xlu0 %153   ;;  %v166_v14 = vpop.permute.xlu1 %165  }
  0x8d   :  { %236 = vst.msk [vmem:[%s548_s1 + $0xd] ss:$16 sm:$0x3] %vm3_vm0, %v154_v13   ;;  %237 = vst.msk [vmem:[%s548_s1 + $0xd] ss:$16 sm:$0xc] %vm3_vm0, %v154_v13  }
  0x8e   :  { %238 = vst.msk [vmem:[%s548_s1 + $0xd] ss:$16 sm:$0x30] %vm3_vm0, %v154_v13   ;;  %239 = vst.msk [vmem:[%s548_s1 + $0xd] ss:$16 sm:$0xc0] %vm3_vm0, %v154_v13  }
  0x8f   :  { %240 = vst.msk [vmem:[%s548_s1 + $0xe] ss:$16 sm:$0x3] %vm3_vm0, %v166_v14   ;;  %241 = vst.msk [vmem:[%s548_s1 + $0xe] ss:$16 sm:$0xc] %vm3_vm0, %v166_v14  }
  0x90   :  { %242 = vst.msk [vmem:[%s548_s1 + $0xe] ss:$16 sm:$0x30] %vm3_vm0, %v166_v14   ;;  %243 = vst.msk [vmem:[%s548_s1 + $0xe] ss:$16 sm:$0xc0] %vm3_vm0, %v166_v14   ;;  %v178_v15 = vpop.permute.xlu0 %177  }
  0x91   :  { %244 = vst.msk [vmem:[%s548_s1 + $0xf] ss:$16 sm:$0x3] %vm3_vm0, %v178_v15   ;;  %245 = vst.msk [vmem:[%s548_s1 + $0xf] ss:$16 sm:$0xc] %vm3_vm0, %v178_v15  }
  0x92   :  { %246 = vst.msk [vmem:[%s548_s1 + $0xf] ss:$16 sm:$0x30] %vm3_vm0, %v178_v15   ;;  %247 = vst.msk [vmem:[%s548_s1 + $0xf] ss:$16 sm:$0xc0] %vm3_vm0, %v178_v15  }

// kernel: resnet_forward.1
= control target key start
LH: loop header
LB: loop body
LE: loop exit
PB: predicated region body
PF: predicated region fallthrough
CT: control target
= control target key end

     0   :  { %s9237_s0 = inlined_call_operand.vmem [shape: f32[128,4], index: 0, kind: input, shape index: {}]   ;;  %s9238_s1 = inlined_call_operand.vmem [shape: s32[128,1], index: 1, kind: input, shape index: {}]   ;;  %s9239_s2 = inlined_call_operand.vmem [shape: s32[64,1], index: 2, kind: input, shape index: {}]   ;;  %s9240_s3 = inlined_call_operand.vmem [shape: s32[24,1], index: 3, kind: input, shape index: {}]   ;;  %s9241_s4 = inlined_call_operand.vmem [shape: f32[64,128], index: 4, kind: input, shape index: {}]   ;;  %s9242_s5 = inlined_call_operand.vmem [shape: f32[24,64], index: 5, kind: input, shape index: {}]   ;;  %s9243_s6 = inlined_call_operand.vmem [shape: f32[8,24], index: 6, kind: input, shape index: {}]   ;;  %s9244_s7 = inlined_call_operand.vmem [shape: bf16[3,4,64], index: 7, kind: input, shape index: {}]   ;;  %s9245_s8 = inlined_call_operand.vmem [shape: f32[1,64], index: 8, kind: input, shape index: {}]   ;;  %s9246_s9 = inlined_call_operand.hbm [shape: bf16[3,64,128], index: 9, kind: input, shape index: {}]   ;;  %s9247_s10 = inlined_call_operand.vmem [shape: f32[1,128], index: 10, kind: input, shape index: {}]   ;;  %s9248_s11 = inlined_call_operand.vmem [shape: bf16[3,128,128], index: 11, kind: input, shape index: {}]   ;;  %s9249_s12 = inlined_call_operand.vmem [shape: f32[1,128], index: 12, kind: input, shape index: {}]   ;;  %s9250_s13 = inlined_call_operand.hbm [shape: bf16[64,128], index: 13, kind: input, shape index: {}]   ;;  %s9251_s14 = inlined_call_operand.vmem [shape: f32[1,128], index: 14, kind: input, shape index: {}]   ;;  %s9252_s15 = inlined_call_operand.vmem [shape: f32[1,128], index: 15, kind: input, shape index: {}]   ;;  %s9253_s16 = inlined_call_operand.vmem [shape: bf16[3,128,256], index: 16, kind: input, shape index: {}]   ;;  %s9254_s17 = inlined_call_operand.vmem [shape: f32[1,256], index: 17, kind: input, shape index: {}]   ;;  %s9255_s18 = inlined_call_operand.hbm [shape: bf16[3,256,256], index: 18, kind: input, shape index: {}]   ;;  %s9256_s19 = inlined_call_operand.vmem [shape: f32[1,256], index: 19, kind: input, shape index: {}]   ;;  %s9257_s20 = inlined_call_operand.hbm [shape: bf16[128,256], index: 20, kind: input, shape index: {}]   ;;  %s9258_s21 = inlined_call_operand.vmem [shape: f32[1,256], index: 21, kind: input, shape index: {}]   ;;  %s9259_s22 = inlined_call_operand.vmem [shape: f32[1,256], index: 22, kind: input, shape index: {}]   ;;  %s9260_s23 = inlined_call_operand.hbm [shape: bf16[256,256], index: 23, kind: input, shape index: {}]   ;;  %s9261_s24 = inlined_call_operand.vmem [shape: f32[1,256], index: 24, kind: input, shape index: {}]   ;;  %s9262_s25 = inlined_call_operand.hbm [shape: bf16[256,128], index: 25, kind: input, shape index: {}]   ;;  %s9263_s26 = inlined_call_operand.vmem [shape: f32[1,128], index: 26, kind: input, shape index: {}]   ;;  %s9264_s27 = inlined_call_operand.vmem [shape: f32[8,128], index: 27, kind: output, shape index: {}]  }
   0x1   :  { %9304 = sst [smem:[#allocation25_spill]] %s9237_s0 }
   0x2   :  { %9305 = sst [smem:[#allocation26_spill]] %s9238_s1 }
   0x3   :  { %9306 = sst [smem:[#allocation27_spill]] %s9239_s2 }
   0x4   :  { %9307 = sst [smem:[#allocation28_spill]] %s9240_s3 }
   0x5   :  { %9308 = sst [smem:[#allocation29_spill]] %s9241_s4 }
   0x6   :  { %9309 = sst [smem:[#allocation30_spill]] %s9242_s5 }
   0x7   :  { %9310 = sst [smem:[#allocation31_spill]] %s9243_s6 }
   0x8   :  { %9311 = sst [smem:[#allocation32_spill]] %s9244_s7 }
   0x9   :  { %9312 = sst [smem:[#allocation33_spill]] %s9245_s8 }
   0xa   :  { %9313 = sst [smem:[#allocation34_spill]] %s9246_s9 }
   0xb   :  { %9314 = sst [smem:[#allocation35_spill]] %s9247_s10 }
   0xc   :  { %9315 = sst [smem:[#allocation36_spill]] %s9248_s11 }
   0xd   :  { %32 = vsyncpa [#allocation3], 0 }
   0xe   :  { %33 = vsyncpa [#allocation5], 0 }
   0xf   :  { %34 = vsyncpa [#allocation8], 0 }
  0x10   :  { %35 = vsyncpa [#allocation11], 0  ;;  %s6485_s7 = smov [#allocation4]  }
  0x11   :  { %s77_s4 = sshll.u32 %s6485_s7, 4  ;;  %s78_s4 = int_to_ptr.vmem [resolvable:$true] %s77_s4 }
  0x12   :  { %s6365_s8 = scalar_lea.vmem %s78_s4, 512  ;;  %p6370_p1 = scmp.lt.s32.totalorder %s78_s4, %s78_s4 }
  0x13   :  { %p6366_p0 = scmp.ne.s32.totalorder %s78_s4, %s6365_s8  ;;  %p6371_p2 = scmp.lt.s32.totalorder %s6365_s8, %s6365_s8 }
  0x15   :  { %p6372_p3 = por %p6371_p2, %p6370_p1 }
  0x17   :  { %p6373_p4 = pnand %p6372_p3, %p6366_p0 }
  0x19   :  { %6376 = shalt.err (!%p6373_p4)
}
  0x1a   :  { %s6486_s30 = smov 64   ;;  %s6487_s9 = smov 4  }
  0x1b   :  { %83 = dma.hbm_to_vmem [thread:$0]  %s9250_s13, 512, %s78_s4, [#allocation5], %s6486_s30, %s6486_s30, %s6487_s9  }
  0x1c   :  { %s6488_s0 = smov [#allocation7]   ;;  %s6489_s29 = smov [#allocation2]  }
  0x1d   :  { %s111_s10 = sshll.u32 %s6488_s0, 4  ;;  %s59_s1 = sshll.u32 %s6489_s29, 4  ;;  %s112_s10 = int_to_ptr.vmem [resolvable:$true] %s111_s10  ;;  %s60_s1 = int_to_ptr.vmem [resolvable:$true] %s59_s1 }
  0x1e   :  { %s6385_s6 = scalar_lea.vmem %s112_s10, 2048  ;;  %p6390_p6 = scmp.lt.s32.totalorder %s112_s10, %s112_s10 }
  0x1f   :  { %p6386_p5 = scmp.ne.s32.totalorder %s112_s10, %s6385_s6  ;;  %p6391_p7 = scmp.lt.s32.totalorder %s6385_s6, %s6385_s6 }
  0x21   :  { %p6392_p8 = por %p6391_p7, %p6390_p6 }
  0x23   :  { %p6393_p9 = pnand %p6392_p8, %p6386_p5 }
  0x25   :  { %6396 = shalt.err (!%p6393_p9)
}
  0x26   :  { %s6490_s11 = smov 128   ;;  %s6491_s2 = smov 8  }
  0x27   :  { %117 = dma.hbm_to_vmem [thread:$0]  %s9257_s20, 2048, %s112_s10, [#allocation8], %s6490_s11, %s6490_s11, %s6491_s2  }
  0x28   :  { %s6405_s13 = scalar_lea.vmem %s60_s1, 1536  ;;  %p6410_p11 = scmp.lt.s32.totalorder %s60_s1, %s60_s1 }
  0x29   :  { %p6406_p10 = scmp.ne.s32.totalorder %s60_s1, %s6405_s13  ;;  %p6411_p12 = scmp.lt.s32.totalorder %s6405_s13, %s6405_s13 }
  0x2b   :  { %p6412_p13 = por %p6411_p12, %p6410_p11 }
  0x2d   :  { %p6413_p0 = pnand %p6412_p13, %p6406_p10 }
  0x2f   :  { %6416 = shalt.err (!%p6413_p0)
}
  0x30   :  { %s9316_s5 = sld [smem:[#allocation34_spill]]  ;;  %s6492_s28 = smov [#allocation6]  }
  0x31   :  { %s97_s0 = sshll.u32 %s6492_s28, 4  ;;  %s6493_s29 = smov [#allocation9]   ;;  %s98_s0 = int_to_ptr.vmem [resolvable:$true] %s97_s0 }
  0x32   :  { %s127_s20 = sshll.u32 %s6493_s29, 4  ;;  %s6425_s10 = scalar_lea.vmem %s98_s0, 12288  ;;  %s128_s20 = int_to_ptr.vmem [resolvable:$true] %s127_s20 }
  0x33   :  { %p6426_p1 = scmp.ne.s32.totalorder %s98_s0, %s6425_s10  ;;  %p6430_p2 = scmp.lt.s32.totalorder %s98_s0, %s98_s0 }
  0x34   :  { %p6431_p3 = scmp.lt.s32.totalorder %s6425_s10, %s6425_s10 }
  0x36   :  { %65 = dma.hbm_to_vmem [thread:$0]  %s9316_s5, 1536, %s60_s1, [#allocation3], %s6486_s30, %s6486_s30, %s6487_s9  }
  0x37   :  { %p6432_p4 = por %p6431_p3, %p6430_p2 }
  0x39   :  { %p6433_p5 = pnand %p6432_p4, %p6426_p1 }
  0x3b   :  { %6436 = shalt.err (!%p6433_p5)
}
  0x3c   :  { %103 = dma.hbm_to_vmem [thread:$0]  %s9255_s18, 12288, %s98_s0, [#allocation5], %s6490_s11, %s6490_s11, %s6491_s2  }
  0x3d   :  { %s6445_s1 = scalar_lea.vmem %s128_s20, 4096  ;;  %p6450_p7 = scmp.lt.s32.totalorder %s128_s20, %s128_s20 }
  0x3e   :  { %p6446_p6 = scmp.ne.s32.totalorder %s128_s20, %s6445_s1  ;;  %p6451_p8 = scmp.lt.s32.totalorder %s6445_s1, %s6445_s1 }
  0x40   :  { %p6452_p9 = por %p6451_p8, %p6450_p7 }
  0x42   :  { %p6453_p10 = pnand %p6452_p9, %p6446_p6 }
  0x44   :  { %6456 = shalt.err (!%p6453_p10)
}
  0x45   :  { %133 = dma.hbm_to_vmem [thread:$0]  %s9260_s23, 4096, %s128_s20, [#allocation8], %s6490_s11, %s6490_s11, %s6491_s2  }
  0x46   :  { %s6494_s4 = smov [#allocation10]  }
  0x47   :  { %s141_s8 = sshll.u32 %s6494_s4, 4  ;;  %s142_s8 = int_to_ptr.vmem [resolvable:$true] %s141_s8 }
  0x48   :  { %s6465_s5 = scalar_lea.vmem %s142_s8, 2048  ;;  %p6470_p12 = scmp.lt.s32.totalorder %s142_s8, %s142_s8 }
  0x49   :  { %p6466_p11 = scmp.ne.s32.totalorder %s142_s8, %s6465_s5  ;;  %p6471_p13 = scmp.lt.s32.totalorder %s6465_s5, %s6465_s5 }
  0x4b   :  { %p6472_p0 = por %p6471_p13, %p6470_p12 }
  0x4d   :  { %p6473_p1 = pnand %p6472_p0, %p6466_p11 }
  0x4f   :  { %6476 = shalt.err (!%p6473_p1)
}
  0x50   :  { %147 = dma.hbm_to_vmem [thread:$0]  %s9262_s25, 2048, %s142_s8, [#allocation11], %s6486_s30, %s6486_s30, %s6487_s9  }
  0x51   :  { %6477 = dma.done.wait [#allocation3], 1536  }
  0x52   :  { %6478 = vsyncadd [#allocation3], 4294965760 }
  0x53   :  { %6479 = dma.done.wait [#allocation5], 12800  }
  0x54   :  { %6480 = vsyncadd [#allocation5], 4294954496 }
  0x55   :  { %6481 = dma.done.wait [#allocation8], 6144  }
  0x56   :  { %6482 = vsyncadd [#allocation8], 4294961152 }
  0x57   :  { %6483 = dma.done.wait [#allocation11], 2048  }
  0x58   :  { %6484 = vsyncadd [#allocation11], 4294965248  ;;  %v9278_v0 = vmov 0   ;;  %s9317_s2 = sld [smem:[#allocation26_spill]]  ;;  %v244_v37 = vlaneseq }
  0x59   :  { %6011 = vset.pattern.permute.xlu1 %v9278_v0  ;;  %6010 = vset.pattern.permute.xlu0 %v9278_v0  ;;  %s9318_s4 = sld [smem:[#allocation25_spill]] }
  0x5a   :  { %v6807_v41 = vshrl.u32 %v244_v37, 7  ;;  %s9319_s0 = sld [smem:[#allocation32_spill]] }
  0x5b   :  { %s9360_s8 = sld [smem:[#allocation27_spill]] }
  0x5c   :  { %s9415_s13 = sld [smem:[#allocation28_spill]] }
  0x5d   :  { %s9425_s9 = sld [smem:[#allocation33_spill]] }
  0x5e   :  { %v6679_v1 = vld [vmem:[%s9317_s2 + $0x10] sm:$0xff]  ;;  %v6684_v2 = vld [vmem:[%s9317_s2] sm:$0xff]  ;;  %v6689_v3 = vld [vmem:[%s9317_s2 + $0x18] sm:$0xff]  ;;  %s9500_s18 = sld [smem:[#allocation35_spill]] }
  0x5f   :  { %vm214_vm0 = vcmp.gt.s32.totalorder %v6679_v1, 0  ;;  %vm212_vm1 = vcmp.gt.s32.totalorder %v6684_v2, 0  ;;  %vm215_vm2 = vcmp.gt.s32.totalorder %v6689_v3, 0  ;;  %v6697_v4 = vld [vmem:[%s9317_s2 + $0x8] sm:$0xff]  ;;  %v6710_v8 = vld [vmem:[%s9317_s2 + $0x20] sm:$0xff]  ;;  %v6719_v11 = vld [vmem:[%s9317_s2 + $0x38] sm:$0xff] }
  0x60   :  { %v265_v5 = vsel %vm214_vm0, 1, %v9278_v0  ;;  %v263_v6 = vsel %vm212_vm1, 1, %v9278_v0  ;;  %vm213_vm3 = vcmp.gt.s32.totalorder %v6697_v4, 0  ;;  %v6705_v7 = vld [vmem:[%s9317_s2 + $0x28] sm:$0xff]  ;;  %v266_v9 = vsel %vm215_vm2, 1, %v9278_v0  ;;  %v6724_v12 = vld [vmem:[%s9317_s2 + $0x30] sm:$0xff] }
  0x61   :  { %286 = vperm.xlu1 %6011, %v265_v5   ;;  %280 = vperm.xlu0 %6010, %v263_v6   ;;  %v264_v10 = vsel %vm213_vm3, 1, %v9278_v0  ;;  %vm217_vm4 = vcmp.gt.s32.totalorder %v6705_v7, 0  ;;  %vm216_vm5 = vcmp.gt.s32.totalorder %v6710_v8, 0  ;;  %vm219_vm6 = vcmp.gt.s32.totalorder %v6719_v11, 0  ;;  %v6733_v15 = vld [vmem:[%s9317_s2 + $0x48] sm:$0xff]  ;;  %v6738_v16 = vld [vmem:[%s9317_s2 + $0x40] sm:$0xff] }
  0x62   :  { %v268_v13 = vsel %vm217_vm4, 1, %v9278_v0  ;;  %v267_v14 = vsel %vm216_vm5, 1, %v9278_v0  ;;  %vm218_vm7 = vcmp.gt.s32.totalorder %v6724_v12, 0  ;;  %v270_v17 = vsel %vm219_vm6, 1, %v9278_v0  ;;  %v6747_v19 = vld [vmem:[%s9317_s2 + $0x58] sm:$0xff]  ;;  %v6752_v20 = vld [vmem:[%s9317_s2 + $0x50] sm:$0xff] }
  0x63   :  { %v269_v18 = vsel %vm218_vm7, 1, %v9278_v0  ;;  %vm221_vm8 = vcmp.gt.s32.totalorder %v6733_v15, 0  ;;  %vm220_vm9 = vcmp.gt.s32.totalorder %v6738_v16, 0  ;;  %vm223_vm10 = vcmp.gt.s32.totalorder %v6747_v19, 0  ;;  %v6761_v23 = vld [vmem:[%s9317_s2 + $0x68] sm:$0xff]  ;;  %v6766_v24 = vld [vmem:[%s9317_s2 + $0x60] sm:$0xff] }
  0x64   :  { %v272_v21 = vsel %vm221_vm8, 1, %v9278_v0  ;;  %v271_v22 = vsel %vm220_vm9, 1, %v9278_v0  ;;  %vm222_vm11 = vcmp.gt.s32.totalorder %v6752_v20, 0  ;;  %v274_v25 = vsel %vm223_vm10, 1, %v9278_v0  ;;  %v6775_v27 = vld [vmem:[%s9317_s2 + $0x78] sm:$0xff]  ;;  %v6780_v28 = vld [vmem:[%s9317_s2 + $0x70] sm:$0xff] }
  0x65   :  { %289 = vperm.xlu1 %6011, %v266_v9   ;;  %283 = vperm.xlu0 %6010, %v264_v10   ;;  %v273_v26 = vsel %vm222_vm11, 1, %v9278_v0  ;;  %vm225_vm12 = vcmp.gt.s32.totalorder %v6761_v23, 0  ;;  %vm224_vm13 = vcmp.gt.s32.totalorder %v6766_v24, 0  ;;  %vm227_vm14 = vcmp.gt.s32.totalorder %v6775_v27, 0  ;;  %v6805_v40 = vld [vmem:[%s9318_s4 + $0x8] sm:$0xff]  ;;  %v6814_v44 = vld [vmem:[%s9318_s4 + $0x10] sm:$0xff] }
  0x66   :  { %v276_v29 = vsel %vm225_vm12, 1, %v9278_v0  ;;  %v275_v30 = vsel %vm224_vm13, 1, %v9278_v0  ;;  %vm226_vm15 = vcmp.gt.s32.totalorder %v6780_v28, 0  ;;  %v278_v31 = vsel %vm227_vm14, 1, %v9278_v0  ;;  %v6819_v45 = vld [vmem:[%s9318_s4 + $0x18] sm:$0xff]  ;;  %v6845_v54 = vld [vmem:[%s9318_s4 + $0x20] sm:$0xff] }
  0x67   :  { %v277_v32 = vsel %vm226_vm15, 1, %v9278_v0  ;;  %vm368_vm0 = vcmp.lt.s32.totalorder %v6697_v4, 15  ;;  %vm367_vm1 = vcmp.lt.s32.totalorder %v6684_v2, 15  ;;  %vm370_vm2 = vcmp.lt.s32.totalorder %v6689_v3, 15  ;;  %v530_v48 = vld [vmem:[%s9319_s0] sm:$0x3] }
  0x68   :  { %v417_v33 = vsel %vm368_vm0, 1, %v9278_v0  ;;  %v416_v34 = vsel %vm367_vm1, 1, %v9278_v0  ;;  %vm369_vm3 = vcmp.lt.s32.totalorder %v6679_v1, 15  ;;  %v419_v35 = vsel %vm370_vm2, 1, %v9278_v0  ;;  %v5159_v49 = vld [vmem:[%s9319_s0 + $0x2] sm:$0x3] }
  0x69   :  { %295 = vperm.xlu1 %6011, %v268_v13   ;;  %292 = vperm.xlu0 %6010, %v267_v14   ;;  %v418_v36 = vsel %vm369_vm3, 1, %v9278_v0  ;;  %vm372_vm4 = vcmp.lt.s32.totalorder %v6705_v7, 15  ;;  %vm371_vm5 = vcmp.lt.s32.totalorder %v6710_v8, 15  ;;  %vm374_vm6 = vcmp.lt.s32.totalorder %v6719_v11, 15  ;;  %v6850_v55 = vld [vmem:[%s9318_s4 + $0x28] sm:$0xff]  ;;  %v6866_v60 = vld [vmem:[%s9318_s4] sm:$0xff] }
  0x6a   :  { %v421_v38 = vsel %vm372_vm4, 1, %v9278_v0  ;;  %v420_v39 = vsel %vm371_vm5, 1, %v9278_v0  ;;  %vm373_vm7 = vcmp.lt.s32.totalorder %v6724_v12, 15  ;;  %v423_v42 = vsel %vm374_vm6, 1, %v9278_v0  ;;  %v6953_v37 = vld [vmem:[%s9318_s4 + $0x50] sm:$0xff]  ;;  %s9544_s23 = sld [smem:[#allocation30_spill]] }
  0x6b   :  { %v422_v43 = vsel %vm373_vm7, 1, %v9278_v0  ;;  %vm376_vm8 = vcmp.lt.s32.totalorder %v6733_v15, 15  ;;  %vm375_vm9 = vcmp.lt.s32.totalorder %v6738_v16, 15  ;;  %vm378_vm10 = vcmp.lt.s32.totalorder %v6747_v19, 15 }
  0x6c   :  { %v229_v46 = vrot.slane %v6805_v40, 7  ;;  %vm377_vm11 = vcmp.lt.s32.totalorder %v6752_v20, 15  ;;  %vm380_vm12 = vcmp.lt.s32.totalorder %v6761_v23, 15  ;;  %vm9275_vm13 = vcmp.lt.s32.totalorder %v6807_v41, 1 }
  0x6d   :  { %301 = vperm.xlu1 %6011, %v270_v17   ;;  %298 = vperm.xlu0 %6010, %v269_v18   ;;  %vm379_vm14 = vcmp.lt.s32.totalorder %v6766_v24, 15  ;;  %vm382_vm15 = vcmp.lt.s32.totalorder %v6775_v27, 15  ;;  %vm381_vm0 = vcmp.lt.s32.totalorder %v6780_v28, 15  ;;  %v230_v47 = vrot.slane %v6814_v44, 7  ;;  %v6897_v17 = vld [vmem:[%s9318_s4 + $0x30] sm:$0xff]  ;;  %v6902_v18 = vld [vmem:[%s9318_s4 + $0x38] sm:$0xff] }
  0x6e   :  { %v425_v50 = vsel %vm376_vm8, 1, %v9278_v0  ;;  %v424_v51 = vsel %vm375_vm9, 1, %v9278_v0  ;;  %v427_v52 = vsel %vm378_vm10, 1, %v9278_v0  ;;  %v231_v53 = vrot.slane %v6819_v45, 7 }
  0x6f   :  { %v426_v56 = vsel %vm377_vm11, 1, %v9278_v0  ;;  %v429_v57 = vsel %vm380_vm12, 1, %v9278_v0  ;;  %v968_v58 = vadd.s32 4294967295, %v6780_v28  ;;  %v6861_v59 = vsel %vm9275_vm13, %v229_v46, %v230_v47 }
  0x70   :  { %v428_v61 = vsel %vm379_vm14, 1, %v9278_v0  ;;  %v6874_v62 = vsel %vm382_vm15, 1, %v9278_v0  ;;  %v6879_v63 = vsel %vm381_vm0, 1, %v9278_v0  ;;  %v6883_v5 = vsel %vm9275_vm13, %v230_v47, %v231_v53 }
  0x71   :  { %307 = vperm.xlu1 %6011, %v272_v21   ;;  %304 = vperm.xlu0 %6010, %v271_v22   ;;  %v969_v6 = vadd.s32 4294967295, %v6775_v27  ;;  %v6887_v9 = vadd.s32 4294967295, %v6761_v23  ;;  %v6890_v10 = vadd.s32 1, %v6775_v27  ;;  %vm556_vm1 = vcmask 1041408   ;;  %v5176_v21 = vld [vmem:[%s9319_s0 + $0x4] sm:$0x3] }
  0x72   :  { %v558_v13 = vsel %vm556_vm1, %v530_v48, 0  ;;  %v682_v14 = vsel %vm556_vm1, %v5159_v49, 0  ;;  %vm984_vm2 = vcmp.ge.s32.totalorder %v968_v58, 0  ;;  %v6908_v22 = vadd.s32 4294967295, %v6766_v24  ;;  %5994 = vmatprep.subr.msk.bf16.mxu0 %vm556_vm1, %v530_v48  ;;  %5995 = vmatprep.subr.msk.bf16.mxu1 %vm556_vm1, %v5159_v49  ;;  %v6917_v27 = vld [vmem:[%s9318_s4 + $0x40] sm:$0xff]  ;;  %s9416_s0 = sld [smem:[#allocation29_spill]] }
  0x73   :  { %vm1000_vm3 = vcmp.lt.s32.totalorder %v968_v58, 16  ;;  %5736 = vmatpush3.bf16.msra.mxu0 %v558_v13  ;;  %5754 = vmatpush3.bf16.msra.mxu1 %v682_v14  ;;  %vm9274_vm4 = vcmask 31744   ;;  %vm985_vm5 = vcmp.ge.s32.totalorder %v969_v6, 0  ;;  %vm1001_vm6 = vcmp.lt.s32.totalorder %v969_v6, 16  ;;  %v7007_v58 = vld [vmem:[%s9318_s4 + $0x68] sm:$0xff]  ;;  %v7027_v6 = vld [vmem:[%s9318_s4 + $0x70] sm:$0xff] }
  0x74   :  { %5996 = vmatprep.subr.msk.bf16.mxu0 %vm556_vm1, %v5176_v21  ;;  %vm6957_vm7 = vmand %vm984_vm2, %vm1000_vm3  ;;  %vm983_vm8 = vcmp.ge.s32.totalorder %v6887_v9, 0  ;;  %vm999_vm9 = vcmp.lt.s32.totalorder %v6887_v9, 16  ;;  %vm1193_vm10 = vcmp.ge.s32.totalorder %v6890_v10, 0  ;;  %vm1209_vm11 = vcmp.lt.s32.totalorder %v6890_v10, 16 }
  0x75   :  { %313 = vperm.xlu1 %6011, %v274_v25   ;;  %310 = vperm.xlu0 %6010, %v273_v26   ;;  %v232_v25 = vrot.slane %v6845_v54, 7  ;;  %v233_v26 = vrot.slane %v6850_v55, 7  ;;  %vm1017_vm12 = vmand %vm985_vm5, %vm1001_vm6  ;;  %vm982_vm14 = vcmp.ge.s32.totalorder %v6908_v22, 0  ;;  %v7016_v14 = vsel %vm556_vm1, %v5176_v21, 0 }
  0x76   :  { %vm998_vm15 = vcmp.lt.s32.totalorder %v6908_v22, 16  ;;  %vm7044_vm1 = vmand %vm983_vm8, %vm999_vm9  ;;  %v1175_v10 = vadd.s32 1, %v6761_v23  ;;  %vm9273_vm8 = vcmp.lt.s32.totalorder %v6807_v41, 7 }
  0x77   :  { %vm7057_vm2 = vmand %vm1193_vm10, %vm1209_vm11 }
  0x78   :  { %vm1191_vm10 = vcmp.ge.s32.totalorder %v1175_v10, 0  ;;  %vm1207_vm11 = vcmp.lt.s32.totalorder %v1175_v10, 16  ;;  %v390_v10 = vrot.slane %v6902_v18, 1 }
  0x79   :  { %319 = vperm.xlu1 %6011, %v276_v29   ;;  %316 = vperm.xlu0 %6010, %v275_v30   ;;  %v228_v29 = vrot.slane %v6866_v60, 7  ;;  %v520_v30 = vpack.c.bf16 %v6805_v40, %v6866_v60 }
  0x7b   :  { %5755 = vmatprep.mubr.msk.bf16.mxu1 %vm9274_vm4, %v520_v30  ;;  %v241_v30 = vrot.slane %v7007_v58, 7 }
  0x7d   :  { %325 = vperm.xlu1 %6011, %v278_v31   ;;  %322 = vperm.xlu0 %6010, %v277_v32   ;;  %v6925_v31 = vld [vmem:[%s9318_s4 + $0x48] sm:$0xff]  ;;  %v6928_v32 = vadd.s32 1, %v6780_v28  ;;  %v6946_v28 = vsel %vm9275_vm13, %v228_v29, %v229_v46  ;;  %v6972_v46 = vld [vmem:[%s9318_s4 + $0x58] sm:$0xff] }
  0x7e   :  { %v237_v49 = vrot.slane %v6925_v31, 7  ;;  %v239_v13 = vrot.slane %v6972_v46, 7 }
  0x7f   :  { %vm1192_vm0 = vcmp.ge.s32.totalorder %v6928_v32, 0  ;;  %vm1208_vm3 = vcmp.lt.s32.totalorder %v6928_v32, 16  ;;  %v387_v32 = vrot.slane %v6845_v54, 1 }
  0x80   :  { %vm7109_vm9 = vmand %vm1192_vm0, %vm1208_vm3 }
  0x81   :  { %436 = vperm.xlu1 %6011, %v417_v33   ;;  %433 = vperm.xlu0 %6010, %v416_v34   ;;  %v6931_v33 = vadd.s32 4294967295, %v6747_v19  ;;  %v6935_v34 = vsel %vm9275_vm13, %v232_v25, %v233_v26 }
  0x83   :  { %vm981_vm5 = vcmp.ge.s32.totalorder %v6931_v33, 0  ;;  %vm997_vm6 = vcmp.lt.s32.totalorder %v6931_v33, 16 }
  0x85   :  { %442 = vperm.xlu1 %6011, %v419_v35   ;;  %439 = vperm.xlu0 %6010, %v418_v36   ;;  %v6939_v35 = vsel %vm9275_vm13, %v231_v53, %v232_v25  ;;  %v521_v36 = vpack.c.bf16 %v6819_v45, %v6814_v44  ;;  %v1064_v53 = vsel %vm6957_vm7, 1, %v9278_v0  ;;  %vm7081_vm7 = vmand %vm982_vm14, %vm998_vm15 }
  0x86   :  { %vm7148_vm14 = vmand %vm1191_vm10, %vm1207_vm11 }
  0x87   :  { %5756 = vmatmul.mubr.msk.bf16.vlgmr.msra.gmra.mxu1 %vm9274_vm4, %v521_v36  ;;  %v524_v36 = vpack.c.bf16 %v6925_v31, %v6917_v27 }
  0x89   :  { %448 = vperm.xlu1 %6011, %v421_v38   ;;  %445 = vperm.xlu0 %6010, %v420_v39   ;;  %v234_v39 = vrot.slane %v6897_v17, 7  ;;  %v1065_v38 = vsel %vm1017_vm12, 1, %v9278_v0  ;;  %vm7138_vm12 = vmand %vm981_vm5, %vm997_vm6 }
  0x8b   :  { %v6980_v48 = vsel %vm9275_vm13, %v233_v26, %v234_v39 }
  0x8d   :  { %454 = vperm.xlu1 %6011, %v423_v42   ;;  %451 = vperm.xlu0 %6010, %v422_v43   ;;  %v235_v42 = vrot.slane %v6902_v18, 7  ;;  %v236_v43 = vrot.slane %v6917_v27, 7 }
  0x8f   :  { %v6976_v47 = vsel %vm9275_vm13, %v234_v39, %v235_v42 }
  0x91   :  { %460 = vperm.xlu1 %6011, %v425_v50   ;;  %457 = vperm.xlu0 %6010, %v424_v51   ;;  %v522_v50 = vpack.c.bf16 %v6850_v55, %v6845_v54  ;;  %v6988_v51 = vsel %vm9275_vm13, %v235_v42, %v236_v43  ;;  %v1272_v54 = vsel %vm7109_vm9, 1, %v9278_v0 }
  0x93   :  { %5759 = vmatprep.mubr.msk.bf16.mxu1 %vm9274_vm4, %v522_v50  ;;  %v385_v50 = vrot.slane %v6814_v44, 1 }
  0x95   :  { %466 = vperm.xlu1 %6011, %v427_v52   ;;  %463 = vperm.xlu0 %6010, %v426_v56   ;;  %v6993_v52 = vld [vmem:[%s9318_s4 + $0x60] sm:$0xff]  ;;  %v7000_v56 = vsel %vm9275_vm13, %v236_v43, %v237_v49  ;;  %v9276_v43 = vrot.slane %v7027_v6, 7 }
  0x96   :  { %v240_v26 = vrot.slane %v6993_v52, 7 }
  0x97   :  { %v7089_v23 = vsel %vm9275_vm13, %v241_v30, %v9276_v43 }
  0x98   :  { %v7051_v39 = vsel %vm9275_vm13, %v239_v13, %v240_v26  ;;  %v7066_v9 = vsel %vm9275_vm13, %v240_v26, %v241_v30  ;;  %v1174_v26 = vadd.s32 1, %v6766_v24  ;;  %v525_v30 = vpack.c.bf16 %v6972_v46, %v6953_v37 }
  0x99   :  { %472 = vperm.xlu1 %6011, %v429_v57   ;;  %469 = vperm.xlu0 %6010, %v428_v61   ;;  %v238_v57 = vrot.slane %v6953_v37, 7  ;;  %v523_v61 = vpack.c.bf16 %v6902_v18, %v6897_v17  ;;  %v388_v24 = vrot.slane %v6850_v55, 1  ;;  %v1173_v55 = vadd.s32 1, %v6747_v19 }
  0x9b   :  { %v7021_v25 = vsel %vm9275_vm13, %v237_v49, %v238_v57  ;;  %v7034_v21 = vsel %vm9275_vm13, %v238_v57, %v239_v13  ;;  %5760 = vmatmul.mubr.msk.bf16.gmra.mxu1 %vm9274_vm4, %v523_v61  ;;  %v384_v49 = vrot.slane %v6805_v40, 1  ;;  %v1063_v57 = vsel %vm7044_vm1, 1, %v9278_v0 }
  0x9c   :  { %5763 = vmatprep.mubr.msk.bf16.mxu1 %vm9274_vm4, %v524_v36  ;;  %v1273_v40 = vsel %vm7057_vm2, 1, %v9278_v0  ;;  %v964_v13 = vadd.s32 4294967295, %v6752_v20  ;;  %v386_v36 = vrot.slane %v6819_v45, 1  ;;  %v1062_v45 = vsel %vm7081_vm7, 1, %v9278_v0 }
  0x9d   :  { %478 = vperm.xlu1 %6011, %v6874_v62   ;;  %475 = vperm.xlu0 %6010, %v6879_v63   ;;  %v383_v63 = vrot.slane %v6866_v60, 1  ;;  %v7097_v44 = vsel %vm9273_vm8, %v384_v49, %v385_v50  ;;  %v963_v62 = vadd.s32 4294967295, %v6733_v15  ;;  %v7159_v19 = vsel %vm9273_vm8, %v387_v32, %v388_v24 }
  0x9e   :  { %v7124_v42 = vsel %vm9273_vm8, %v385_v50, %v386_v36  ;;  %vm980_vm15 = vcmp.ge.s32.totalorder %v964_v13, 0  ;;  %vm996_vm0 = vcmp.lt.s32.totalorder %v964_v13, 16  ;;  %vm1190_vm1 = vcmp.ge.s32.totalorder %v1174_v26, 0 }
  0x9f   :  { %v7103_v22 = vsel %vm9273_vm8, %v383_v63, %v384_v49  ;;  %v389_v49 = vrot.slane %v6897_v17, 1  ;;  %v7145_v17 = vsel %vm9273_vm8, %v386_v36, %v387_v32  ;;  %vm1206_vm2 = vcmp.lt.s32.totalorder %v1174_v26, 16  ;;  %vm1012_vm3 = vmand %vm980_vm15, %vm996_vm0 }
  0xa0   :  { %v962_v61 = vadd.s32 4294967295, %v6738_v16  ;;  %v1271_v26 = vsel %vm7148_vm14, 1, %v9278_v0  ;;  %vm979_vm5 = vcmp.ge.s32.totalorder %v963_v62, 0  ;;  %vm1222_vm6 = vmand %vm1190_vm1, %vm1206_vm2  ;;  %vm995_vm7 = vcmp.lt.s32.totalorder %v963_v62, 16 }
  0xa1   :  { %1109 = vperm.xlu1 %6011, %v1064_v53   ;;  %1112 = vperm.xlu0 %6010, %v1065_v38   ;;  %v526_v38 = vpack.c.bf16 %v7007_v58, %v6993_v52  ;;  %v7155_v33 = vsel %vm9273_vm8, %v388_v24, %v389_v49  ;;  %v391_v53 = vrot.slane %v6917_v27, 1  ;;  %v7180_v18 = vsel %vm9273_vm8, %v389_v49, %v390_v10  ;;  %vm7195_vm11 = vmand %vm979_vm5, %vm995_vm7 }
  0xa2   :  { %vm1189_vm9 = vcmp.ge.s32.totalorder %v1173_v55, 0  ;;  %vm1205_vm10 = vcmp.lt.s32.totalorder %v1173_v55, 16  ;;  %v392_v13 = vrot.slane %v6925_v31, 1  ;;  %v393_v32 = vrot.slane %v6953_v37, 1 }
  0xa3   :  { %5764 = vmatmul.mubr.msk.bf16.gmra.mxu1 %vm9274_vm4, %v525_v30  ;;  %v1061_v30 = vsel %vm7138_vm12, 1, %v9278_v0  ;;  %v7186_v36 = vsel %vm9273_vm8, %v390_v10, %v391_v53  ;;  %v1060_v24 = vsel %vm1012_vm3, 1, %v9278_v0  ;;  %v394_v49 = vrot.slane %v6972_v46, 1  ;;  %vm1221_vm12 = vmand %vm1189_vm9, %vm1205_vm10 }
  0xa4   :  { %5767 = vmatprep.mubr.msk.bf16.mxu1 %vm9274_vm4, %v526_v38  ;;  %v1172_v38 = vadd.s32 1, %v6752_v20  ;;  %v7201_v20 = vsel %vm9273_vm8, %v392_v13, %v393_v32  ;;  %v7205_v31 = vsel %vm9273_vm8, %v391_v53, %v392_v13  ;;  %v395_v37 = vrot.slane %v6993_v52, 1 }
  0xa5   :  { %1106 = vperm.xlu1 %6011, %v1063_v57   ;;  %1320 = vperm.xlu0 %6010, %v1273_v40   ;;  %v7167_v40 = vld [vmem:[%s9318_s4 + $0x78] sm:$0xff]  ;;  %vm978_vm14 = vcmp.ge.s32.totalorder %v962_v61, 0  ;;  %vm994_vm15 = vcmp.lt.s32.totalorder %v962_v61, 16  ;;  %v961_v46 = vadd.s32 4294967295, %v6719_v11  ;;  %v1171_v62 = vadd.s32 1, %v6733_v15 }
  0xa6   :  { %v527_v27 = vpack.c.bf16 %v7167_v40, %v7027_v6  ;;  %vm1188_vm0 = vcmp.ge.s32.totalorder %v1172_v38, 0  ;;  %vm1204_vm1 = vcmp.lt.s32.totalorder %v1172_v38, 16  ;;  %v7214_v57 = vsel %vm9273_vm8, %v394_v49, %v395_v37  ;;  %vm1010_vm2 = vmand %vm978_vm14, %vm994_vm15 }
  0xa7   :  { %v7218_v50 = vsel %vm9273_vm8, %v393_v32, %v394_v49  ;;  %v396_v52 = vrot.slane %v7007_v58, 1  ;;  %v397_v55 = vrot.slane %v7027_v6, 1  ;;  %v1059_v15 = vsel %vm7195_vm11, 1, %v9278_v0  ;;  %vm1220_vm3 = vmand %vm1188_vm0, %vm1204_vm1 }
  0xa8   :  { %v1269_v10 = vsel %vm1221_vm12, 1, %v9278_v0  ;;  %v960_v53 = vadd.s32 4294967295, %v6724_v12  ;;  %vm977_vm5 = vcmp.ge.s32.totalorder %v961_v46, 0  ;;  %vm1187_vm7 = vcmp.ge.s32.totalorder %v1171_v62, 0 }
  0xa9   :  { %1103 = vperm.xlu1 %6011, %v1062_v45   ;;  %1317 = vperm.xlu0 %6010, %v1272_v54   ;;  %v1270_v45 = vsel %vm1222_vm6, 1, %v9278_v0  ;;  %vm993_vm6 = vcmp.lt.s32.totalorder %v961_v46, 16  ;;  %v7234_v58 = vsel %vm9273_vm8, %v395_v37, %v396_v52  ;;  %vm1203_vm9 = vcmp.lt.s32.totalorder %v1171_v62, 16 }
  0xaa   :  { %v398_v61 = vrot.slane %v7167_v40, 1  ;;  %v1268_v38 = vsel %vm1220_vm3, 1, %v9278_v0  ;;  %vm1009_vm10 = vmand %vm977_vm5, %vm993_vm6  ;;  %vm976_vm12 = vcmp.ge.s32.totalorder %v960_v53, 0  ;;  %vm992_vm14 = vcmp.lt.s32.totalorder %v960_v53, 16 }
  0xab   :  { %5768 = vmatmul.mubr.msk.bf16.gmra.mxu1 %vm9274_vm4, %v527_v27  ;;  %v1058_v27 = vsel %vm1010_vm2, 1, %v9278_v0  ;;  %vm1219_vm11 = vmand %vm1187_vm7, %vm1203_vm9  ;;  %v1057_v49 = vsel %vm1009_vm10, 1, %v9278_v0  ;;  %v1168_v54 = vadd.s32 1, %v6724_v12  ;;  %v957_v46 = vadd.s32 4294967295, %v6689_v3 }
  0xac   :  { %v7244_v13 = vsel %vm9273_vm8, %v398_v61, %v383_v63  ;;  %v7249_v32 = vsel %vm9273_vm8, %v397_v55, %v398_v61  ;;  %v1267_v63 = vsel %vm1219_vm11, 1, %v9278_v0  ;;  %vm1008_vm1 = vmand %vm976_vm12, %vm992_vm14  ;;  %v1167_v62 = vadd.s32 1, %v6705_v7 }
  0xad   :  { %1100 = vperm.xlu1 %6011, %v1061_v30   ;;  %1314 = vperm.xlu0 %6010, %v1271_v26   ;;  %v7230_v30 = vsel %vm9273_vm8, %v396_v52, %v397_v55  ;;  %v1170_v26 = vadd.s32 1, %v6738_v16  ;;  %v959_v16 = vadd.s32 4294967295, %v6705_v7  ;;  %9336 = vst [vmem:[#allocation16_spill] sm:$0xff] %v7249_v32  ;;  %vm1184_vm14 = vcmp.ge.s32.totalorder %v1168_v54, 0 }
  0xae   :  { %v956_v52 = vadd.s32 4294967295, %v6679_v1  ;;  %v1166_v55 = vadd.s32 1, %v6710_v8  ;;  %v955_v7 = vadd.s32 4294967295, %v6697_v4  ;;  %v1165_v53 = vadd.s32 1, %v6689_v3 }
  0xaf   :  { %vm1186_vm15 = vcmp.ge.s32.totalorder %v1170_v26, 0  ;;  %vm1202_vm0 = vcmp.lt.s32.totalorder %v1170_v26, 16  ;;  %vm975_vm3 = vcmp.ge.s32.totalorder %v959_v16, 0  ;;  %vm991_vm5 = vcmp.lt.s32.totalorder %v959_v16, 16 }
  0xb0   :  { %vm1218_vm2 = vmand %vm1186_vm15, %vm1202_vm0  ;;  %vm1200_vm15 = vcmp.lt.s32.totalorder %v1168_v54, 16  ;;  %vm988_vm8 = vcmp.lt.s32.totalorder %v956_v52, 16  ;;  %v954_v26 = vadd.s32 4294967295, %v6684_v2  ;;  %v1164_v61 = vadd.s32 1, %v6679_v1 }
  0xb1   :  { %1097 = vperm.xlu1 %6011, %v1060_v24   ;;  %1311 = vperm.xlu0 %6010, %v1270_v45   ;;  %v1169_v24 = vadd.s32 1, %v6719_v11  ;;  %v958_v45 = vadd.s32 4294967295, %v6710_v8  ;;  %v1056_v11 = vsel %vm1008_vm1, 1, %v9278_v0  ;;  %v1266_v37 = vsel %vm1218_vm2, 1, %v9278_v0  ;;  %vm1007_vm9 = vmand %vm975_vm3, %vm991_vm5 }
  0xb2   :  { %v1055_v12 = vsel %vm1007_vm9, 1, %v9278_v0  ;;  %vm973_vm1 = vcmp.ge.s32.totalorder %v957_v46, 0  ;;  %vm989_vm2 = vcmp.lt.s32.totalorder %v957_v46, 16  ;;  %vm1216_vm3 = vmand %vm1184_vm14, %vm1200_vm15  ;;  %vm1183_vm5 = vcmp.ge.s32.totalorder %v1167_v62, 0 }
  0xb3   :  { %vm1185_vm6 = vcmp.ge.s32.totalorder %v1169_v24, 0  ;;  %vm1201_vm7 = vcmp.lt.s32.totalorder %v1169_v24, 16  ;;  %vm974_vm11 = vcmp.ge.s32.totalorder %v958_v45, 0  ;;  %vm990_vm12 = vcmp.lt.s32.totalorder %v958_v45, 16  ;;  %vm7271_vm9 = vmand %vm973_vm1, %vm989_vm2 }
  0xb4   :  { %vm1217_vm10 = vmand %vm1185_vm6, %vm1201_vm7  ;;  %vm1199_vm6 = vcmp.lt.s32.totalorder %v1167_v62, 16  ;;  %vm972_vm7 = vcmp.ge.s32.totalorder %v956_v52, 0  ;;  %v1264_v3 = vsel %vm1216_vm3, 1, %v9278_v0  ;;  %vm971_vm14 = vcmp.ge.s32.totalorder %v955_v7, 0 }
  0xb5   :  { %1094 = vperm.xlu1 %6011, %v1059_v15   ;;  %1308 = vperm.xlu0 %6010, %v1269_v10   ;;  %v1265_v15 = vsel %vm1217_vm10, 1, %v9278_v0  ;;  %vm7264_vm0 = vmand %vm974_vm11, %vm990_vm12  ;;  %vm1182_vm10 = vcmp.ge.s32.totalorder %v1166_v55, 0  ;;  %vm1198_vm11 = vcmp.lt.s32.totalorder %v1166_v55, 16  ;;  %vm987_vm15 = vcmp.lt.s32.totalorder %v955_v7, 16  ;;  %v7344_v10 = vld [vmem:[%s9360_s8] sm:$0xff]  ;;  %v7349_v7 = vld [vmem:[%s9360_s8 + $0x18] sm:$0xff] }
  0xb6   :  { %vm7280_vm12 = vmand %vm1183_vm5, %vm1199_vm6  ;;  %vm1181_vm2 = vcmp.ge.s32.totalorder %v1165_v53, 0  ;;  %vm1197_vm4 = vcmp.lt.s32.totalorder %v1165_v53, 16  ;;  %v1162_v1 = vadd.s32 1, %v6684_v2  ;;  %vm986_vm3 = vcmp.lt.s32.totalorder %v954_v26, 16  ;;  %v7354_v53 = vld [vmem:[%s9360_s8 + $0x10] sm:$0xff] }
  0xb7   :  { %vm7284_vm1 = vmand %vm972_vm7, %vm988_vm8  ;;  %vm1180_vm8 = vcmp.ge.s32.totalorder %v1164_v61, 0  ;;  %vm1196_vm6 = vcmp.lt.s32.totalorder %v1164_v61, 16  ;;  %v1053_v2 = vsel %vm7271_vm9, 1, %v9278_v0  ;;  %v1263_v45 = vsel %vm7280_vm12, 1, %v9278_v0  ;;  %v7365_v61 = vld [vmem:[%s9360_s8 + $0x28] sm:$0xff] }
  0xb8   :  { %vm7289_vm13 = vmand %vm1182_vm10, %vm1198_vm11  ;;  %vm1178_vm11 = vcmp.ge.s32.totalorder %v1162_v1, 0  ;;  %v9277_v24 = vrot.slane %v7167_v40, 7 }
  0xb9   :  { %1091 = vperm.xlu1 %6011, %v1058_v27   ;;  %1305 = vperm.xlu0 %6010, %v1268_v38   ;;  %v1054_v27 = vsel %vm7264_vm0, 1, %v9278_v0  ;;  %vm970_vm0 = vcmp.ge.s32.totalorder %v954_v26, 0  ;;  %vm7294_vm5 = vmand %vm971_vm14, %vm987_vm15  ;;  %vm1194_vm14 = vcmp.lt.s32.totalorder %v1162_v1, 16  ;;  %v1262_v46 = vsel %vm7289_vm13, 1, %v9278_v0  ;;  %v7380_v38 = vld [vmem:[%s9360_s8 + $0x30] sm:$0xff] }
  0xba   :  { %vm7304_vm7 = vmand %vm1181_vm2, %vm1197_vm4  ;;  %v2616_v52 = vadd.s32 4294967294, %v7380_v38 }
  0xbb   :  { %vm7308_vm10 = vmand %vm970_vm0, %vm986_vm3  ;;  %v1261_v55 = vsel %vm7304_vm7, 1, %v9278_v0  ;;  %vm1478_vm0 = vcmp.gt.s32.totalorder %v7349_v7, 0  ;;  %vm1477_vm3 = vcmp.gt.s32.totalorder %v7354_v53, 0  ;;  %vm1481_vm7 = vcmp.gt.s32.totalorder %v7380_v38, 0 }
  0xbc   :  { %vm7312_vm15 = vmand %vm1180_vm8, %vm1196_vm6  ;;  %v1050_v26 = vsel %vm7308_vm10, 1, %v9278_v0  ;;  %v1502_v54 = vsel %vm1478_vm0, 1, %v9278_v0 }
  0xbd   :  { %1088 = vperm.xlu1 %6011, %v1057_v49   ;;  %1302 = vperm.xlu0 %6010, %v1267_v63   ;;  %v1163_v49 = vadd.s32 1, %v6697_v4  ;;  %v9347_v63 = vmov 0  ;;  %vm7322_vm4 = vmand %vm1178_vm11, %vm1194_vm14  ;;  %v1260_v8 = vsel %vm7312_vm15, 1, %v9278_v0  ;;  %v1501_v4 = vsel %vm1477_vm3, 1, %v9278_v0 }
  0xbe   :  { %v9348_v63 = vsel %vm7294_vm5, 4294967295, %v9347_v63  ;;  %v1258_v16 = vsel %vm7322_vm4, 1, %v9278_v0  ;;  %vm9361_vm14 = vcmp.lt.s32.totalorder %v6807_v41, 1  ;;  %vm9362_vm3 = vcmask 31744  }
  0xbf   :  { %vm1179_vm5 = vcmp.ge.s32.totalorder %v1163_v49, 0  ;;  %vm1195_vm9 = vcmp.lt.s32.totalorder %v1163_v49, 16  ;;  %vm9359_vm2 = vnez %v9348_v63 }
  0xc0   :  { %vm7326_vm12 = vmand %vm1179_vm5, %vm1195_vm9  ;;  %vm1480_vm5 = vcmp.gt.s32.totalorder %v7365_v61, 0 }
  0xc1   :  { %1085 = vperm.xlu1 %6011, %v1056_v11   ;;  %1299 = vperm.xlu0 %6010, %v1266_v37   ;;  %v1052_v37 = vsel %vm7284_vm1, 1, %v9278_v0  ;;  %vm1475_vm1 = vcmp.gt.s32.totalorder %v7344_v10, 0  ;;  %v1259_v1 = vsel %vm7326_vm12, 1, %v9278_v0  ;;  %v1504_v11 = vsel %vm1480_vm5, 1, %v9278_v0 }
  0xc2   :  { %vm2624_vm12 = vcmp.ge.s32.totalorder %v2616_v52, 0 }
  0xc5   :  { %1082 = vperm.xlu1 %6011, %v1055_v12   ;;  %1296 = vperm.xlu0 %6010, %v1265_v15   ;;  %v1051_v12 = vsel %vm9359_vm2, 1, %v9278_v0  ;;  %v7339_v15 = vld [vmem:[%s9360_s8 + $0x8] sm:$0xff]  ;;  %vm2632_vm2 = vcmp.lt.s32.totalorder %v2616_v52, 8 }
  0xc6   :  { %vm1476_vm13 = vcmp.gt.s32.totalorder %v7339_v15, 0 }
  0xc9   :  { %1079 = vperm.xlu1 %6011, %v1054_v27   ;;  %1293 = vperm.xlu0 %6010, %v1264_v3   ;;  %v7370_v27 = vld [vmem:[%s9360_s8 + $0x20] sm:$0xff]  ;;  %v7375_v3 = vld [vmem:[%s9360_s8 + $0x38] sm:$0xff] }
  0xca   :  { %vm1479_vm8 = vcmp.gt.s32.totalorder %v7370_v27, 0  ;;  %vm1482_vm6 = vcmp.gt.s32.totalorder %v7375_v3, 0 }
  0xcb   :  { %v7410_v62 = vsel %vm1482_vm6, 1, %v9278_v0 }
  0xcd   :  { %1076 = vperm.xlu1 %6011, %v1053_v2   ;;  %1290 = vperm.xlu0 %6010, %v1263_v45   ;;  %v1500_v2 = vsel %vm1476_vm13, 1, %v9278_v0  ;;  %v1499_v45 = vsel %vm1475_vm1, 1, %v9278_v0 }
  0xd1   :  { %1073 = vperm.xlu1 %6011, %v1052_v37   ;;  %1287 = vperm.xlu0 %6010, %v1262_v46   ;;  %v1503_v37 = vsel %vm1479_vm8, 1, %v9278_v0  ;;  %v262_v46 = vsel %vm9361_vm14, %v9277_v24, %v228_v29  ;;  %v2722_v24 = vadd.s32 4294967295, %v7375_v3  ;;  %vm9363_vm8 = vmmov %vm9362_vm3 }
  0xd5   :  { %1070 = vperm.xlu1 %6011, %v1051_v12   ;;  %1284 = vperm.xlu0 %6010, %v1261_v55  }
  0xd9   :  { %1067 = vperm.xlu1 %6011, %v1050_v26   ;;  %1281 = vperm.xlu0 %6010, %v1260_v8   ;;  %v1505_v26 = vsel %vm1481_vm7, 1, %v9278_v0  ;;  %v2617_v8 = vadd.s32 4294967294, %v7375_v3 }
  0xdb   :  { %vm2625_vm13 = vcmp.ge.s32.totalorder %v2617_v8, 0  ;;  %vm2633_vm5 = vcmp.lt.s32.totalorder %v2617_v8, 8 }
  0xdc   :  { %v287_v49 = vpop.permute.xlu1 %286  ;;  %v281_v63 = vpop.permute.xlu0 %280  ;;  %vm7439_vm4 = vmand %vm2625_vm13, %vm2633_vm5 }
  0xdd   :  { %1275 = vperm.xlu1 %6011, %v1258_v16   ;;  %1278 = vperm.xlu0 %6010, %v1259_v1   ;;  %vm329_vm10 = vcmp.eq.s32.totalorder %v287_v49, 1  ;;  %vm327_vm11 = vcmp.eq.s32.totalorder %v281_v63, 1  ;;  %v2615_v16 = vadd.s32 4294967294, %v7365_v61 }
  0xde   :  { %v345_v60 = vsel %vm329_vm10, %v6861_v59, 0.0  ;;  %v343_v1 = vsel %vm327_vm11, %v262_v46, 0.0  ;;  %v2826_v59 = vadd.s32 1, %v7375_v3  ;;  %vm2730_vm10 = vcmp.ge.s32.totalorder %v2722_v24, 0 }
  0xdf   :  { %vm2623_vm6 = vcmp.ge.s32.totalorder %v2615_v16, 0  ;;  %vm2631_vm7 = vcmp.lt.s32.totalorder %v2615_v16, 8  ;;  %vm2738_vm11 = vcmp.lt.s32.totalorder %v2722_v24, 8 }
  0xe0   :  { %v290_v12 = vpop.permute.xlu1 %289  ;;  %v284_v55 = vpop.permute.xlu0 %283  ;;  %vm7453_vm13 = vmand %vm2730_vm10, %vm2738_vm11  ;;  %vm9372_vm5 = vcmp.ge.s32.totalorder %v2826_v59, 0  ;;  %vm9379_vm11 = vcmask 31744  }
  0xe1   :  { %vm330_vm15 = vcmp.eq.s32.totalorder %v290_v12, 1  ;;  %vm328_vm9 = vcmp.eq.s32.totalorder %v284_v55, 1  ;;  %1511 = vperm.xlu1 %6011, %v1500_v2   ;;  %1508 = vperm.xlu0 %6010, %v1499_v45  }
  0xe2   :  { %v346_v29 = vsel %vm330_vm15, %v6883_v5, 0.0  ;;  %v344_v49 = vsel %vm328_vm9, %v6946_v28, 0.0  ;;  %v2721_v5 = vadd.s32 4294967295, %v7380_v38  ;;  %vm2842_vm15 = vcmp.lt.s32.totalorder %v2826_v59, 8 }
  0xe3   :  { %v360_v63 = vpack.c.bf16 %v346_v29, %v345_v60  ;;  %v359_v43 = vpack.c.bf16 %v344_v49, %v343_v1 }
  0xe4   :  { %v296_v0 = vpop.permute.xlu1 %295  ;;  %v293_v32 = vpop.permute.xlu0 %292  ;;  %vm2737_vm14 = vcmp.lt.s32.totalorder %v2721_v5, 8 }
  0xe5   :  { %vm332_vm1 = vcmp.eq.s32.totalorder %v296_v0, 1  ;;  %vm331_vm0 = vcmp.eq.s32.totalorder %v293_v32, 1  ;;  %1517 = vperm.xlu1 %6011, %v1502_v54   ;;  %1514 = vperm.xlu0 %6010, %v1501_v4   ;;  %v2825_v4 = vadd.s32 1, %v7380_v38 }
  0xe6   :  { %v348_v28 = vsel %vm332_vm1, %v6935_v34, 0.0  ;;  %v347_v2 = vsel %vm331_vm0, %v6939_v35, 0.0  ;;  %5737 = vmatprep.mubr.msk.bf16.mxu0 %vm9362_vm3, %v359_v43  ;;  %vm7430_vm0 = vmand %vm2624_vm12, %vm2632_vm2  ;;  %vm2729_vm3 = vcmp.ge.s32.totalorder %v2721_v5, 0  ;;  %vm1551_vm12 = vcmp.lt.s32.totalorder %v7344_v10, 7 }
  0xe7   :  { %v361_v45 = vpack.c.bf16 %v348_v28, %v347_v2  ;;  %5738 = vmatmul.mubr.msk.bf16.vlgmr.msra.gmra.mxu0 %vm9363_vm8, %v360_v63  ;;  %vm7446_vm2 = vmand %vm2623_vm6, %vm2631_vm7 }
  0xe8   :  { %v302_v46 = vpop.permute.xlu1 %301  ;;  %v299_v0 = vpop.permute.xlu0 %298  ;;  %5772 = vmatpush3.bf16.msra.mxu0 %v7016_v14  ;;  %vm7468_vm10 = vmand %vm2729_vm3, %vm2737_vm14  ;;  %vm1556_vm14 = vcmp.lt.s32.totalorder %v7365_v61, 7  ;;  %vm1555_vm3 = vcmp.lt.s32.totalorder %v7370_v27, 7 }
  0xe9   :  { %vm334_vm9 = vcmp.eq.s32.totalorder %v302_v46, 1  ;;  %vm333_vm1 = vcmp.eq.s32.totalorder %v299_v0, 1  ;;  %1523 = vperm.xlu1 %6011, %v1504_v11   ;;  %1520 = vperm.xlu0 %6010, %v1503_v37   ;;  %v9375_v37 = vmov 0   ;;  %v9381_v0 = vrot.slane %v7167_v40, 7 }
  0xea   :  { %v350_v35 = vsel %vm334_vm9, %v6976_v47, 0.0  ;;  %v349_v43 = vsel %vm333_vm1, %v6980_v48, 0.0  ;;  %5741 = vmatprep.mubr.msk.bf16.mxu0 %vm9363_vm8, %v361_v45  ;;  %vm1554_vm9 = vcmp.lt.s32.totalorder %v7349_v7, 7  ;;  %vm7459_vm1 = vmand %vm9372_vm5, %vm2842_vm15  ;;  %vm9376_vm8 = vcmp.lt.s32.totalorder %v7339_v15, 7 }
  0xeb   :  { %v362_v32 = vpack.c.bf16 %v350_v35, %v349_v43  ;;  %v1576_v52 = vsel %vm9376_vm8, 1, %v9375_v37  ;;  %v1575_v8 = vsel %vm1551_vm12, 1, %v9375_v37  ;;  %vm1553_vm15 = vcmp.lt.s32.totalorder %v7354_v53, 7 }
  0xec   :  { %v308_v47 = vpop.permute.xlu1 %307  ;;  %v305_v48 = vpop.permute.xlu0 %304  ;;  %vm1558_vm5 = vcmp.lt.s32.totalorder %v7375_v3, 7  ;;  %vm1557_vm12 = vcmp.lt.s32.totalorder %v7380_v38, 7  ;;  %v1577_v29 = vsel %vm1553_vm15, 1, %v9375_v37  ;;  %v1580_v49 = vsel %vm1556_vm14, 1, %v9375_v37 }
  0xed   :  { %vm336_vm6 = vcmp.eq.s32.totalorder %v308_v47, 1  ;;  %vm335_vm7 = vcmp.eq.s32.totalorder %v305_v48, 1  ;;  %1529 = vperm.xlu1 %6011, %v7410_v62   ;;  %1526 = vperm.xlu0 %6010, %v1505_v26   ;;  %v1578_v62 = vsel %vm1554_vm9, 1, %v9375_v37  ;;  %vm9380_vm9 = vmmov %vm9379_vm11  ;;  %v1579_v63 = vsel %vm1555_vm3, 1, %v9375_v37 }
  0xee   :  { %v352_v12 = vsel %vm336_vm6, %v7000_v56, 0.0  ;;  %v351_v55 = vsel %vm335_vm7, %v6988_v51, 0.0  ;;  %v1582_v28 = vsel %vm1558_vm5, 1, %v9375_v37  ;;  %v1581_v2 = vsel %vm1557_vm12, 1, %v9375_v37 }
  0xef   :  { %v363_v16 = vpack.c.bf16 %v352_v12, %v351_v55  ;;  %5742 = vmatmul.mubr.msk.bf16.gmra.mxu0 %vm9379_vm11, %v362_v32  ;;  %v9382_v35 = vrot.slane %v7027_v6, 7  ;;  %vm9383_vm15 = vcmp.lt.s32.totalorder %v6807_v41, 1  ;;  %v2664_v43 = vsel %vm7446_vm2, 1, %v9375_v37 }
  0xf0   :  { %v314_v26 = vpop.permute.xlu1 %313  ;;  %v311_v60 = vpop.permute.xlu0 %310  ;;  %v2720_v6 = vadd.s32 4294967295, %v7365_v61  ;;  %v2769_v54 = vsel %vm7468_vm10, 1, %v9375_v37  ;;  %v2614_v47 = vadd.s32 4294967294, %v7370_v27  ;;  %v7520_v48 = vadd.s32 2, %v7375_v3 }
  0xf1   :  { %vm338_vm6 = vcmp.eq.s32.totalorder %v314_v26, 1  ;;  %vm337_vm8 = vcmp.eq.s32.totalorder %v311_v60, 1  ;;  %1587 = vperm.xlu1 %6011, %v1576_v52   ;;  %1584 = vperm.xlu0 %6010, %v1575_v8   ;;  %v247_v34 = vsel %vm9383_vm15, %v9382_v35, %v9381_v0  ;;  %v2824_v0 = vadd.s32 1, %v7365_v61 }
  0xf2   :  { %v354_v51 = vsel %vm338_vm6, %v7034_v21, 0.0  ;;  %v353_v56 = vsel %vm337_vm8, %v7021_v25, 0.0  ;;  %5745 = vmatprep.mubr.msk.bf16.mxu0 %vm9380_vm9, %v363_v16  ;;  %v2665_v21 = vsel %vm7430_vm0, 1, %v9375_v37  ;;  %v2666_v25 = vsel %vm7439_vm4, 1, %v9375_v37  ;;  %vm9384_vm0 = vmmov %vm9380_vm9 }
  0xf3   :  { %v364_v1 = vpack.c.bf16 %v354_v51, %v353_v56  ;;  %vm2736_vm14 = vcmp.lt.s32.totalorder %v2720_v6, 8  ;;  %vm2622_vm10 = vcmp.ge.s32.totalorder %v2614_v47, 0  ;;  %vm2630_vm3 = vcmp.lt.s32.totalorder %v2614_v47, 8  ;;  %vm9386_vm8 = vmmov %vm9384_vm0 }
  0xf4   :  { %v320_v59 = vpop.permute.xlu1 %319  ;;  %v317_v5 = vpop.permute.xlu0 %316 }
  0xf5   :  { %vm340_vm7 = vcmp.eq.s32.totalorder %v320_v59, 1  ;;  %vm339_vm11 = vcmp.eq.s32.totalorder %v317_v5, 1  ;;  %1593 = vperm.xlu1 %6011, %v1578_v62   ;;  %1590 = vperm.xlu0 %6010, %v1577_v29  }
  0xf6   :  { %v356_v45 = vsel %vm340_vm7, %v7066_v9, 0.0  ;;  %v355_v46 = vsel %vm339_vm11, %v7051_v39, 0.0  ;;  %v2770_v9 = vsel %vm7453_vm13, 1, %v9375_v37  ;;  %v2874_v39 = vsel %vm7459_vm1, 1, %v9375_v37  ;;  %vm9385_vm13 = vmmov %vm9384_vm0 }
  0xf7   :  { %v365_v32 = vpack.c.bf16 %v356_v45, %v355_v46  ;;  %5746 = vmatmul.mubr.msk.bf16.gmra.mxu0 %vm9384_vm0, %v364_v1  ;;  %vm2728_vm1 = vcmp.ge.s32.totalorder %v2720_v6, 0  ;;  %vm9387_vm7 = vmmov %vm9384_vm0 }
  0xf8   :  { %v326_v40 = vpop.permute.xlu1 %325  ;;  %v323_v14 = vpop.permute.xlu0 %322  ;;  %vm7535_vm0 = vmand %vm2728_vm1, %vm2736_vm14  ;;  %vm2833_vm1 = vcmp.ge.s32.totalorder %v2825_v4, 0  ;;  %vm2841_vm14 = vcmp.lt.s32.totalorder %v2825_v4, 8 }
  0xf9   :  { %vm342_vm4 = vcmp.eq.s32.totalorder %v326_v40, 1  ;;  %vm341_vm2 = vcmp.eq.s32.totalorder %v323_v14, 1  ;;  %1599 = vperm.xlu1 %6011, %v1580_v49   ;;  %1596 = vperm.xlu0 %6010, %v1579_v63   ;;  %v2613_v63 = vadd.s32 4294967294, %v7349_v7  ;;  %v2612_v40 = vadd.s32 4294967294, %v7354_v53 }
  0xfa   :  { %v358_v11 = vsel %vm342_vm4, %v247_v34, 0.0  ;;  %v357_v52 = vsel %vm341_vm2, %v7089_v23, 0.0  ;;  %5749 = vmatprep.mubr.msk.bf16.mxu0 %vm9385_vm13, %v365_v32  ;;  %vm9390_vm4 = vmmov %vm9387_vm7  ;;  %vm2938_vm13 = vcmp.ge.s32.totalorder %v7520_v48, 0  ;;  %v194_v32 = vld [vmem:[%s9415_s13 + $0x8] sm:$0xff] }
  0xfb   :  { %v366_v12 = vpack.c.bf16 %v358_v11, %v357_v52  ;;  %vm7542_vm2 = vmand %vm2622_vm10, %vm2630_vm3 }
  0xfc   :  { %v437_v24 = vpop.permute.xlu1 %436  ;;  %v434_v55 = vpop.permute.xlu0 %433  ;;  %vm9393_vm10 = vmmov %vm9390_vm4 }
  0xfd   :  { %vm481_vm5 = vcmp.eq.s32.totalorder %v437_v24, 1  ;;  %vm480_vm6 = vcmp.eq.s32.totalorder %v434_v55, 1  ;;  %1605 = vperm.xlu1 %6011, %v1582_v28   ;;  %1602 = vperm.xlu0 %6010, %v1581_v2   ;;  %v2768_v28 = vsel %vm7535_vm0, 1, %v9375_v37  ;;  %v2663_v2 = vsel %vm7542_vm2, 1, %v9375_v37 }
  0xfe   :  { %v497_v3 = vsel %vm481_vm5, %v7097_v44, 0.0  ;;  %v496_v8 = vsel %vm480_vm6, %v7103_v22, 0.0  ;;  %vm2946_vm5 = vcmp.lt.s32.totalorder %v7520_v48, 8  ;;  %v2823_v24 = vadd.s32 1, %v7370_v27 }
  0xff   :  { %v512_v16 = vpack.c.bf16 %v497_v3, %v496_v8  ;;  %5750 = vmatmul.mubr.msk.bf16.gmra.mxu0 %vm9386_vm8, %v366_v12  ;;  %vm7563_vm3 = vmand %vm2938_vm13, %vm2946_vm5 }
 0x100   :  { %v443_v23 = vpop.permute.xlu1 %442  ;;  %v440_v62 = vpop.permute.xlu0 %439  ;;  %vm9400_vm13 = vmmov %vm9393_vm10 }
 0x101   :  { %vm483_vm12 = vcmp.eq.s32.totalorder %v443_v23, 1  ;;  %vm482_vm9 = vcmp.eq.s32.totalorder %v440_v62, 1  ;;  %2686 = vperm.xlu1 %6011, %v2665_v21   ;;  %2689 = vperm.xlu0 %6010, %v2666_v25   ;;  %v2929_v25 = vadd.s32 2, %v7380_v38  ;;  %v2820_v21 = vadd.s32 1, %v7339_v15 }
 0x102   :  { %v499_v26 = vsel %vm483_vm12, %v7145_v17, 0.0  ;;  %v498_v60 = vsel %vm482_vm9, %v7124_v42, 0.0  ;;  %5773 = vmatprep.mubr.msk.bf16.mxu0 %vm9387_vm7, %v512_v16  ;;  %vm7567_vm12 = vmand %vm2833_vm1, %vm2841_vm14 }
 0x103   :  { %v513_v51 = vpack.c.bf16 %v499_v26, %v498_v60  ;;  %v2873_v38 = vsel %vm7567_vm12, 1, %v9375_v37  ;;  %vm2937_vm1 = vcmp.ge.s32.totalorder %v2929_v25, 0  ;;  %vm2945_vm14 = vcmp.lt.s32.totalorder %v2929_v25, 8  ;;  %vm9403_vm12 = vmmov %vm9400_vm13 }
 0x104   :  { %v449_v56 = vpop.permute.xlu1 %448  ;;  %v446_v44 = vpop.permute.xlu0 %445  ;;  %v2611_v60 = vadd.s32 4294967294, %v7339_v15  ;;  %v2819_v25 = vadd.s32 1, %v7344_v10 }
 0x105   :  { %vm485_vm11 = vcmp.eq.s32.totalorder %v449_v56, 1  ;;  %vm484_vm15 = vcmp.eq.s32.totalorder %v446_v44, 1  ;;  %2683 = vperm.xlu1 %6011, %v2664_v43   ;;  %2793 = vperm.xlu0 %6010, %v2770_v9   ;;  %v2979_v43 = vsel %vm7563_vm3, 1, %v9375_v37  ;;  %v9413_v56 = vld [vmem:[#allocation16_spill] sm:$0xff] }
 0x106   :  { %v501_v22 = vsel %vm485_vm11, %v7155_v33, 0.0  ;;  %v500_v29 = vsel %vm484_vm15, %v7159_v19, 0.0  ;;  %v2719_v33 = vadd.s32 4294967295, %v7370_v27  ;;  %vm2621_vm11 = vcmp.ge.s32.totalorder %v2613_v63, 0 }
 0x107   :  { %v514_v42 = vpack.c.bf16 %v501_v22, %v500_v29  ;;  %5774 = vmatmul.mubr.msk.bf16.vlgmr.msra.gmra.mxu0 %vm9390_vm4, %v513_v51  ;;  %vm2629_vm15 = vcmp.lt.s32.totalorder %v2613_v63, 8 }
 0x108   :  { %v455_v19 = vpop.permute.xlu1 %454  ;;  %v452_v49 = vpop.permute.xlu0 %451  ;;  %vm2727_vm9 = vcmp.ge.s32.totalorder %v2719_v33, 0  ;;  %vm2735_vm7 = vcmp.lt.s32.totalorder %v2719_v33, 8  ;;  %vm7588_vm5 = vmand %vm2621_vm11, %vm2629_vm15 }
 0x109   :  { %vm487_vm6 = vcmp.eq.s32.totalorder %v455_v19, 1  ;;  %vm486_vm8 = vcmp.eq.s32.totalorder %v452_v49, 1  ;;  %2897 = vperm.xlu1 %6011, %v2874_v39   ;;  %2790 = vperm.xlu0 %6010, %v2769_v54   ;;  %vm7583_vm2 = vmand %vm2727_vm9, %vm2735_vm7  ;;  %v2662_v48 = vsel %vm7588_vm5, 1, %v9375_v37  ;;  %v2716_v19 = vadd.s32 4294967295, %v7339_v15 }
 0x10a   :  { %v503_v59 = vsel %vm487_vm6, %v7186_v36, 0.0  ;;  %v502_v5 = vsel %vm486_vm8, %v7180_v18, 0.0  ;;  %5777 = vmatprep.mubr.msk.bf16.mxu0 %vm9393_vm10, %v514_v42  ;;  %vm2832_vm6 = vcmp.ge.s32.totalorder %v2824_v0, 0  ;;  %vm2840_vm8 = vcmp.lt.s32.totalorder %v2824_v0, 8  ;;  %vm7605_vm9 = vmand %vm2937_vm1, %vm2945_vm14 }
 0x10b   :  { %v515_v36 = vpack.c.bf16 %v503_v59, %v502_v5  ;;  %v2767_v47 = vsel %vm7583_vm2, 1, %v9375_v37  ;;  %vm7609_vm7 = vmand %vm2832_vm6, %vm2840_vm8  ;;  %v2978_v8 = vsel %vm7605_vm9, 1, %v9375_v37  ;;  %v2822_v42 = vadd.s32 1, %v7349_v7 }
 0x10c   :  { %v461_v45 = vpop.permute.xlu1 %460  ;;  %v458_v46 = vpop.permute.xlu0 %457  ;;  %vm9410_vm1 = vmmov %vm9403_vm12  ;;  %v2926_v59 = vadd.s32 2, %v7349_v7  ;;  %v2821_v5 = vadd.s32 1, %v7354_v53  ;;  %v2925_v15 = vadd.s32 2, %v7354_v53  ;;  %v2923_v0 = vadd.s32 2, %v7344_v10 }
 0x10d   :  { %vm489_vm0 = vcmp.eq.s32.totalorder %v461_v45, 1  ;;  %vm488_vm4 = vcmp.eq.s32.totalorder %v458_v46, 1  ;;  %2787 = vperm.xlu1 %6011, %v2768_v28   ;;  %2680 = vperm.xlu0 %6010, %v2663_v2  }
 0x10e   :  { %v505_v35 = vsel %vm489_vm0, %v7201_v20, 0.0  ;;  %v504_v34 = vsel %vm488_vm4, %v7205_v31, 0.0  ;;  %v2718_v31 = vadd.s32 4294967295, %v7349_v7  ;;  %vm2620_vm0 = vcmp.ge.s32.totalorder %v2612_v40, 0 }
 0x10f   :  { %v516_v9 = vpack.c.bf16 %v505_v35, %v504_v34  ;;  %5778 = vmatmul.mubr.msk.bf16.gmra.mxu0 %vm9400_vm13, %v515_v36  ;;  %vm2628_vm4 = vcmp.lt.s32.totalorder %v2612_v40, 8  ;;  %v2715_v7 = vadd.s32 4294967295, %v7344_v10  ;;  %v6356_v35 = vld [vmem:[%s9360_s8 + $0x8] sm:$0xff] }
 0x110   :  { %v467_v39 = vpop.permute.xlu1 %466  ;;  %v464_v6 = vpop.permute.xlu0 %463  ;;  %vm2726_vm11 = vcmp.ge.s32.totalorder %v2718_v31, 0  ;;  %vm2734_vm15 = vcmp.lt.s32.totalorder %v2718_v31, 8  ;;  %vm7630_vm14 = vmand %vm2620_vm0, %vm2628_vm4  ;;  %v2924_v34 = vadd.s32 2, %v6356_v35 }
 0x111   :  { %vm491_vm10 = vcmp.eq.s32.totalorder %v467_v39, 1  ;;  %vm490_vm3 = vcmp.eq.s32.totalorder %v464_v6, 1  ;;  %3002 = vperm.xlu1 %6011, %v2979_v43   ;;  %2894 = vperm.xlu0 %6010, %v2873_v38   ;;  %vm7625_vm5 = vmand %vm2726_vm11, %vm2734_vm15  ;;  %v2661_v29 = vsel %vm7630_vm14, 1, %v9375_v37  ;;  %v195_v39 = vld [vmem:[%s9415_s13 + $0x10] sm:$0xff] }
 0x112   :  { %v507_v14 = vsel %vm491_vm10, %v7214_v57, 0.0  ;;  %v506_v54 = vsel %vm490_vm3, %v7218_v50, 0.0  ;;  %5781 = vmatprep.mubr.msk.bf16.mxu0 %vm9403_vm12, %v516_v9  ;;  %v2928_v50 = vadd.s32 2, %v7365_v61  ;;  %v2872_v61 = vsel %vm7609_vm7, 1, %v9375_v37  ;;  %vm9414_vm7 = vmmov %vm9410_vm1  ;;  %v193_v9 = vld [vmem:[%s9415_s13] sm:$0xff]  ;;  %s9573_s13 = sld [smem:[#allocation31_spill]] }
 0x113   :  { %v517_v11 = vpack.c.bf16 %v507_v14, %v506_v54  ;;  %vm2831_vm10 = vcmp.ge.s32.totalorder %v2823_v24, 0  ;;  %vm2839_vm3 = vcmp.lt.s32.totalorder %v2823_v24, 8  ;;  %v2766_v22 = vsel %vm7625_vm5, 1, %v9375_v37 }
 0x114   :  { %v473_v52 = vpop.permute.xlu1 %472  ;;  %v470_v12 = vpop.permute.xlu0 %469  ;;  %vm2936_vm6 = vcmp.ge.s32.totalorder %v2928_v50, 0  ;;  %vm2944_vm8 = vcmp.lt.s32.totalorder %v2928_v50, 8  ;;  %vm2847_vm15 = vmand %vm2831_vm10, %vm2839_vm3  ;;  %vm2830_vm10 = vcmp.ge.s32.totalorder %v2822_v42, 0  ;;  %vm2838_vm3 = vcmp.lt.s32.totalorder %v2822_v42, 8 }
 0x115   :  { %vm493_vm2 = vcmp.eq.s32.totalorder %v473_v52, 1  ;;  %vm492_vm13 = vcmp.eq.s32.totalorder %v470_v12, 1  ;;  %2784 = vperm.xlu1 %6011, %v2767_v47   ;;  %2677 = vperm.xlu0 %6010, %v2662_v48   ;;  %vm2952_vm11 = vmand %vm2936_vm6, %vm2944_vm8  ;;  %v2871_v33 = vsel %vm2847_vm15, 1, %v9375_v37  ;;  %v946_v52 = vld [vmem:[%s9416_s0] sm:$0xff] }
 0x116   :  { %v509_v55 = vsel %vm493_vm2, %v7230_v30, 0.0  ;;  %v508_v3 = vsel %vm492_vm13, %v7234_v58, 0.0  ;;  %v2717_v58 = vadd.s32 4294967295, %v7354_v53  ;;  %vm2619_vm2 = vcmp.ge.s32.totalorder %v2611_v60, 0  ;;  %5821 = vmatprep.mubr.f32.mxu1 %v946_v52 }
 0x117   :  { %v518_v23 = vpack.c.bf16 %v509_v55, %v508_v3  ;;  %5782 = vmatmul.mubr.msk.bf16.gmra.mxu0 %vm9410_vm1, %v517_v11  ;;  %vm2627_vm13 = vcmp.lt.s32.totalorder %v2611_v60, 8  ;;  %v2977_v17 = vsel %vm2952_vm11, 1, %v9375_v37  ;;  %vm2732_vm11 = vcmp.lt.s32.totalorder %v2716_v19, 8 }
 0x118   :  { %v479_v62 = vpop.permute.xlu1 %478  ;;  %v476_v26 = vpop.permute.xlu0 %475  ;;  %vm2725_vm0 = vcmp.ge.s32.totalorder %v2717_v58, 0  ;;  %vm2733_vm4 = vcmp.lt.s32.totalorder %v2717_v58, 8  ;;  %vm2635_vm14 = vmand %vm2619_vm2, %vm2627_vm13  ;;  %vm2934_vm13 = vcmp.ge.s32.totalorder %v2926_v59, 0 }
 0x119   :  { %vm495_vm12 = vcmp.eq.s32.totalorder %v479_v62, 1  ;;  %vm494_vm9 = vcmp.eq.s32.totalorder %v476_v26, 1  ;;  %2999 = vperm.xlu1 %6011, %v2978_v8   ;;  %2891 = vperm.xlu0 %6010, %v2872_v61   ;;  %vm2741_vm5 = vmand %vm2725_vm0, %vm2733_vm4  ;;  %v2660_v63 = vsel %vm2635_vm14, 1, %v9375_v37  ;;  %vm2837_vm14 = vcmp.lt.s32.totalorder %v2821_v5, 8  ;;  %v6012_v8 = vld [vmem:[#allocation2 + $0x38] sm:$0xff]   ;;  %v6013_v61 = vld [vmem:[#allocation2 + $0x30] sm:$0xff]  }
 0x11a   :  { %v511_v51 = vsel %vm495_vm12, %v7244_v13, 0.0  ;;  %v510_v44 = vsel %vm494_vm9, %v9413_v56, 0.0  ;;  %5785 = vmatprep.mubr.msk.bf16.mxu0 %vm9414_vm7, %v518_v23  ;;  %v2927_v13 = vadd.s32 2, %v7370_v27  ;;  %v2610_v27 = vadd.s32 4294967294, %v7344_v10  ;;  %vm2846_vm9 = vmand %vm2830_vm10, %vm2838_vm3  ;;  %5849 = vmatprep.subr.bf16.mxu0 %v6012_v8 }
 0x11b   :  { %v519_v1 = vpack.c.bf16 %v511_v51, %v510_v44  ;;  %v2765_v49 = vsel %vm2741_vm5, 1, %v9375_v37  ;;  %vm2724_vm7 = vcmp.ge.s32.totalorder %v2716_v19, 0  ;;  %v2870_v2 = vsel %vm2846_vm9, 1, %v9375_v37  ;;  %5850 = vmatpush3.bf16.msra.mxu0 %v6012_v8 }
 0x11c   :  { %vm2935_vm6 = vcmp.ge.s32.totalorder %v2927_v13, 0  ;;  %vm2943_vm8 = vcmp.lt.s32.totalorder %v2927_v13, 8  ;;  %vm2618_vm15 = vcmp.ge.s32.totalorder %v2610_v27, 0  ;;  %vm2626_vm0 = vcmp.lt.s32.totalorder %v2610_v27, 8  ;;  %vm2740_vm4 = vmand %vm2724_vm7, %vm2732_vm11  ;;  %v7693_v4 = vpop.permute.xlu0 %1112  ;;  %v7695_v11 = vpop.permute.xlu1 %1109  ;;  %5851 = vmatprep.subr.bf16.mxu0 %v6013_v61 }
 0x11d   :  { %2781 = vperm.xlu1 %6011, %v2766_v22   ;;  %2674 = vperm.xlu0 %6010, %v2661_v29   ;;  %vm2951_vm12 = vmand %vm2935_vm6, %vm2943_vm8  ;;  %vm2942_vm5 = vcmp.lt.s32.totalorder %v2926_v59, 8  ;;  %v2764_v36 = vsel %vm2740_vm4, 1, %v9375_v37  ;;  %vm2828_vm10 = vcmp.ge.s32.totalorder %v2820_v21, 0  ;;  %vm2836_vm3 = vcmp.lt.s32.totalorder %v2820_v21, 8 }
 0x11e   :  { %v2976_v28 = vsel %vm2951_vm12, 1, %v9375_v37  ;;  %vm2634_vm2 = vmand %vm2618_vm15, %vm2626_vm0  ;;  %vm2723_vm12 = vcmp.ge.s32.totalorder %v2715_v7, 0  ;;  %vm2731_vm9 = vcmp.lt.s32.totalorder %v2715_v7, 8  ;;  %vm2827_vm15 = vcmp.ge.s32.totalorder %v2819_v25, 0 }
 0x11f   :  { %5786 = vmatmul.mubr.msk.bf16.gmra.mxu0 %vm9410_vm1, %v519_v1  ;;  %vm2829_vm1 = vcmp.ge.s32.totalorder %v2821_v5, 0  ;;  %v2659_v18 = vsel %vm2634_vm2, 1, %v9375_v37  ;;  %vm2950_vm6 = vmand %vm2934_vm13, %vm2942_vm5  ;;  %vm2835_vm0 = vcmp.lt.s32.totalorder %v2819_v25, 8  ;;  %vm2933_vm4 = vcmp.ge.s32.totalorder %v2925_v15, 0 }
 0x120   :  { %vm2845_vm8 = vmand %vm2829_vm1, %vm2837_vm14  ;;  %v2975_v45 = vsel %vm2950_vm6, 1, %v9375_v37  ;;  %vm2941_vm2 = vcmp.lt.s32.totalorder %v2925_v15, 8  ;;  %vm2931_vm1 = vcmp.ge.s32.totalorder %v2923_v0, 0  ;;  %vm2939_vm14 = vcmp.lt.s32.totalorder %v2923_v0, 8  ;;  %v7697_v57 = vpop.permute.xlu0 %1320  ;;  %v7699_v50 = vpop.permute.xlu1 %1106  ;;  %5852 = vmatpush3.bf16.msra.mxu0 %v6013_v61 }
 0x121   :  { %2996 = vperm.xlu1 %6011, %v2977_v17   ;;  %2888 = vperm.xlu0 %6010, %v2871_v33   ;;  %v2869_v46 = vsel %vm2845_vm8, 1, %v9375_v37  ;;  %vm2844_vm7 = vmand %vm2828_vm10, %vm2836_vm3  ;;  %vm2932_vm6 = vcmp.ge.s32.totalorder %v2924_v34, 0  ;;  %vm2940_vm8 = vcmp.lt.s32.totalorder %v2924_v34, 8 }
 0x122   :  { %vm2739_vm11 = vmand %vm2723_vm12, %vm2731_vm9  ;;  %v2868_v53 = vsel %vm2844_vm7, 1, %v9375_v37  ;;  %vm3118_vm12 = vcmp.gt.s32.totalorder %v194_v32, 0  ;;  %vm3117_vm9 = vcmp.gt.s32.totalorder %v193_v9, 0  ;;  %vm3146_vm7 = vcmp.lt.s32.totalorder %v193_v9, 2 }
 0x123   :  { %v2763_v43 = vsel %vm2739_vm11, 1, %v9375_v37  ;;  %vm2843_vm13 = vmand %vm2827_vm15, %vm2835_vm0  ;;  %v3127_v6 = vsel %vm3118_vm12, 1, %v9375_v37  ;;  %v3126_v40 = vsel %vm3117_vm9, 1, %v9375_v37  ;;  %vm3119_vm11 = vcmp.gt.s32.totalorder %v195_v39, 0 }
 0x124   :  { %vm2949_vm5 = vmand %vm2933_vm4, %vm2941_vm2  ;;  %v2867_v10 = vsel %vm2843_vm13, 1, %v9375_v37  ;;  %v3155_v14 = vsel %vm3146_vm7, 1, %v9375_v37  ;;  %v3128_v54 = vsel %vm3119_vm11, 1, %v9375_v37  ;;  %vm3148_vm15 = vcmp.lt.s32.totalorder %v195_v39, 2  ;;  %v7704_v12 = vpop.permute.xlu0 %1317  ;;  %v7706_v24 = vpop.permute.xlu1 %1103 }
 0x125   :  { %2778 = vperm.xlu1 %6011, %v2765_v49   ;;  %2671 = vperm.xlu0 %6010, %v2660_v63   ;;  %v2974_v38 = vsel %vm2949_vm5, 1, %v9375_v37  ;;  %vm2947_vm10 = vmand %vm2931_vm1, %vm2939_vm14  ;;  %vm3147_vm0 = vcmp.lt.s32.totalorder %v194_v32, 2  ;;  %v3157_v47 = vsel %vm3148_vm15, 1, %v9375_v37  ;;  %vm9427_vm4 = vcmp.lt.s32.totalorder %v6807_v41, 1 }
 0x126   :  { %vm2948_vm3 = vmand %vm2932_vm6, %vm2940_vm8  ;;  %v2972_v20 = vsel %vm2947_vm10, 1, %v9375_v37  ;;  %v3156_v48 = vsel %vm3147_vm0, 1, %v9375_v37  ;;  %vm9428_vm2 = vcmp.lt.s32.totalorder %v6807_v41, 7  ;;  %vm1129_vm0 = vcmp.eq.s32.totalorder %v7693_v4, 1 }
 0x127   :  { %v2973_v31 = vsel %vm2948_vm3, 1, %v9375_v37  ;;  %vm9429_vm1 = vmmov %vm9427_vm4 }
 0x128   :  { %v7708_v55 = vpop.permute.xlu0 %1314  ;;  %v7710_v3 = vpop.permute.xlu1 %1100  ;;  %vm9431_vm14 = vmmov %vm9428_vm2 }
 0x129   :  { %2993 = vperm.xlu1 %6011, %v2976_v28   ;;  %2885 = vperm.xlu0 %6010, %v2870_v2   ;;  %vm9432_vm6 = vmmov %vm9429_vm1  ;;  %vm1125_vm15 = vcmp.eq.s32.totalorder %v7710_v3, 1 }
 0x12a   :  { %vm9433_vm8 = vmmov %vm9428_vm2 }
 0x12b   :  { %vm9434_vm9 = vmmov %vm9429_vm1 }
 0x12c   :  { %v7712_v16 = vpop.permute.xlu0 %1311  ;;  %v7714_v30 = vpop.permute.xlu1 %1097 }
 0x12d   :  { %2775 = vperm.xlu1 %6011, %v2764_v36   ;;  %2668 = vperm.xlu0 %6010, %v2659_v18  }
 0x130   :  { %v7716_v58 = vpop.permute.xlu0 %1308  ;;  %v7718_v26 = vpop.permute.xlu1 %1094 }
 0x131   :  { %2990 = vperm.xlu1 %6011, %v2975_v45   ;;  %2882 = vperm.xlu0 %6010, %v2869_v46  }
 0x134   :  { %v7720_v44 = vpop.permute.xlu0 %1305  ;;  %v7722_v1 = vpop.permute.xlu1 %1091 }
 0x135   :  { %2879 = vperm.xlu1 %6011, %v2868_v53   ;;  %2772 = vperm.xlu0 %6010, %v2763_v43   ;;  %9417 = vst [vmem:[#allocation16_spill] sm:$0xff] %v7720_v44  ;;  %9418 = vst [vmem:[#allocation17_spill] sm:$0xff] %v7722_v1 }
 0x138   :  { %v7726_v17 = vpop.permute.xlu0 %1302  ;;  %v7730_v27 = vpop.permute.xlu1 %1088 }
 0x139   :  { %2876 = vperm.xlu1 %6011, %v2867_v10   ;;  %2987 = vperm.xlu0 %6010, %v2974_v38   ;;  %9419 = vst [vmem:[#allocation18_spill] sm:$0xff] %v7726_v17  ;;  %9420 = vst [vmem:[#allocation19_spill] sm:$0xff] %v7730_v27 }
 0x13c   :  { %v7734_v5 = vpop.permute.xlu0 %1299  ;;  %v7740_v21 = vpop.permute.xlu1 %1085 }
 0x13d   :  { %2981 = vperm.xlu1 %6011, %v2972_v20   ;;  %2984 = vperm.xlu0 %6010, %v2973_v31   ;;  %9421 = vst [vmem:[#allocation20_spill] sm:$0xff] %v7734_v5  ;;  %9422 = vst [vmem:[#allocation21_spill] sm:$0xff] %v7740_v21 }
 0x140   :  { %v7746_v18 = vpop.permute.xlu0 %1296  ;;  %v7750_v45 = vpop.permute.xlu1 %1082 }
 0x141   :  { %3133 = vperm.xlu1 %6011, %v3127_v6   ;;  %3130 = vperm.xlu0 %6010, %v3126_v40   ;;  %9423 = vst [vmem:[#allocation22_spill] sm:$0xff] %v7746_v18  ;;  %vm1119_vm7 = vcmp.eq.s32.totalorder %v7750_v45, 1 }
 0x144   :  { %v7758_v34 = vpop.permute.xlu0 %1293  ;;  %v7764_v10 = vpop.permute.xlu1 %1079 }
 0x145   :  { %3159 = vperm.xlu1 %6011, %v3155_v14   ;;  %3136 = vperm.xlu0 %6010, %v3128_v54   ;;  %9424 = vst [vmem:[#allocation23_spill] sm:$0xff] %v7758_v34  ;;  %v7775_v14 = vld [vmem:[%s9425_s9] ss:$0 sm:$0xff]  ;;  %vm1118_vm10 = vcmp.eq.s32.totalorder %v7764_v10, 1 }
 0x147   :  { %v5757_v23 = vpop.f32.mrf.mxu1 }
 0x148   :  { %v7768_v20 = vpop.permute.xlu0 %1290  ;;  %v1077_v54 = vpop.permute.xlu1 %1076 }
 0x149   :  { %3165 = vperm.xlu1 %6011, %v3157_v47   ;;  %3162 = vperm.xlu0 %6010, %v3156_v48   ;;  %v718_v62 = vpop.f32.mrf.mxu1  ;;  %vm1117_vm13 = vcmp.eq.s32.totalorder %v1077_v54, 1 }
 0x14b   :  { %v5758_v51 = vpop.f32.mrf.mxu1 }
 0x14d   :  { %v721_v29 = vpop.f32.mrf.mxu1 }
 0x15b   :  { %v7728_v33 = vpop.f32.mrf.mxu1 }
 0x15d   :  { %v734_v63 = vpop.f32.mrf.mxu1 }
 0x15f   :  { %v7738_v2 = vpop.f32.mrf.mxu1 }
 0x161   :  { %v737_v25 = vpop.f32.mrf.mxu1 }
 0x163   :  { %v7754_v0 = vpop.f32.mrf.mxu1 }
 0x165   :  { %v7762_v43 = vpop.f32.mrf.mxu1 }
 0x167   :  { %v7770_v31 = vpop.f32.mrf.mxu1 }
 0x169   :  { %v753_v52 = vpop.f32.mrf.mxu1 }
 0x16b   :  { %v5769_v34 = vpop.f32.mrf.mxu1 }
 0x16d   :  { %v766_v21 = vpop.f32.mrf.mxu1 }
 0x1a7   :  { %v5739_v60 = vpop.f32.mrf.mxu0 }
 0x1a8   :  { %v727_v32 = vadd.f32 %v5757_v23, %v5739_v60  ;;  %v7780_v60 = vpop.permute.xlu0 %1287 }
 0x1a9   :  { %v594_v56 = vpop.f32.mrf.mxu0  ;;  %9426 = vst [vmem:[#allocation24_spill] sm:$0xff] %v7780_v60 }
 0x1ab   :  { %v5740_v22 = vpop.f32.mrf.mxu0 }
 0x1ac   :  { %v730_v40 = vadd.f32 %v5758_v51, %v5740_v22  ;;  %v719_v22 = vadd.f32 %v718_v62, %v594_v56 }
 0x1ad   :  { %v597_v13 = vpop.f32.mrf.mxu0 }
 0x1ae   :  { %v722_v48 = vadd.f32 %v721_v29, %v597_v13 }
 0x1af   :  { %v7724_v42 = vpop.f32.mrf.mxu0 }
 0x1b1   :  { %v610_v19 = vpop.f32.mrf.mxu0 }
 0x1b2   :  { %v735_v37 = vadd.f32 %v734_v63, %v610_v19 }
 0x1b3   :  { %v7732_v49 = vpop.f32.mrf.mxu0 }
 0x1b4   :  { %v746_v54 = vadd.f32 %v7738_v2, %v7732_v49 }
 0x1b5   :  { %v613_v59 = vpop.f32.mrf.mxu0 }
 0x1b7   :  { %v7736_v28 = vpop.f32.mrf.mxu0 }
 0x1b9   :  { %v7742_v7 = vpop.f32.mrf.mxu0 }
 0x1bb   :  { %v7744_v36 = vpop.f32.mrf.mxu0 }
 0x1bd   :  { %v7748_v15 = vpop.f32.mrf.mxu0 }
 0x1bf   :  { %v7752_v46 = vpop.f32.mrf.mxu0 }
 0x1c1   :  { %v7756_v35 = vpop.f32.mrf.mxu0 }
 0x1c3   :  { %v7760_v53 = vpop.f32.mrf.mxu0 }
 0x1c5   :  { %v7766_v38 = vpop.f32.mrf.mxu0 }
 0x1c7   :  { %v5775_v9 = vpop.f32.mrf.mxu0 }
 0x1c8   :  { %v909_v39 = vadd.f32 %v5775_v9, %v727_v32 }
 0x1c9   :  { %v844_v6 = vpop.f32.mrf.mxu0 }
 0x1ca   :  { %v7778_v61 = vadd.f32 %v7775_v14, %v909_v39  ;;  %v1074_v39 = vpop.permute.xlu1 %1073 }
 0x1cb   :  { %v5776_v47 = vpop.f32.mrf.mxu0  ;;  %vm1116_vm5 = vcmp.eq.s32.totalorder %v1074_v39, 1 }
 0x1cc   :  { %v910_v8 = vadd.f32 %v5776_v47, %v730_v40  ;;  %v1020_v40 = vrot.slane %v7778_v61, 7  ;;  %v1228_v47 = vrot.slane %v7778_v61, 1 }
 0x1cd   :  { %v847_v23 = vpop.f32.mrf.mxu0 }
 0x1ce   :  { %v7783_v32 = vadd.f32 %v7775_v14, %v910_v8  ;;  %v908_v51 = vadd.f32 %v847_v23, %v722_v48  ;;  %v907_v8 = vadd.f32 %v844_v6, %v719_v22  ;;  %v1071_v2 = vpop.permute.xlu1 %1070 }
 0x1cf   :  { %v5779_v9 = vpop.f32.mrf.mxu0  ;;  %vm1115_vm3 = vcmp.eq.s32.totalorder %v1071_v2, 1 }
 0x1d0   :  { %v1021_v18 = vrot.slane %v7783_v32, 7  ;;  %v1229_v29 = vrot.slane %v7783_v32, 1  ;;  %v7788_v13 = vadd.f32 %v7775_v14, %v908_v51  ;;  %v7800_v51 = vpop.permute.xlu0 %1284  ;;  %v7814_v27 = vadd.f32 %v7775_v14, %v907_v8 }
 0x1d1   :  { %v860_v5 = vpop.f32.mrf.mxu0  ;;  %vm1325_vm12 = vcmp.eq.s32.totalorder %v7800_v51, 1 }
 0x1d2   :  { %v1019_v48 = vrot.slane %v7788_v13, 7  ;;  %v911_v62 = vadd.f32 %v860_v5, %v735_v37  ;;  %v1046_v63 = vsel %vm9427_vm4, %v1020_v40, %v1021_v18  ;;  %v7798_v23 = vsel %vm9428_vm2, %v1228_v47, %v1229_v29  ;;  %vm9435_vm2 = vmmov %vm9429_vm1 }
 0x1d3   :  { %v5780_v19 = vpop.f32.mrf.mxu0  ;;  %v743_v37 = vadd.f32 %v7728_v33, %v7724_v42  ;;  %v738_v5 = vadd.f32 %v737_v25, %v613_v59  ;;  %v7807_v56 = vsel %vm1117_vm13, %v1046_v63, -1e+30  ;;  %v9430_v59 = vrot.slane %v7788_v13, 1  ;;  %v5770_v25 = vpop.f32.mrf.mxu1 }
 0x1d4   :  { %v7803_v6 = vadd.f32 %v7775_v14, %v911_v62  ;;  %v1047_v17 = vsel %vm9429_vm1, %v1019_v48, %v1020_v40  ;;  %v914_v8 = vadd.f32 %v5780_v19, %v746_v54  ;;  %v762_v19 = vadd.f32 %v7770_v31, %v7744_v36 }
 0x1d5   :  { %v863_v22 = vpop.f32.mrf.mxu0  ;;  %v7821_v33 = vsel %vm1116_vm5, %v1047_v17, -1e+30  ;;  %v7827_v49 = vsel %vm9431_vm14, %v9430_v59, %v1228_v47  ;;  %v913_v40 = vadd.f32 %v5779_v9, %v743_v37  ;;  %v1282_v47 = vpop.permute.xlu0 %1281  ;;  %v759_v9 = vadd.f32 %v7754_v0, %v7736_v28 }
 0x1d6   :  { %v1022_v44 = vrot.slane %v7803_v6, 7  ;;  %v9291_v62 = vrot.slane %v7803_v6, 1  ;;  %v912_v1 = vadd.f32 %v863_v22, %v738_v5  ;;  %v751_v37 = vadd.f32 %v7762_v43, %v7742_v7  ;;  %v769_v59 = vpop.f32.mrf.mxu1 }
 0x1d7   :  { %v5783_v60 = vpop.f32.mrf.mxu0  ;;  %v7855_v28 = vadd.f32 %v7775_v14, %v913_v40  ;;  %vm1324_vm11 = vcmp.eq.s32.totalorder %v1282_v47, 1  ;;  %v7864_v7 = vadd.f32 %v7775_v14, %v914_v8  ;;  %vm1124_vm4 = vcmp.eq.s32.totalorder %v7714_v30, 1 }
 0x1d8   :  { %v1045_v5 = vsel %vm9432_vm6, %v1021_v18, %v1022_v44  ;;  %v7837_v17 = vsel %vm9433_vm8, %v1229_v29, %v9291_v62  ;;  %v9285_v18 = vrot.slane %v7814_v27, 7  ;;  %v754_v29 = vadd.f32 %v753_v52, %v7748_v15  ;;  %vm9436_vm8 = vmmov %vm9435_vm2 }
 0x1d9   :  { %v876_v63 = vpop.f32.mrf.mxu0  ;;  %v7851_v22 = vadd.f32 %v7775_v14, %v912_v1  ;;  %v917_v0 = vadd.f32 %v5783_v60, %v759_v9  ;;  %v775_v1 = vadd.f32 %v5769_v34, %v7752_v46  ;;  %v767_v52 = vadd.f32 %v766_v21, %v7756_v35  ;;  %v7953_v45 = vpop.permute.xlu0 %1278 }
 0x1da   :  { %v1048_v31 = vsel %vm9434_vm9, %v9285_v18, %v1019_v48  ;;  %v915_v15 = vadd.f32 %v876_v63, %v751_v37  ;;  %v778_v60 = vadd.f32 %v5770_v25, %v7760_v53  ;;  %v770_v48 = vadd.f32 %v769_v59, %v7766_v38 }
 0x1db   :  { %v5784_v54 = vpop.f32.mrf.mxu0  ;;  %v7875_v34 = vsel %vm1115_vm3, %v1048_v31, -1e+30  ;;  %v7880_v35 = vadd.f32 %v7775_v14, %v917_v0  ;;  %v9286_v38 = vrot.slane %v7855_v28, 1  ;;  %v9288_v8 = vrot.slane %v7864_v7, 7 }
 0x1dc   :  { %v918_v36 = vadd.f32 %v5784_v54, %v762_v19  ;;  %v9290_v19 = vrot.slane %v7814_v27, 1  ;;  %v9287_v54 = vrot.slane %v7851_v22, 7  ;;  %v7888_v63 = vadd.f32 %v7775_v14, %v915_v15 }
 0x1dd   :  { %v879_v43 = vpop.f32.mrf.mxu0  ;;  %v7892_v37 = vsel %vm1324_vm11, %v7798_v23, -1e+30  ;;  %v1231_v31 = vrot.slane %v7851_v22, 1  ;;  %v7912_v15 = vsel %vm1118_vm10, %v1045_v5, -1e+30  ;;  %vm1128_vm13 = vcmp.eq.s32.totalorder %v7695_v11, 1 }
 0x1de   :  { %v7869_v40 = vadd.f32 %v7775_v14, %v918_v36  ;;  %v916_v9 = vadd.f32 %v879_v43, %v754_v29  ;;  %v1044_v23 = vsel %vm9435_vm2, %v1022_v44, %v9287_v54  ;;  %vm1127_vm5 = vcmp.eq.s32.totalorder %v7699_v50, 1 }
 0x1df   :  { %v5787_v46 = vpop.f32.mrf.mxu0  ;;  %vm1337_vm1 = vcmp.eq.s32.totalorder %v7697_v57, 1  ;;  %v1028_v43 = vrot.slane %v7880_v35, 7  ;;  %v1236_v44 = vrot.slane %v7880_v35, 1  ;;  %v1026_v10 = vrot.slane %v7888_v63, 7 }
 0x1e0   :  { %v7883_v53 = vadd.f32 %v7775_v14, %v916_v9  ;;  %v921_v25 = vadd.f32 %v5787_v46, %v775_v1  ;;  %v1029_v59 = vrot.slane %v7869_v40, 7  ;;  %vm1126_vm14 = vcmp.eq.s32.totalorder %v7706_v24, 1 }
 0x1e1   :  { %v892_v2 = vpop.f32.mrf.mxu0  ;;  %vm1336_vm6 = vcmp.eq.s32.totalorder %v7704_v12, 1  ;;  %v7939_v18 = vsel %vm1119_vm7, %v1044_v23, -1e+30  ;;  %v1237_v29 = vrot.slane %v7869_v40, 1  ;;  %vm9437_vm10 = vcmp.lt.s32.totalorder %v6807_v41, 7  ;;  %vm9438_vm7 = vmmov %vm9435_vm2 }
 0x1e2   :  { %v919_v0 = vadd.f32 %v892_v2, %v767_v52  ;;  %v7902_v1 = vadd.f32 %v7775_v14, %v921_v25  ;;  %v1027_v52 = vrot.slane %v7883_v53, 7  ;;  %v7928_v2 = vsel %vm1325_vm12, %v7837_v17, -1e+30 }
 0x1e3   :  { %v5788_v47 = vpop.f32.mrf.mxu0  ;;  %vm1335_vm3 = vcmp.eq.s32.totalorder %v7708_v55, 1  ;;  %vm1334_vm12 = vcmp.eq.s32.totalorder %v7712_v16, 1  ;;  %vm1123_vm9 = vcmp.eq.s32.totalorder %v7718_v26, 1  ;;  %v1235_v11 = vrot.slane %v7883_v53, 1 }
 0x1e4   :  { %v7920_v9 = vadd.f32 %v7775_v14, %v919_v0  ;;  %v922_v46 = vadd.f32 %v5788_v47, %v778_v60  ;;  %v1038_v47 = vsel %vm9436_vm8, %v1028_v43, %v1029_v59  ;;  %v1032_v51 = vrot.slane %v7902_v1, 7  ;;  %vm9439_vm8 = vmmov %vm9435_vm2 }
 0x1e5   :  { %v895_v25 = vpop.f32.mrf.mxu0  ;;  %v1039_v5 = vsel %vm9438_vm7, %v1027_v52, %v1028_v43  ;;  %v7964_v36 = vsel %vm1125_vm15, %v1038_v47, -1e+30  ;;  %v1040_v54 = vsel %vm9435_vm2, %v1026_v10, %v1027_v52  ;;  %v7972_v21 = vsel %vm9439_vm8, %v9288_v8, %v1026_v10  ;;  %vm9440_vm7 = vmmov %vm9435_vm2 }
 0x1e6   :  { %v7933_v0 = vadd.f32 %v7775_v14, %v922_v46  ;;  %v920_v60 = vadd.f32 %v895_v25, %v770_v48  ;;  %v1030_v17 = vrot.slane %v7920_v9, 7  ;;  %v1251_v48 = vsel %vm9437_vm10, %v1231_v31, %v9286_v38  ;;  %vm9443_vm8 = vmmov %vm9440_vm7 }
 0x1e7   :  { %v1240_v38 = vrot.slane %v7902_v1, 1  ;;  %vm1333_vm10 = vcmp.eq.s32.totalorder %v7716_v58, 1  ;;  %vm9441_vm15 = vcmp.lt.s32.totalorder %v6807_v41, 7  ;;  %v1238_v10 = vrot.slane %v7920_v9, 1  ;;  %vm9444_vm11 = vmmov %vm9440_vm7 }
 0x1e8   :  { %v9289_v23 = vrot.slane %v7933_v0, 7  ;;  %v1241_v46 = vrot.slane %v7933_v0, 1  ;;  %v943_v25 = vadd.f32 %v7775_v14, %v920_v60  ;;  %v9442_v60 = vld [vmem:[#allocation24_spill] sm:$0xff]  ;;  %v1037_v8 = vsel %vm9443_vm8, %v1029_v59, %v1030_v17 }
 0x1e9   :  { %vm1326_vm2 = vcmp.eq.s32.totalorder %v9442_v60, 1  ;;  %v1150_v55 = vmax.f32 %v7803_v6, %v7912_v15  ;;  %v9453_v26 = vrot.slane %v7803_v6, 1 }
 0x1ea   :  { %v1031_v14 = vrot.slane %v943_v25, 7  ;;  %v1239_v43 = vrot.slane %v943_v25, 1  ;;  %v1034_v3 = vsel %vm9440_vm7, %v1032_v51, %v9289_v23  ;;  %v1257_v52 = vsel %vm9441_vm15, %v1241_v46, %v9290_v19 }
 0x1eb   :  { %v1145_v47 = vsel %vm1129_vm0, %v1034_v3, -1e+30  ;;  %v7992_v23 = vsel %vm1124_vm4, %v1039_v5, -1e+30  ;;  %v1242_v42 = vsel %vm9441_vm15, %v1240_v38, %v1241_v46  ;;  %v1353_v4 = vsel %vm1337_vm1, %v1257_v52, -1e+30  ;;  %vm9445_vm0 = vmmov %vm9441_vm15 }
 0x1ec   :  { %v1161_v39 = vmax.f32 %v7933_v0, %v1145_v47  ;;  %v1035_v19 = vsel %vm9440_vm7, %v1031_v14, %v1032_v51  ;;  %v1036_v62 = vsel %vm9444_vm11, %v1030_v17, %v1031_v14  ;;  %v1243_v5 = vsel %vm9445_vm0, %v1239_v43, %v1240_v38  ;;  %v9446_v3 = vld [vmem:[#allocation17_spill] sm:$0xff]  ;;  %v9447_v51 = vld [vmem:[#allocation16_spill] sm:$0xff]  ;;  %vm9448_vm11 = vmmov %vm9445_vm0 }
 0x1ed   :  { %v1144_v59 = vsel %vm1128_vm13, %v1035_v19, -1e+30  ;;  %v1143_v30 = vsel %vm1127_vm5, %v1036_v62, -1e+30  ;;  %vm1122_vm4 = vcmp.eq.s32.totalorder %v9446_v3, 1  ;;  %vm1332_vm8 = vcmp.eq.s32.totalorder %v9447_v51, 1  ;;  %vm9450_vm13 = vmmov %vm9445_vm0 }
 0x1ee   :  { %v1369_v46 = vmax.f32 %v1161_v39, %v1353_v4  ;;  %v1160_v47 = vmax.f32 %v7902_v1, %v1144_v59  ;;  %v1159_v17 = vmax.f32 %v943_v25, %v1143_v30  ;;  %v1244_v57 = vsel %vm9448_vm11, %v1238_v10, %v1239_v43  ;;  %v9449_v14 = vld [vmem:[#allocation19_spill] sm:$0xff]  ;;  %vm9451_vm5 = vmmov %vm9445_vm0  ;;  %v9468_v4 = vld [vmem:[#allocation18_spill] sm:$0xff] }
 0x1ef   :  { %vm1121_vm1 = vcmp.eq.s32.totalorder %v9449_v14, 1  ;;  %v1352_v50 = vsel %vm1336_vm6, %v1242_v42, -1e+30  ;;  %v1142_v62 = vsel %vm1126_vm14, %v1037_v8, -1e+30  ;;  %v1151_v19 = vmax.f32 %v7851_v22, %v7939_v18  ;;  %vm9454_vm6 = vmmov %vm9445_vm0  ;;  %v9469_v59 = vld [vmem:[#allocation21_spill] sm:$0xff] }
 0x1f0   :  { %5789 = vmatprep.subr.mxu1 %v1369_v46  ;;  %v1368_v39 = vmax.f32 %v1160_v47, %v1352_v50  ;;  %v1157_v38 = vmax.f32 %v7869_v40, %v7964_v36  ;;  %v1245_v1 = vsel %vm9450_vm13, %v1237_v29, %v1238_v10  ;;  %v1246_v12 = vsel %vm9451_vm5, %v1236_v44, %v1237_v29  ;;  %v9474_v3 = vld [vmem:[#allocation22_spill] sm:$0xff] }
 0x1f1   :  { %5790 = vmatpush3.msra.mxu1 %v1369_v46  ;;  %v1351_v24 = vsel %vm1335_vm3, %v1243_v5, -1e+30  ;;  %v1350_v42 = vsel %vm1334_vm12, %v1244_v57, -1e+30  ;;  %v1156_v18 = vmax.f32 %v7880_v35, %v7992_v23  ;;  %v1139_v40 = vsel %vm1123_vm9, %v1040_v54, -1e+30  ;;  %vm9460_vm12 = vmmov %vm9440_vm7 }
 0x1f2   :  { %5791 = vmatprep.subr.mxu1 %v1368_v39  ;;  %v1367_v8 = vmax.f32 %v1159_v17, %v1351_v24  ;;  %v1158_v36 = vmax.f32 %v7920_v9, %v1142_v62  ;;  %vm9452_vm14 = vcmp.eq.s32.totalorder %v7768_v20, 1  ;;  %v1349_v16 = vsel %vm1333_vm10, %v1245_v1, -1e+30  ;;  %vm9463_vm9 = vmmov %vm9440_vm7 }
 0x1f3   :  { %v1343_v29 = vsel %vm9452_vm14, %v1251_v48, -1e+30  ;;  %5792 = vmatpush3.msra.mxu1 %v1368_v39  ;;  %v1252_v54 = vsel %vm9454_vm6, %v9453_v26, %v1231_v31  ;;  %v9455_v20 = vmax.f32 %v7783_v32, %v7807_v56  ;;  %v9456_v48 = vmax.f32 %v7778_v61, %v7821_v33  ;;  %vm9465_vm10 = vmmov %vm9445_vm0 }
 0x1f4   :  { %v1359_v25 = vmax.f32 %v1151_v19, %v1343_v29  ;;  %5793 = vmatprep.subr.mxu1 %v1367_v8  ;;  %v1366_v15 = vmax.f32 %v1158_v36, %v1350_v42  ;;  %v1342_v58 = vsel %vm1326_vm2, %v1252_v54, -1e+30  ;;  %vm9457_vm3 = vcmp.eq.s32.totalorder %v7953_v45, 1  ;;  %vm9467_vm2 = vmmov %vm9445_vm0  ;;  %v947_v54 = vld [vmem:[%s9416_s0 + $0x8] sm:$0xff] }
 0x1f5   :  { %v8055_v9 = vmax.f32 %v9455_v20, %v7928_v2  ;;  %v1356_v23 = vmax.f32 %v9456_v48, %v7892_v37  ;;  %v1339_v6 = vsel %vm9457_vm3, %v7827_v49, -1e+30  ;;  %5794 = vmatpush3.msra.mxu1 %v1367_v8  ;;  %v9458_v31 = vrot.slane %v7864_v7, 7  ;;  %vm9473_vm11 = vmmov %vm9467_vm2  ;;  %v950_v20 = vld [vmem:[%s9416_s0 + $0x20] sm:$0xff]  ;;  %v6014_v48 = vld [vmem:[#allocation2 + $0x28] sm:$0xff]  }
 0x1f6   :  { %v9459_v32 = vrot.slane %v7855_v28, 7  ;;  %v9462_v43 = vrot.slane %v7851_v22, 7  ;;  %v1358_v33 = vmax.f32 %v1150_v55, %v1342_v58  ;;  %v9464_v37 = vmax.f32 %v7788_v13, %v7875_v34  ;;  %5795 = vmatprep.subr.mxu1 %v1366_v15  ;;  %vm9481_vm13 = vmmov %vm9463_vm9  ;;  %v953_v58 = vld [vmem:[%s9416_s0 + $0x38] sm:$0xff]  ;;  %5853 = vmatprep.subr.bf16.mxu0 %v6014_v48 }
 0x1f7   :  { %v1365_v45 = vmax.f32 %v1157_v38, %v1349_v16  ;;  %v1155_v52 = vmax.f32 %v7883_v53, %v1139_v40  ;;  %v1247_v60 = vsel %vm9465_vm10, %v1235_v11, %v1236_v44  ;;  %v9466_v10 = vrot.slane %v7888_v63, 1  ;;  %5796 = vmatpush3.msra.mxu1 %v1366_v15  ;;  %v9470_v53 = vld [vmem:[#allocation20_spill] sm:$0xff]  ;;  %vm9484_vm14 = vmmov %vm9467_vm2  ;;  %v952_v15 = vld [vmem:[%s9416_s0 + $0x30] sm:$0xff]  ;;  %5854 = vmatpush3.bf16.msra.mxu0 %v6014_v48 }
 0x1f8   :  { %v1042_v56 = vsel %vm9460_vm12, %v9459_v32, %v9458_v31  ;;  %v9461_v2 = vmov %v9459_v32  ;;  %v1355_v49 = vmax.f32 %v9464_v37, %v1339_v6  ;;  %vm1331_vm7 = vcmp.eq.s32.totalorder %v9468_v4, 1  ;;  %v6016_v6 = vld [vmem:[#allocation2 + $0x20] sm:$0xff]   ;;  %v6017_v31 = vld [vmem:[#allocation2 + $0x10] sm:$0xff]   ;;  %v6018_v32 = vld [vmem:[#allocation2 + $0x8] sm:$0xff]  }
 0x1f9   :  { %v1043_v61 = vsel %vm9463_vm9, %v9462_v43, %v9461_v2  ;;  %v1248_v22 = vsel %vm9467_vm2, %v9466_v10, %v1235_v11  ;;  %vm1120_vm15 = vcmp.eq.s32.totalorder %v9469_v59, 1  ;;  %v1348_v34 = vsel %vm1332_vm8, %v1246_v12, -1e+30  ;;  %5797 = vmatprep.subr.mxu1 %v1365_v45  ;;  %vm9477_vm8 = vmmov %vm9467_vm2  ;;  %v9478_v12 = vld [vmem:[#allocation23_spill] sm:$0xff]  ;;  %5855 = vmatprep.subr.bf16.mxu0 %v6016_v6 }
 0x1fa   :  { %v1138_v35 = vsel %vm1122_vm4, %v7972_v21, -1e+30  ;;  %vm1330_vm0 = vcmp.eq.s32.totalorder %v9470_v53, 1  ;;  %v1364_v44 = vmax.f32 %v1156_v18, %v1348_v34  ;;  %v1137_v30 = vsel %vm1121_vm1, %v1042_v56, -1e+30  ;;  %5798 = vmatpush3.msra.mxu1 %v1365_v45  ;;  %v1068_v18 = vpop.permute.xlu1 %1067  ;;  %v6019_v56 = vld [vmem:[#allocation2] sm:$0xff]   ;;  %vm9485_vm10 = vmmov %vm9463_vm9 }
 0x1fb   :  { %v9471_v5 = vmov %v9466_v10  ;;  %v9472_v46 = vrot.slane %v7864_v7, 1  ;;  %v1347_v51 = vsel %vm1331_vm7, %v1247_v60, -1e+30  ;;  %v1346_v17 = vsel %vm1330_vm0, %v1248_v22, -1e+30  ;;  %5856 = vmatpush3.bf16.msra.mxu0 %v6016_v6  ;;  %v8153_v2 = vld [vmem:[#allocation2 + $0x58] sm:$0xff]   ;;  %vm9486_vm2 = vmmov %vm9463_vm9 }
 0x1fc   :  { %v1136_v57 = vsel %vm1120_vm15, %v1043_v61, -1e+30  ;;  %vm1329_vm4 = vcmp.eq.s32.totalorder %v9474_v3, 1  ;;  %5799 = vmatprep.subr.mxu1 %v1364_v44  ;;  %v1363_v21 = vmax.f32 %v1155_v52, %v1347_v51  ;;  %v1154_v11 = vmax.f32 %v7888_v63, %v1138_v35  ;;  %v8158_v61 = vpop.permute.xlu0 %1508  ;;  %vm9487_vm15 = vmmov %vm9486_vm2 }
 0x1fd   :  { %v1249_v47 = vsel %vm9473_vm11, %v9472_v46, %v9471_v5  ;;  %5800 = vmatpush3.msra.mxu1 %v1364_v44  ;;  %v1153_v62 = vmax.f32 %v7864_v7, %v1137_v30  ;;  %v1152_v19 = vmax.f32 %v7855_v28, %v1136_v57  ;;  %v9475_v39 = vmov %v9472_v46  ;;  %vm9488_vm0 = vmmov %vm9486_vm2 }
 0x1fe   :  { %v1345_v14 = vsel %vm1329_vm4, %v1249_v47, -1e+30  ;;  %5801 = vmatprep.subr.mxu1 %v1363_v21  ;;  %v1362_v50 = vmax.f32 %v1154_v11, %v1346_v17  ;;  %v9476_v38 = vrot.slane %v7855_v28, 1  ;;  %vm1328_vm1 = vcmp.eq.s32.totalorder %v9478_v12, 1  ;;  %v1276_v36 = vpop.permute.xlu1 %1275 }
 0x1ff   :  { %5802 = vmatpush3.msra.mxu1 %v1363_v21  ;;  %v1361_v63 = vmax.f32 %v1153_v62, %v1345_v14  ;;  %v9479_v40 = vrot.slane %v7814_v27, 7  ;;  %v9480_v7 = vrot.slane %v7933_v0, 7  ;;  %vm1114_vm5 = vcmp.eq.s32.totalorder %v1068_v18, 1 }
 0x200   :  { %v1250_v1 = vsel %vm9477_vm8, %v9476_v38, %v9475_v39  ;;  %5803 = vmatprep.subr.mxu1 %v1362_v50  ;;  %v9482_v55 = vrot.slane %v7788_v13, 1  ;;  %v9483_v16 = vrot.slane %v7814_v27, 1  ;;  %vm1322_vm6 = vcmp.eq.s32.totalorder %v1276_v36, 1  ;;  %v949_v13 = vld [vmem:[%s9416_s0 + $0x18] sm:$0xff] }
 0x201   :  { %5804 = vmatpush3.msra.mxu1 %v1362_v50  ;;  %v1344_v24 = vsel %vm1328_vm1, %v1250_v1, -1e+30  ;;  %v1049_v28 = vsel %vm9481_vm13, %v9480_v7, %v9479_v40  ;;  %vm9300_vm3 = vcmask 523264   ;;  %vm1531_vm7 = vcmp.eq.s32.totalorder %v8158_v61, 1  ;;  %vm9489_vm1 = vmmov %vm9488_vm0 }
 0x202   :  { %5805 = vmatprep.subr.mxu1 %v1361_v63  ;;  %v1360_v42 = vmax.f32 %v1152_v19, %v1344_v24  ;;  %v1130_v8 = vsel %vm1114_vm5, %v1049_v28, -1e+30  ;;  %v1256_v0 = vsel %vm9484_vm14, %v9483_v16, %v9482_v55  ;;  %v8156_v43 = vpop.permute.xlu1 %1511  ;;  %v6021_v16 = vld [vmem:[#allocation2 + $0x50] sm:$0xff]   ;;  %vm9490_vm5 = vmmov %vm9488_vm0 }
 0x203   :  { %5806 = vmatpush3.msra.mxu1 %v1361_v63  ;;  %v1146_v29 = vmax.f32 %v7814_v27, %v1130_v8  ;;  %v948_v27 = vld [vmem:[%s9416_s0 + $0x10] sm:$0xff]  ;;  %vm1532_vm12 = vcmp.eq.s32.totalorder %v8156_v43, 1  ;;  %vm9491_vm14 = vmmov %vm9488_vm0 }
 0x204   :  { %5807 = vmatprep.subr.mxu1 %v1360_v42 }
 0x205   :  { %5808 = vmatpush3.msra.mxu1 %v1360_v42 }
 0x206   :  { %5809 = vmatprep.subr.mxu1 %v1359_v25 }
 0x207   :  { %5810 = vmatpush3.msra.mxu1 %v1359_v25  ;;  %v1338_v25 = vsel %vm1322_vm6, %v1256_v0, -1e+30  ;;  %vm9492_vm6 = vcmp.lt.s32.totalorder %v6807_v41, 7 }
 0x208   :  { %5811 = vmatprep.subr.mxu1 %v1358_v33  ;;  %v1354_v26 = vmax.f32 %v1146_v29, %v1338_v25 }
 0x209   :  { %5812 = vmatpush3.msra.mxu1 %v1358_v33  ;;  %v8160_v33 = vpop.permute.xlu1 %1517 }
 0x20a   :  { %5813 = vmatprep.subr.mxu1 %v8055_v9  ;;  %vm1534_vm11 = vcmp.eq.s32.totalorder %v8160_v33, 1 }
 0x20b   :  { %5814 = vmatpush3.msra.mxu1 %v8055_v9  ;;  %v951_v9 = vld [vmem:[%s9416_s0 + $0x28] sm:$0xff]  ;;  %s9499_s0 = sld [smem:[#allocation36_spill]] }
 0x20c   :  { %5815 = vmatprep.subr.mxu1 %v1356_v23 }
 0x20d   :  { %5816 = vmatpush3.msra.mxu1 %v1356_v23  ;;  %v6015_v23 = vld [vmem:[#allocation2 + $0x18] sm:$0xff]   ;;  %v8176_v10 = vpop.permute.xlu1 %1523 }
 0x20e   :  { %5817 = vmatprep.subr.mxu1 %v1355_v49  ;;  %vm1536_vm8 = vcmp.eq.s32.totalorder %v8176_v10, 1 }
 0x20f   :  { %5818 = vmatpush3.msra.mxu1 %v1355_v49  ;;  %v8164_v49 = vpop.permute.xlu0 %1514 }
 0x210   :  { %5819 = vmatprep.subr.mxu1 %v1354_v26  ;;  %vm1533_vm4 = vcmp.eq.s32.totalorder %v8164_v49, 1 }
 0x211   :  { %5820 = vmatpush3.msra.mxu1 %v1354_v26  ;;  %v8195_v5 = vpop.permute.xlu1 %1529  ;;  %v6046_v49 = vld [vmem:[%s9499_s0 + $0xa8] sm:$0xff]  }
 0x212   :  { %5822 = vmatmul.mubr.f32.vlgmr.msra.gmra.mxu1 %v947_v54  ;;  %5833 = vmatprep.subr.bf16.mxu1 %v6015_v23 }
 0x213   :  { %5824 = vmatprep.mubr.f32.mxu1 %v948_v27  ;;  %5834 = vmatpush3.bf16.msra.mxu1 %v6015_v23  ;;  %v8180_v4 = vpop.permute.xlu0 %1520 }
 0x214   :  { %5835 = vmatprep.subr.bf16.mxu1 %v6017_v31  ;;  %vm1535_vm13 = vcmp.eq.s32.totalorder %v8180_v4, 1 }
 0x215   :  { %v8243_v42 = vpop.permute.xlu1 %1587 }
 0x216   :  { %5825 = vmatmul.mubr.f32.gmra.mxu1 %v949_v13 }
 0x217   :  { %5827 = vmatprep.mubr.f32.mxu1 %v950_v20  ;;  %5836 = vmatpush3.bf16.msra.mxu1 %v6017_v31  ;;  %v8206_v57 = vpop.permute.xlu0 %1526 }
 0x218   :  { %5837 = vmatprep.subr.bf16.mxu1 %v6018_v32 }
 0x219   :  { %v8269_v20 = vpop.permute.xlu1 %1593 }
 0x21a   :  { %5828 = vmatmul.mubr.f32.gmra.mxu1 %v951_v9  ;;  %v6022_v9 = vld [vmem:[#allocation2 + $0x48] sm:$0xff]  }
 0x21b   :  { %5830 = vmatprep.mubr.f32.mxu1 %v952_v15  ;;  %5838 = vmatpush3.bf16.msra.mxu1 %v6018_v32  ;;  %v8252_v8 = vpop.permute.xlu0 %1584 }
 0x21c   :  { %5839 = vmatprep.subr.bf16.mxu1 %v6019_v56 }
 0x21e   :  { %5831 = vmatmul.mubr.f32.gmra.mxu1 %v953_v58 }
 0x21f   :  { %5840 = vmatpush3.bf16.msra.mxu1 %v6019_v56  ;;  %v8272_v15 = vpop.permute.xlu0 %1590 }
 0x220   :  { %5865 = vmatprep.subr.bf16.mxu1 %v8153_v2 }
 0x2d2   :  { %v8162_v37 = vpop.f32.mrf.mxu1 }
 0x2d3   :  { %v1484_v46 = vrot.slane %v8162_v37, 7  ;;  %v1560_v0 = vrot.slane %v8162_v37, 1 }
 0x2d4   :  { %v8166_v45 = vpop.f32.mrf.mxu1 }
 0x2d5   :  { %v8170_v52 = vpack.c.bf16 %v8162_v37, %v8166_v45  ;;  %v1483_v35 = vrot.slane %v8166_v45, 7  ;;  %v1559_v25 = vrot.slane %v8166_v45, 1  ;;  %v6023_v45 = vld [vmem:[#allocation2 + $0x40] sm:$0xff]  }
 0x2d6   :  { %v8172_v60 = vpop.f32.mrf.mxu1 }
 0x2d7   :  { %5857 = vmatprep.mubr.msk.bf16.mxu0 %vm9300_vm3, %v8170_v52  ;;  %v1486_v47 = vrot.slane %v8172_v60, 7  ;;  %v1497_v21 = vsel %vm9463_vm9, %v1483_v35, %v1484_v46  ;;  %vm1538_vm9 = vcmp.eq.s32.totalorder %v8195_v5, 1  ;;  %v1562_v56 = vrot.slane %v8172_v60, 1  ;;  %v6048_v5 = vld [vmem:[%s9499_s0 + $0x98] sm:$0xff]  }
 0x2d8   :  { %v8178_v22 = vpop.f32.mrf.mxu1  ;;  %v1540_v24 = vsel %vm1532_vm12, %v1497_v21, 0.0 }
 0x2d9   :  { %v8184_v59 = vpack.c.bf16 %v8172_v60, %v8178_v22  ;;  %v1485_v53 = vrot.slane %v8178_v22, 7  ;;  %v1561_v36 = vrot.slane %v8178_v22, 1 }
 0x2da   :  { %v8186_v34 = vpop.f32.mrf.mxu1 }
 0x2db   :  { %5858 = vmatmul.mubr.msk.bf16.vlgmr.msra.gmra.mxu0 %vm9300_vm3, %v8184_v59  ;;  %v1488_v3 = vrot.slane %v8186_v34, 7  ;;  %v1495_v11 = vsel %vm9485_vm10, %v1485_v53, %v1486_v47  ;;  %v1496_v14 = vsel %vm9486_vm2, %v1484_v46, %v1485_v53  ;;  %v1572_v13 = vsel %vm9492_vm6, %v1560_v0, %v1561_v36  ;;  %v8289_v53 = vpop.permute.xlu1 %1599 }
 0x2dc   :  { %v8192_v44 = vpop.f32.mrf.mxu1  ;;  %v1541_v12 = vsel %vm1533_vm4, %v1496_v14, 0.0  ;;  %v1542_v63 = vsel %vm1534_vm11, %v1495_v11, 0.0  ;;  %vm1537_vm10 = vcmp.eq.s32.totalorder %v8206_v57, 1  ;;  %vm9292_vm2 = vcmp.eq.s32.totalorder %v8243_v42, 1  ;;  %v6051_v57 = vld [vmem:[%s9499_s0 + $0x80] sm:$0xff]  }
 0x2dd   :  { %v1487_v30 = vrot.slane %v8192_v44, 7  ;;  %v8201_v51 = vpack.c.bf16 %v8186_v34, %v8192_v44  ;;  %v1548_v55 = vpack.c.bf16 %v1542_v63, %v1541_v12  ;;  %v1563_v6 = vrot.slane %v8192_v44, 1 }
 0x2de   :  { %v8203_v17 = vpop.f32.mrf.mxu1  ;;  %v1616_v31 = vsel %vm9292_vm2, %v1572_v13, 0.0  ;;  %v1564_v22 = vrot.slane %v8186_v34, 1  ;;  %vm1609_vm2 = vcmp.eq.s32.totalorder %v8272_v15, 1  ;;  %v6037_v13 = vld [vmem:[%s9499_s0 + $0x40] sm:$0xff]  }
 0x2df   :  { %v1490_v50 = vrot.slane %v8203_v17, 7  ;;  %5861 = vmatprep.mubr.msk.bf16.mxu0 %vm9300_vm3, %v8201_v51  ;;  %v1493_v19 = vsel %vm9487_vm15, %v1487_v30, %v1488_v3  ;;  %v1494_v39 = vsel %vm9488_vm0, %v1486_v47, %v1487_v30  ;;  %vm9493_vm15 = vmmov %vm9492_vm6  ;;  %vm1607_vm0 = vcmp.eq.s32.totalorder %v8252_v8, 1  ;;  %v8294_v30 = vpop.permute.xlu0 %1596 }
 0x2e0   :  { %v8218_v62 = vpop.f32.mrf.mxu1  ;;  %v1543_v7 = vsel %vm1535_vm13, %v1494_v39, 0.0  ;;  %v1544_v28 = vsel %vm1536_vm8, %v1493_v19, 0.0  ;;  %v1573_v58 = vsel %vm9493_vm15, %v1559_v25, %v1560_v0  ;;  %vm9293_vm15 = vcmp.eq.s32.totalorder %v8289_v53, 1  ;;  %v6032_v0 = vld [vmem:[%s9499_s0 + $0x20] sm:$0xff]  }
 0x2e1   :  { %v8227_v38 = vpack.c.bf16 %v8203_v17, %v8218_v62  ;;  %v1498_v1 = vsel %vm9489_vm1, %v1490_v50, %v1483_v35  ;;  %v1489_v18 = vrot.slane %v8218_v62, 7  ;;  %v1549_v26 = vpack.c.bf16 %v1544_v28, %v1543_v7  ;;  %vm9494_vm1 = vmmov %vm9492_vm6  ;;  %v6026_v7 = vld [vmem:[%s9499_s0 + $0x38] sm:$0xff]   ;;  %v6027_v28 = vld [vmem:[%s9499_s0 + $0x68] sm:$0xff]  }
 0x2e2   :  { %v1539_v40 = vsel %vm1531_vm7, %v1498_v1, 0.0  ;;  %v1565_v32 = vrot.slane %v8218_v62, 1  ;;  %v1615_v37 = vsel %vm1607_vm0, %v1573_v58, 0.0  ;;  %v1570_v44 = vsel %vm9494_vm1, %v1562_v56, %v1563_v6  ;;  %vm9496_vm6 = vmmov %vm9494_vm1  ;;  %v8321_v1 = vpop.permute.xlu1 %1605  ;;  %5881 = vmatprep.subr.bf16.mxu0 %v6026_v7  ;;  %v8378_v58 = vld [vmem:[#allocation4 + $0x18] sm:$0xff]  }
 0x2e3   :  { %5862 = vmatmul.mubr.msk.bf16.gmra.mxu0 %vm9300_vm3, %v8227_v38  ;;  %v1547_v29 = vpack.c.bf16 %v1540_v24, %v1539_v40  ;;  %v1491_v54 = vsel %vm9490_vm5, %v1489_v18, %v1490_v50  ;;  %v1492_v27 = vsel %vm9491_vm14, %v1488_v3, %v1489_v18  ;;  %v1623_v35 = vpack.c.bf16 %v1616_v31, %v1615_v37  ;;  %vm9495_vm5 = vmmov %vm9494_vm1  ;;  %v8316_v62 = vpop.permute.xlu0 %1602  ;;  %v6024_v18 = vld [vmem:[%s9499_s0 + $0x78] sm:$0xff]   ;;  %v6025_v40 = vld [vmem:[%s9499_s0 + $0x70] sm:$0xff]  }
 0x2e4   :  { %v1545_v48 = vsel %vm1537_vm10, %v1492_v27, 0.0  ;;  %v1546_v23 = vsel %vm1538_vm9, %v1491_v54, 0.0  ;;  %v1568_v60 = vsel %vm9495_vm5, %v1564_v22, %v1565_v32  ;;  %vm9297_vm14 = vcmp.eq.s32.totalorder %v8269_v20, 1  ;;  %5882 = vmatpush3.bf16.msra.mxu0 %v6026_v7  ;;  %v6035_v54 = vld [vmem:[%s9499_s0 + $0x48] sm:$0xff]   ;;  %v6036_v27 = vld [vmem:[%s9499_s0 + $0x10] sm:$0xff]  }
 0x2e5   :  { %5841 = vmatprep.mubr.msk.bf16.mxu1 %vm9300_vm3, %v1547_v29  ;;  %v1571_v34 = vsel %vm9496_vm6, %v1561_v36, %v1562_v56  ;;  %v1569_v46 = vsel %vm9494_vm1, %v1563_v6, %v1564_v22  ;;  %v1618_v47 = vsel %vm9297_vm14, %v1570_v44, 0.0  ;;  %v1620_v3 = vsel %vm9293_vm15, %v1568_v60, 0.0  ;;  %vm9497_vm6 = vmmov %vm9494_vm1  ;;  %v6028_v36 = vld [vmem:[%s9499_s0 + $0x30] sm:$0xff]   ;;  %v6029_v29 = vld [vmem:[%s9499_s0 + $0x60] sm:$0xff]  }
 0x2e6   :  { %5842 = vmatmul.mubr.msk.bf16.vlgmr.msra.gmra.mxu1 %vm9300_vm3, %v1548_v55  ;;  %vm9294_vm5 = vcmp.eq.s32.totalorder %v8294_v30, 1  ;;  %v1617_v21 = vsel %vm1609_vm2, %v1571_v34, 0.0  ;;  %v1566_v14 = vrot.slane %v8203_v17, 1  ;;  %vm9296_vm1 = vcmp.eq.s32.totalorder %v8316_v62, 1  ;;  %vm9498_vm15 = vmmov %vm9497_vm6  ;;  %5883 = vmatprep.subr.bf16.mxu0 %v6028_v36  ;;  %v6030_v55 = vld [vmem:[%s9499_s0 + $0x28] sm:$0xff]  }
 0x2e7   :  { %5845 = vmatprep.mubr.msk.bf16.mxu1 %vm9300_vm3, %v1549_v26  ;;  %5866 = vmatpush3.bf16.msra.mxu1 %v8153_v2  ;;  %v1550_v2 = vpack.c.bf16 %v1546_v23, %v1545_v48  ;;  %v1624_v11 = vpack.c.bf16 %v1618_v47, %v1617_v21  ;;  %v1619_v50 = vsel %vm9294_vm5, %v1569_v46, 0.0  ;;  %vm9295_vm5 = vcmp.eq.s32.totalorder %v8321_v1, 1  ;;  %v6034_v26 = vld [vmem:[%s9499_s0 + $0x18] sm:$0xff]   ;;  %v6040_v48 = vld [vmem:[%s9499_s0] sm:$0xff]  }
 0x2e8   :  { %5867 = vmatprep.subr.bf16.mxu1 %v6021_v16  ;;  %v1625_v19 = vpack.c.bf16 %v1620_v3, %v1619_v50  ;;  %v1567_v39 = vsel %vm9497_vm6, %v1565_v32, %v1566_v14  ;;  %v1574_v17 = vsel %vm9498_vm15, %v1566_v14, %v1559_v25  ;;  %5884 = vmatpush3.bf16.msra.mxu0 %v6028_v36  ;;  %v6033_v25 = vld [vmem:[%s9499_s0 + $0x50] sm:$0xff]   ;;  %v8387_v23 = vld [vmem:[%s9499_s0 + $0xb8] sm:$0xff]   ;;  %vm9501_vm15 = vcmp.lt.s32.totalorder %v6807_v41, 1 }
 0x2e9   :  { %v1621_v12 = vsel %vm9296_vm1, %v1567_v39, 0.0  ;;  %v1622_v63 = vsel %vm9295_vm5, %v1574_v17, 0.0  ;;  %5885 = vmatprep.subr.bf16.mxu0 %v6030_v55  ;;  %vm9502_vm6 = vmmov %vm9501_vm15 }
 0x2ea   :  { %v1626_v24 = vpack.c.bf16 %v1622_v63, %v1621_v12  ;;  %vm9503_vm5 = vmmov %vm9502_vm6 }
 0x2eb   :  { %5868 = vmatpush3.bf16.msra.mxu1 %v6021_v16  ;;  %v6031_v16 = vld [vmem:[%s9499_s0 + $0x58] sm:$0xff]   ;;  %vm9504_vm1 = vmmov %vm9503_vm5 }
 0x2ec   :  { %5869 = vmatprep.subr.bf16.mxu1 %v6022_v9  ;;  %5886 = vmatpush3.bf16.msra.mxu0 %v6030_v55  ;;  %vm9506_vm14 = vmmov %vm9504_vm1 }
 0x2ed   :  { %5887 = vmatprep.subr.bf16.mxu0 %v6032_v0 }
 0x2ee   :  { %5846 = vmatmul.mubr.msk.bf16.gmra.mxu1 %vm9300_vm3, %v1550_v2 }
 0x2ef   :  { %5870 = vmatpush3.bf16.msra.mxu1 %v6022_v9  ;;  %5873 = vmatprep.mubr.msk.bf16.mxu1 %vm9300_vm3, %v1623_v35  ;;  %v6038_v9 = vld [vmem:[%s9499_s0 + $0x8] sm:$0xff]  }
 0x2f0   :  { %5871 = vmatprep.subr.bf16.mxu1 %v6023_v45  ;;  %5888 = vmatpush3.bf16.msra.mxu0 %v6032_v0 }
 0x2f1   :  { %5889 = vmatprep.subr.bf16.mxu0 %v6034_v26 }
 0x2f3   :  { %5872 = vmatpush3.bf16.msra.mxu1 %v6023_v45 }
 0x2f4   :  { %5905 = vmatprep.subr.bf16.mxu1 %v6024_v18  ;;  %5890 = vmatpush3.bf16.msra.mxu0 %v6034_v26 }
 0x2f5   :  { %5891 = vmatprep.subr.bf16.mxu0 %v6036_v27 }
 0x2f6   :  { %5874 = vmatmul.mubr.msk.bf16.vlgmr.msra.gmra.mxu1 %vm9300_vm3, %v1624_v11 }
 0x2f7   :  { %5877 = vmatprep.mubr.msk.bf16.mxu1 %vm9300_vm3, %v1625_v19  ;;  %5906 = vmatpush3.bf16.msra.mxu1 %v6024_v18 }
 0x2f8   :  { %5907 = vmatprep.subr.bf16.mxu1 %v6025_v40  ;;  %5892 = vmatpush3.bf16.msra.mxu0 %v6036_v27 }
 0x2f9   :  { %5893 = vmatprep.subr.bf16.mxu0 %v6038_v9 }
 0x2fb   :  { %5908 = vmatpush3.bf16.msra.mxu1 %v6025_v40 }
 0x2fc   :  { %5909 = vmatprep.subr.bf16.mxu1 %v6027_v28  ;;  %5894 = vmatpush3.bf16.msra.mxu0 %v6038_v9 }
 0x2fd   :  { %5895 = vmatprep.subr.bf16.mxu0 %v6040_v48 }
 0x2fe   :  { %5878 = vmatmul.mubr.msk.bf16.gmra.mxu1 %vm9300_vm3, %v1626_v24  ;;  %v5210_v24 = vld [vmem:[%s9500_s18] ss:$0 sm:$0xff] }
 0x2ff   :  { %5910 = vmatpush3.bf16.msra.mxu1 %v6027_v28 }
 0x300   :  { %5911 = vmatprep.subr.bf16.mxu1 %v6029_v29  ;;  %5896 = vmatpush3.bf16.msra.mxu0 %v6040_v48 }
 0x301   :  { %5929 = vmatprep.subr.bf16.mxu0 %v8387_v23 }
 0x303   :  { %5912 = vmatpush3.bf16.msra.mxu1 %v6029_v29 }
 0x304   :  { %5913 = vmatprep.subr.bf16.mxu1 %v6031_v16 }
 0x307   :  { %5914 = vmatpush3.bf16.msra.mxu1 %v6031_v16 }
 0x308   :  { %5915 = vmatprep.subr.bf16.mxu1 %v6033_v25 }
 0x30b   :  { %5916 = vmatpush3.bf16.msra.mxu1 %v6033_v25 }
 0x30c   :  { %5917 = vmatprep.subr.bf16.mxu1 %v6035_v54 }
 0x30f   :  { %5918 = vmatpush3.bf16.msra.mxu1 %v6035_v54 }
 0x310   :  { %5919 = vmatprep.subr.bf16.mxu1 %v6037_v13 }
 0x313   :  { %5920 = vmatpush3.bf16.msra.mxu1 %v6037_v13 }
 0x314   :  { %5953 = vmatprep.subr.bf16.mxu1 %v8378_v58 }
 0x39b   :  { %v5859_v6 = vpop.f32.mrf.mxu0 }
 0x39d   :  { %v1820_v56 = vpop.f32.mrf.mxu0 }
 0x39f   :  { %v5860_v45 = vpop.f32.mrf.mxu0 }
 0x3a1   :  { %v1823_v44 = vpop.f32.mrf.mxu0 }
 0x3a3   :  { %v5863_v46 = vpop.f32.mrf.mxu0 }
 0x3a5   :  { %v1836_v50 = vpop.f32.mrf.mxu0 }
 0x3a6   :  { %v5843_v31 = vpop.f32.mrf.mxu1 }
 0x3a7   :  { %v1829_v11 = vadd.f32 %v5859_v6, %v5843_v31  ;;  %v5864_v7 = vpop.f32.mrf.mxu0 }
 0x3a8   :  { %v1719_v32 = vpop.f32.mrf.mxu1 }
 0x3a9   :  { %v1821_v3 = vadd.f32 %v1820_v56, %v1719_v32  ;;  %v1839_v13 = vpop.f32.mrf.mxu0 }
 0x3aa   :  { %v5844_v2 = vpop.f32.mrf.mxu1 }
 0x3ab   :  { %v1832_v14 = vadd.f32 %v5860_v45, %v5844_v2 }
 0x3ac   :  { %v1722_v37 = vpop.f32.mrf.mxu1 }
 0x3ad   :  { %v1824_v63 = vadd.f32 %v1823_v44, %v1722_v37 }
 0x3ae   :  { %v5847_v22 = vpop.f32.mrf.mxu1 }
 0x3af   :  { %v1845_v16 = vadd.f32 %v5863_v46, %v5847_v22 }
 0x3b0   :  { %v1735_v35 = vpop.f32.mrf.mxu1 }
 0x3b1   :  { %v1837_v0 = vadd.f32 %v1836_v50, %v1735_v35 }
 0x3b2   :  { %v5848_v60 = vpop.f32.mrf.mxu1 }
 0x3b3   :  { %v1848_v54 = vadd.f32 %v5864_v7, %v5848_v60 }
 0x3b4   :  { %v1738_v34 = vpop.f32.mrf.mxu1 }
 0x3b5   :  { %v1840_v56 = vadd.f32 %v1839_v13, %v1738_v34  ;;  %v6044_v13 = vld [vmem:[%s9499_s0 + $0xb0] sm:$0xff]  }
 0x3b6   :  { %v5875_v47 = vpop.f32.mrf.mxu1 }
 0x3b7   :  { %v1963_v17 = vadd.f32 %v5875_v47, %v1829_v11  ;;  %v6041_v47 = vld [vmem:[#allocation4 + $0x10] sm:$0xff]  }
 0x3b8   :  { %v1930_v21 = vpop.f32.mrf.mxu1 }
 0x3b9   :  { %v1961_v19 = vadd.f32 %v1930_v21, %v1821_v3  ;;  %v1978_v55 = vadd.f32 %v5210_v24, %v1963_v17 }
 0x3ba   :  { %v5876_v39 = vpop.f32.mrf.mxu1 }
 0x3bb   :  { %v1964_v12 = vadd.f32 %v5876_v39, %v1832_v14  ;;  %v1976_v28 = vadd.f32 %v5210_v24, %v1961_v19  ;;  %v8399_v2 = vmax.f32 %v1978_v55, 0.0 }
 0x3bc   :  { %v1933_v18 = vpop.f32.mrf.mxu1 }
 0x3bd   :  { %v1979_v40 = vadd.f32 %v5210_v24, %v1964_v12  ;;  %v1962_v36 = vadd.f32 %v1933_v18, %v1824_v63  ;;  %v8395_v9 = vmax.f32 %v1976_v28, 0.0  ;;  %v1994_v19 = vrot.slane %v8399_v2, 7  ;;  %v6043_v63 = vld [vmem:[#allocation4 + $0x8] sm:$0xff]  }
 0x3be   :  { %v5879_v29 = vpop.f32.mrf.mxu1  ;;  %v2022_v61 = vrot.slane %v8399_v2, 1 }
 0x3bf   :  { %v1977_v25 = vadd.f32 %v5210_v24, %v1962_v36  ;;  %v8393_v27 = vmax.f32 %v1979_v40, 0.0  ;;  %v1967_v6 = vadd.f32 %v5879_v29, %v1845_v16  ;;  %v1992_v18 = vrot.slane %v8395_v9, 7 }
 0x3c0   :  { %v1946_v26 = vpop.f32.mrf.mxu1  ;;  %v2020_v33 = vrot.slane %v8395_v9, 1 }
 0x3c1   :  { %v8397_v48 = vmax.f32 %v1977_v25, 0.0  ;;  %v1965_v31 = vadd.f32 %v1946_v26, %v1837_v0  ;;  %v2049_v44 = vpack.c.bf16 %v8393_v27, %v8399_v2  ;;  %v1982_v3 = vadd.f32 %v5210_v24, %v1967_v6  ;;  %v6045_v6 = vld [vmem:[#allocation4] sm:$0xff]  }
 0x3c2   :  { %v5880_v32 = vpop.f32.mrf.mxu1  ;;  %v1995_v50 = vrot.slane %v8393_v27, 7 }
 0x3c3   :  { %v1968_v37 = vadd.f32 %v5880_v32, %v1848_v54  ;;  %v1980_v45 = vadd.f32 %v5210_v24, %v1965_v31  ;;  %v2048_v35 = vpack.c.bf16 %v8397_v48, %v8395_v9  ;;  %v1993_v34 = vrot.slane %v8397_v48, 7 }
 0x3c4   :  { %v1949_v22 = vpop.f32.mrf.mxu1  ;;  %v8418_v40 = vmax.f32 %v1982_v3, 0.0  ;;  %v2004_v28 = vsel %vm9502_vm6, %v1994_v19, %v1995_v50  ;;  %v2021_v31 = vrot.slane %v8397_v48, 1  ;;  %v6047_v48 = vld [vmem:[%s9499_s0 + $0xa0] sm:$0xff]   ;;  %v6072_v3 = vld [vmem:[%s9253_s16 + $0x54] ss:$8 sps:$4 sm:$0xff]  }
 0x3c5   :  { %v1983_v60 = vadd.f32 %v5210_v24, %v1968_v37  ;;  %v1966_v46 = vadd.f32 %v1949_v22, %v1840_v56  ;;  %v8405_v21 = vmax.f32 %v1980_v45, 0.0  ;;  %5921 = vmatprep.mubr.bf16.mxu1 %v2048_v35  ;;  %v2006_v36 = vsel %vm9503_vm5, %v1992_v18, %v1993_v34  ;;  %vm5235_vm5 = vmpackc.low %vm1532_vm12, %vm1531_vm7 }
 0x3c6   :  { %5922 = vmatmul.mubr.bf16.vlgmr.msra.gmra.mxu1 %v2049_v44  ;;  %vm5241_vm12 = vmpackc.low %vm1536_vm8, %vm1535_vm13  ;;  %v1998_v43 = vrot.slane %v8418_v40, 7  ;;  %v2023_v56 = vrot.slane %v8393_v27, 1 }
 0x3c7   :  { %v8408_v11 = vmax.f32 %v1983_v60, 0.0  ;;  %v1981_v14 = vadd.f32 %v5210_v24, %v1966_v46  ;;  %5954 = vmatpush3.bf16.msra.mxu1 %v8378_v58  ;;  %v1996_v39 = vrot.slane %v8405_v21, 7  ;;  %v2005_v24 = vsel %vm9501_vm15, %v1993_v34, %v1994_v19  ;;  %vm9505_vm15 = vmmov %vm9504_vm1  ;;  %v6078_v34 = vld [vmem:[%s9253_s16 + $0x44] ss:$8 sps:$4 sm:$0xff]   ;;  %v6082_v19 = vld [vmem:[%s9253_s16 + $0x30] ss:$8 sps:$4 sm:$0xff]  }
 0x3c8   :  { %5955 = vmatprep.subr.bf16.mxu1 %v6041_v47  ;;  %v5239_v26 = vpack.c.bf16 %v2004_v28, %v2005_v24  ;;  %vm9507_vm7 = vmmov %vm9502_vm6 }
 0x3c9   :  { %v1999_v17 = vrot.slane %v8408_v11, 7  ;;  %v8415_v12 = vmax.f32 %v1981_v14, 0.0  ;;  %v2051_v55 = vpack.c.bf16 %v8408_v11, %v8418_v40  ;;  %v2003_v25 = vsel %vm9506_vm14, %v1995_v50, %v1996_v39  ;;  %vm9510_vm8 = vmmov %vm9502_vm6  ;;  %v6084_v14 = vld [vmem:[%s9253_s16 + $0x34] ss:$8 sps:$4 sm:$0xff]   ;;  %v8559_v50 = vpop.permute.xlu0 %2689 }
 0x3ca   :  { %vm5244_vm13 = vmpackc.low %vm1538_vm9, %vm1537_vm10  ;;  %vm9511_vm14 = vcmp.eq.s32.totalorder %v8243_v42, 1  ;;  %v2024_v42 = vrot.slane %v8405_v21, 1  ;;  %v2027_v27 = vrot.slane %v8408_v11, 1  ;;  %v6076_v11 = vld [vmem:[%s9253_s16 + $0x40] ss:$8 sps:$4 sm:$0xff]  }
 0x3cb   :  { %v1997_v7 = vrot.slane %v8415_v12, 7  ;;  %v2050_v58 = vpack.c.bf16 %v8415_v12, %v8405_v21  ;;  %5956 = vmatpush3.bf16.msra.mxu1 %v6041_v47  ;;  %v2007_v29 = vsel %vm9504_vm1, %v1999_v17, %v1992_v18  ;;  %vm5238_vm1 = vmpackc.low %vm1534_vm11, %vm1533_vm4  ;;  %vm9508_vm11 = vcmp.lt.s32.totalorder %v6807_v41, 7  ;;  %v6064_v47 = vld [vmem:[%s9253_s16 + $0x60] ss:$8 sps:$4 sm:$0xff]   ;;  %v6070_v21 = vld [vmem:[%s9253_s16 + $0x50] ss:$8 sps:$4 sm:$0xff]  }
 0x3cc   :  { %v5236_v16 = vpack.c.bf16 %v2006_v36, %v2007_v29  ;;  %5957 = vmatprep.subr.bf16.mxu1 %v6043_v63  ;;  %v2033_v4 = vsel %vm9508_vm11, %v2021_v31, %v2022_v61  ;;  %vm9509_vm4 = vmmov %vm9508_vm11  ;;  %v2025_v8 = vrot.slane %v8415_v12, 1 }
 0x3cd   :  { %5925 = vmatprep.mubr.bf16.mxu1 %v2050_v58  ;;  %v2002_v0 = vsel %vm9505_vm15, %v1996_v39, %v1997_v7  ;;  %v2001_v10 = vsel %vm9507_vm7, %v1997_v7, %v1998_v43  ;;  %vm5279_vm6 = vmpackc.low %vm9511_vm14, %vm1607_vm0  ;;  %vm9518_vm7 = vcmp.eq.s32.totalorder %v8289_v53, 1  ;;  %v6058_v53 = vld [vmem:[%s9253_s16 + $0x70] ss:$8 sps:$4 sm:$0xff]   ;;  %v8564_v39 = vpop.permute.xlu1 %2686 }
 0x3ce   :  { %v5242_v54 = vpack.c.bf16 %v2002_v0, %v2003_v25  ;;  %5897 = vmatprep.mubr.msk.bf16.mxu0 %vm5235_vm5, %v5236_v16  ;;  %5926 = vmatmul.mubr.bf16.gmra.mxu1 %v2051_v55  ;;  %vm9512_vm9 = vmmov %vm9509_vm4  ;;  %vm9516_vm5 = vcmp.eq.s32.totalorder %v8269_v20, 1  ;;  %v9523_v20 = vmov 0  }
 0x3cf   :  { %5898 = vmatmul.mubr.msk.bf16.vlgmr.msra.gmra.mxu0 %vm5238_vm1, %v5239_v26  ;;  %5958 = vmatpush3.bf16.msra.mxu1 %v6043_v63  ;;  %v2031_v2 = vsel %vm9512_vm9, %v2023_v56, %v2024_v42  ;;  %vm9513_vm10 = vmmov %vm9509_vm4  ;;  %vm2650_vm9 = vcmp.lt.s32.totalorder %v6807_v41, 2 }
 0x3d0   :  { %5930 = vmatpush3.bf16.msra.mxu0 %v8387_v23  ;;  %5961 = vmatprep.mubr.msk.bf16.mxu1 %vm9300_vm3, %v8170_v52  ;;  %v2034_v52 = vsel %vm9509_vm4, %v2020_v33, %v2021_v31  ;;  %v2000_v23 = vsel %vm9510_vm8, %v1998_v43, %v1999_v17  ;;  %vm9514_vm0 = vmmov %vm9509_vm4  ;;  %v8566_v17 = vpop.permute.xlu0 %2793 }
 0x3d1   :  { %5901 = vmatprep.mubr.msk.bf16.mxu0 %vm5241_vm12, %v5242_v54  ;;  %5931 = vmatprep.subr.bf16.mxu0 %v6044_v13  ;;  %v5245_v9 = vpack.c.bf16 %v2000_v23, %v2001_v10  ;;  %v5280_v32 = vpack.c.bf16 %v2033_v4, %v2034_v52  ;;  %v2030_v45 = vsel %vm9514_vm0, %v2024_v42, %v2025_v8  ;;  %vm9515_vm15 = vmmov %vm9514_vm0  ;;  %vm9517_vm12 = vcmp.eq.s32.totalorder %v8294_v30, 1  ;;  %v8568_v18 = vpop.permute.xlu1 %2683 }
 0x3d2   :  { %5959 = vmatprep.subr.bf16.mxu1 %v6045_v6  ;;  %v2032_v22 = vsel %vm9515_vm15, %v2022_v61, %v2023_v56  ;;  %vm5282_vm1 = vmpackc.low %vm9516_vm5, %vm1609_vm2  ;;  %vm9522_vm2 = vcmp.eq.s32.totalorder %v8321_v1, 1  ;;  %v6496_v30 = vmov 0.0   ;;  %v6066_v1 = vld [vmem:[%s9253_s16 + $0x64] ss:$8 sps:$4 sm:$0xff]   ;;  %vm2698_vm15 = vcmp.eq.s32.totalorder %v8559_v50, 1 }
 0x3d3   :  { %5960 = vmatpush3.bf16.msra.mxu1 %v6045_v6  ;;  %v5283_v35 = vpack.c.bf16 %v2031_v2, %v2032_v22  ;;  %vm5285_vm11 = vmpackc.low %vm9518_vm7, %vm9517_vm12  ;;  %vm2802_vm5 = vcmp.eq.s32.totalorder %v8566_v17, 1  ;;  %vm9524_vm7 = vcmp.lt.s32.totalorder %v6807_v41, 1 }
 0x3d4   :  { %5932 = vmatpush3.bf16.msra.mxu0 %v6044_v13  ;;  %vm9519_vm4 = vmmov %vm9514_vm0  ;;  %5969 = vmatprep.subr.mxu1 %v6496_v30 }
 0x3d5   :  { %5933 = vmatprep.subr.bf16.mxu0 %v6046_v49  ;;  %vm9520_vm8 = vmmov %vm9514_vm0  ;;  %v8572_v28 = vpop.permute.xlu1 %2897 }
 0x3d6   :  { %5962 = vmatmul.mubr.msk.bf16.vlgmr.msra.gmra.mxu1 %vm9300_vm3, %v8184_v59  ;;  %v6049_v59 = vld [vmem:[%s9499_s0 + $0x90] sm:$0xff]   ;;  %v2035_v46 = vsel %vm9520_vm8, %v2027_v27, %v2020_v33  ;;  %vm2906_vm12 = vcmp.eq.s32.totalorder %v8572_v28, 1  ;;  %vm2696_vm8 = vcmp.eq.s32.totalorder %v8568_v18, 1 }
 0x3d7   :  { %5902 = vmatmul.mubr.msk.bf16.gmra.mxu0 %vm5244_vm13, %v5245_v9  ;;  %5965 = vmatprep.mubr.msk.bf16.mxu1 %vm9300_vm3, %v8201_v51  ;;  %v6050_v51 = vld [vmem:[%s9499_s0 + $0x88] sm:$0xff]   ;;  %vm9521_vm13 = vcmp.eq.s32.totalorder %v8316_v62, 1  ;;  %v6060_v62 = vld [vmem:[%s9253_s16 + $0x74] ss:$8 sps:$4 sm:$0xff]  }
 0x3d8   :  { %5934 = vmatpush3.bf16.msra.mxu0 %v6046_v49  ;;  %5945 = vmatprep.mubr.msk.bf16.mxu0 %vm5279_vm6, %v5280_v32  ;;  %vm5288_vm14 = vmpackc.low %vm9522_vm2, %vm9521_vm13  ;;  %vm9298_vm6 = vmmov 0  }
 0x3d9   :  { %5935 = vmatprep.subr.bf16.mxu0 %v6047_v48  ;;  %v8576_v16 = vpop.permute.xlu1 %2787 }
 0x3dc   :  { %5936 = vmatpush3.bf16.msra.mxu0 %v6047_v48 }
 0x3dd   :  { %5937 = vmatprep.subr.bf16.mxu0 %v6048_v5  ;;  %v8580_v6 = vpop.permute.xlu1 %3002 }
 0x3de   :  { %5966 = vmatmul.mubr.msk.bf16.gmra.mxu1 %vm9300_vm3, %v8227_v38  ;;  %v2026_v38 = vrot.slane %v8418_v40, 1  ;;  %v8570_v40 = vpop.permute.xlu0 %2790  ;;  %vm9525_vm3 = vmmov %vm9524_vm7 }
 0x3df   :  { %5985 = vmatprep.mubr.msk.f32.mxu1 %vm9298_vm6, %v6496_v30  ;;  %vm2801_vm13 = vcmp.eq.s32.totalorder %v8570_v40, 1 }
 0x3e0   :  { %5938 = vmatpush3.bf16.msra.mxu0 %v6048_v5  ;;  %v2029_v37 = vsel %vm9513_vm10, %v2025_v8, %v2026_v38  ;;  %v2028_v60 = vsel %vm9519_vm4, %v2026_v38, %v2027_v27  ;;  %v8599_v38 = vld [vmem:[%s9249_s12] ss:$0 sm:$0xff]  ;;  %vm3011_vm4 = vcmp.eq.s32.totalorder %v8580_v6, 1 }
 0x3e1   :  { %5939 = vmatprep.subr.bf16.mxu0 %v6049_v59  ;;  %v5286_v44 = vpack.c.bf16 %v2029_v37, %v2030_v45  ;;  %v5289_v15 = vpack.c.bf16 %v2035_v46, %v2028_v60  ;;  %v8584_v33 = vpop.permute.xlu1 %2784 }
 0x3e2   :  { %v8574_v36 = vpop.permute.xlu0 %2680  ;;  %vm2799_vm6 = vcmp.eq.s32.totalorder %v8584_v33, 1 }
 0x3e4   :  { %5940 = vmatpush3.bf16.msra.mxu0 %v6049_v59 }
 0x3e5   :  { %5941 = vmatprep.subr.bf16.mxu0 %v6050_v51  ;;  %v8588_v9 = vpop.permute.xlu1 %2999 }
 0x3e6   :  { %v8578_v25 = vpop.permute.xlu0 %2894 }
 0x3e7   :  { %vm2905_vm2 = vcmp.eq.s32.totalorder %v8578_v25, 1 }
 0x3e8   :  { %5942 = vmatpush3.bf16.msra.mxu0 %v6050_v51 }
 0x3e9   :  { %5943 = vmatprep.subr.bf16.mxu0 %v6051_v57  ;;  %v8592_v59 = vpop.permute.xlu1 %2781 }
 0x3ea   :  { %v8582_v31 = vpop.permute.xlu0 %2677  ;;  %vm2798_vm0 = vcmp.eq.s32.totalorder %v8592_v59, 1 }
 0x3eb   :  { %vm2694_vm10 = vcmp.eq.s32.totalorder %v8582_v31, 1 }
 0x3ec   :  { %5944 = vmatpush3.bf16.msra.mxu0 %v6051_v57 }
 0x3ed   :  { %3290 = vmatprep.subr.bf16.mxu0 %v6060_v62  ;;  %v8605_v46 = vpop.permute.xlu1 %2996 }
 0x3ee   :  { %v8586_v10 = vpop.permute.xlu0 %2891 }
 0x3ef   :  { %5946 = vmatmul.mubr.msk.bf16.vlgmr.msra.gmra.mxu0 %vm5282_vm1, %v5283_v35  ;;  %v5292_v35 = vld [vmem:[%s9251_s14] ss:$0 sm:$0xff]  ;;  %vm2963_vm1 = vcmp.lt.s32.totalorder %v6807_v41, 6 }
 0x3f0   :  { %5949 = vmatprep.mubr.msk.bf16.mxu0 %vm5285_vm11, %v5286_v44  ;;  %3291 = vmatpush1.bf16.msra.mxu0 %v6058_v53  ;;  %vm2697_vm11 = vcmp.eq.s32.totalorder %v8564_v39, 1 }
 0x3f1   :  { %3292 = vmatprep.subr.bf16.mxu0 %v6066_v1 }
 0x3f2   :  { %v8590_v48 = vpop.permute.xlu0 %2674 }
 0x3f4   :  { %3293 = vmatpush1.bf16.msra.mxu0 %v6064_v47 }
 0x3f5   :  { %3294 = vmatprep.subr.bf16.mxu0 %v6072_v3 }
 0x3f6   :  { %v8594_v57 = vpop.permute.xlu0 %2888 }
 0x3f7   :  { %5950 = vmatmul.mubr.msk.bf16.gmra.mxu0 %vm5288_vm14, %v5289_v15  ;;  %v8610_v15 = vld [vmem:[%s9252_s15] ss:$0 sm:$0xff]  ;;  %vm3010_vm14 = vcmp.eq.s32.totalorder %v8588_v9, 1 }
 0x3f8   :  { %3322 = vmatprep.mubr.bf16.mxu0 %v9523_v20  ;;  %3295 = vmatpush1.bf16.msra.mxu0 %v6070_v21 }
 0x3f9   :  { %3296 = vmatprep.subr.bf16.mxu0 %v6078_v34 }
 0x3fa   :  { %v8612_v62 = vpop.permute.xlu0 %2671 }
 0x3fc   :  { %3297 = vmatpush1.bf16.msra.mxu0 %v6076_v11 }
 0x3fd   :  { %3298 = vmatprep.subr.bf16.mxu0 %v6084_v14 }
 0x400   :  { %3299 = vmatpush1.bf16.msra.mxu0 %v6082_v19 }
 0x486   :  { %v5923_v12 = vpop.f32.mrf.mxu1 }
 0x488   :  { %v2280_v63 = vpop.f32.mrf.mxu1 }
 0x48a   :  { %v5924_v24 = vpop.f32.mrf.mxu1 }
 0x48c   :  { %v2283_v7 = vpop.f32.mrf.mxu1 }
 0x48e   :  { %v5927_v58 = vpop.f32.mrf.mxu1 }
 0x48f   :  { %v5899_v29 = vpop.f32.mrf.mxu0 }
 0x490   :  { %v2296_v55 = vpop.f32.mrf.mxu1  ;;  %v2289_v42 = vadd.f32 %v5923_v12, %v5899_v29 }
 0x491   :  { %v2167_v0 = vpop.f32.mrf.mxu0 }
 0x492   :  { %v5928_v26 = vpop.f32.mrf.mxu1  ;;  %v2281_v2 = vadd.f32 %v2280_v63, %v2167_v0 }
 0x493   :  { %v5900_v54 = vpop.f32.mrf.mxu0 }
 0x494   :  { %v2299_v13 = vpop.f32.mrf.mxu1  ;;  %v2292_v22 = vadd.f32 %v5924_v24, %v5900_v54 }
 0x495   :  { %v2170_v43 = vpop.f32.mrf.mxu0 }
 0x496   :  { %v5963_v61 = vpop.f32.mrf.mxu1  ;;  %v2284_v1 = vadd.f32 %v2283_v7, %v2170_v43 }
 0x497   :  { %v5903_v49 = vpop.f32.mrf.mxu0  ;;  %v2554_v34 = vadd.f32 %v5963_v61, %v5292_v35 }
 0x498   :  { %v2545_v4 = vpop.f32.mrf.mxu1  ;;  %v2305_v11 = vadd.f32 %v5927_v58, %v5903_v49  ;;  %v8620_v49 = vpop.permute.xlu1 %2778 }
 0x499   :  { %v2183_v52 = vpop.f32.mrf.mxu0  ;;  %v2546_v0 = vadd.f32 %v5292_v35, %v2545_v4 }
 0x49a   :  { %v5964_v23 = vpop.f32.mrf.mxu1  ;;  %v2297_v54 = vadd.f32 %v2296_v55, %v2183_v52  ;;  %v8623_v55 = vpop.permute.xlu0 %2885 }
 0x49b   :  { %v5904_v32 = vpop.f32.mrf.mxu0 }
 0x49c   :  { %v2548_v5 = vpop.f32.mrf.mxu1 }
 0x49d   :  { %v2186_v51 = vpop.f32.mrf.mxu0 }
 0x49e   :  { %v5967_v8 = vpop.f32.mrf.mxu1 }
 0x4a0   :  { %v2561_v27 = vpop.f32.mrf.mxu1 }
 0x4a2   :  { %v5968_v19 = vpop.f32.mrf.mxu1 }
 0x4af   :  { %v5947_v56 = vpop.f32.mrf.mxu0 }
 0x4b0   :  { %v2443_v37 = vadd.f32 %v5947_v56, %v2289_v42  ;;  %v2557_v42 = vadd.f32 %v5964_v23, %v5292_v35  ;;  %v2308_v56 = vadd.f32 %v5928_v26, %v5904_v32  ;;  %v2564_v26 = vpop.f32.mrf.mxu1 }
 0x4b1   :  { %v2410_v45 = vpop.f32.mrf.mxu0 }
 0x4b2   :  { %v2458_v44 = vadd.f32 %v8599_v38, %v2443_v37  ;;  %v2441_v60 = vadd.f32 %v2410_v45, %v2281_v2  ;;  %v2549_v37 = vadd.f32 %v5292_v35, %v2548_v5  ;;  %v2300_v45 = vadd.f32 %v2299_v13, %v2186_v51 }
 0x4b3   :  { %v5948_v53 = vpop.f32.mrf.mxu0 }
 0x4b4   :  { %v2466_v47 = vmax.f32 %v2458_v44, 0.0  ;;  %v2456_v3 = vadd.f32 %v8599_v38, %v2441_v60  ;;  %v2444_v21 = vadd.f32 %v5948_v53, %v2292_v22  ;;  %v2570_v22 = vadd.f32 %v5967_v8, %v5292_v35 }
 0x4b5   :  { %v2413_v14 = vpop.f32.mrf.mxu0  ;;  %v2562_v53 = vadd.f32 %v5292_v35, %v2561_v27 }
 0x4b6   :  { %v2585_v12 = vmul.f32 %v8610_v15, %v2466_v47  ;;  %v2464_v63 = vmax.f32 %v2456_v3, 0.0  ;;  %v2459_v24 = vadd.f32 %v8599_v38, %v2444_v21  ;;  %v2442_v29 = vadd.f32 %v2413_v14, %v2284_v1 }
 0x4b7   :  { %v5951_v2 = vpop.f32.mrf.mxu0  ;;  %v2573_v1 = vadd.f32 %v5968_v19, %v5292_v35 }
 0x4b8   :  { %v2593_v7 = vadd.f32 %v2585_v12, %v2554_v34  ;;  %v2583_v43 = vmul.f32 %v8610_v15, %v2464_v63  ;;  %v2467_v61 = vmax.f32 %v2459_v24, 0.0  ;;  %v2457_v58 = vadd.f32 %v8599_v38, %v2442_v29 }
 0x4b9   :  { %v2447_v44 = vadd.f32 %v5951_v2, %v2305_v11  ;;  %v2426_v60 = vpop.f32.mrf.mxu0  ;;  %v2565_v34 = vadd.f32 %v5292_v35, %v2564_v26  ;;  %v8641_v35 = vpop.permute.xlu1 %2993 }
 0x4ba   :  { %v8625_v4 = vmax.f32 %v2593_v7, 0.0  ;;  %v2591_v52 = vadd.f32 %v2583_v43, %v2546_v0  ;;  %v2586_v23 = vmul.f32 %v8610_v15, %v2467_v61  ;;  %v2465_v32 = vmax.f32 %v2457_v58, 0.0  ;;  %v8643_v2 = vpop.permute.xlu0 %2668 }
 0x4bb   :  { %v2462_v47 = vadd.f32 %v8599_v38, %v2447_v44  ;;  %v2445_v5 = vadd.f32 %v2426_v60, %v2297_v54  ;;  %v5952_v13 = vpop.f32.mrf.mxu0 }
 0x4bc   :  { %v8630_v51 = vmax.f32 %v2591_v52, 0.0  ;;  %v2594_v8 = vadd.f32 %v2586_v23, %v2557_v42  ;;  %v2584_v3 = vmul.f32 %v8610_v15, %v2465_v32  ;;  %v2448_v21 = vadd.f32 %v5952_v13, %v2308_v56 }
 0x4bd   :  { %v2470_v11 = vmax.f32 %v2462_v47, 0.0  ;;  %v2460_v14 = vadd.f32 %v8599_v38, %v2445_v5  ;;  %v2429_v12 = vpop.f32.mrf.mxu0  ;;  %v2644_v27 = vrot.slane %v8625_v4, 6  ;;  %v2749_v56 = vrot.slane %v8625_v4, 7 }
 0x4be   :  { %v8635_v19 = vmax.f32 %v2594_v8, 0.0  ;;  %v2592_v63 = vadd.f32 %v2584_v3, %v2549_v37  ;;  %v2463_v24 = vadd.f32 %v8599_v38, %v2448_v21  ;;  %v2446_v29 = vadd.f32 %v2429_v12, %v2300_v45 }
 0x4bf   :  { %v2589_v0 = vmul.f32 %v8610_v15, %v2470_v11  ;;  %v2468_v54 = vmax.f32 %v2460_v14, 0.0  ;;  %v9302_v42 = vrot.slane %v8630_v51, 1  ;;  %v9301_v61 = vrot.slane %v8630_v51, 2 }
 0x4c0   :  { %v2471_v7 = vmax.f32 %v2463_v24, 0.0  ;;  %v2461_v43 = vadd.f32 %v8599_v38, %v2446_v29  ;;  %v2645_v58 = vrot.slane %v8635_v19, 6  ;;  %v8648_v37 = vmax.f32 %v2592_v63, 0.0 }
 0x4c1   :  { %v2597_v45 = vadd.f32 %v2589_v0, %v2570_v22  ;;  %v2587_v44 = vmul.f32 %v8610_v15, %v2468_v54  ;;  %v2750_v60 = vrot.slane %v8635_v19, 7  ;;  %v2854_v22 = vrot.slane %v8635_v19, 1 }
 0x4c2   :  { %v2590_v26 = vmul.f32 %v8610_v15, %v2471_v7  ;;  %v2469_v52 = vmax.f32 %v2461_v43, 0.0  ;;  %v2655_v38 = vsel %vm2650_vm9, %v2644_v27, %v2645_v58  ;;  %v2958_v21 = vrot.slane %v8635_v19, 2 }
 0x4c3   :  { %v8662_v23 = vmax.f32 %v2597_v45, 0.0  ;;  %v2595_v32 = vadd.f32 %v2587_v44, %v2562_v53  ;;  %v2702_v47 = vsel %vm2694_vm10, %v2655_v38, -1e+30  ;;  %v2759_v5 = vsel %vm9524_vm7, %v2749_v56, %v2750_v60 }
 0x4c4   :  { %v2598_v13 = vadd.f32 %v2590_v26, %v2573_v1  ;;  %v2588_v8 = vmul.f32 %v8610_v15, %v2469_v52  ;;  %v2710_v3 = vmax.f32 %v8635_v19, %v2702_v47  ;;  %v2806_v14 = vsel %vm2798_vm0, %v2759_v5, -1e+30  ;;  %v8684_v15 = vpop.permute.xlu1 %2775  ;;  %v8686_v1 = vpop.permute.xlu0 %2882 }
 0x4c5   :  { %v8675_v53 = vmax.f32 %v2595_v32, 0.0  ;;  %v2648_v31 = vrot.slane %v8662_v23, 6  ;;  %v2753_v11 = vrot.slane %v8662_v23, 7  ;;  %v2857_v24 = vrot.slane %v8662_v23, 1 }
 0x4c6   :  { %v8688_v12 = vmax.f32 %v2598_v13, 0.0  ;;  %v2596_v63 = vadd.f32 %v2588_v8, %v2565_v34  ;;  %v2961_v29 = vrot.slane %v8662_v23, 2  ;;  %v8696_v7 = vmax.f32 %v2710_v3, %v2806_v14 }
 0x4c7   :  { %v2646_v59 = vrot.slane %v8675_v53, 6  ;;  %v2751_v0 = vrot.slane %v8675_v53, 7  ;;  %v2855_v54 = vrot.slane %v8675_v53, 1  ;;  %vm2800_vm10 = vcmp.eq.s32.totalorder %v8576_v16, 1 }
 0x4c8   :  { %v8700_v43 = vmax.f32 %v2596_v63, 0.0  ;;  %v2649_v34 = vrot.slane %v8688_v12, 6  ;;  %v9303_v45 = vrot.slane %v8688_v12, 7  ;;  %v2858_v44 = vrot.slane %v8688_v12, 1  ;;  %v8743_v50 = vpop.permute.xlu1 %2990  ;;  %v8745_v17 = vpop.permute.xlu0 %2772 }
 0x4c9   :  { %v2962_v26 = vrot.slane %v8688_v12, 2  ;;  %v2654_v52 = vsel %vm2650_vm9, %v2645_v58, %v2646_v59  ;;  %v2758_v38 = vsel %vm9524_vm7, %v2750_v60, %v2751_v0  ;;  %v2959_v32 = vrot.slane %v8675_v53, 2 }
 0x4ca   :  { %v2651_v47 = vsel %vm2650_vm9, %v2648_v31, %v2649_v34  ;;  %v2755_v5 = vsel %vm9525_vm3, %v2753_v11, %v9303_v45  ;;  %vm9526_vm0 = vcmp.lt.s32.totalorder %v6807_v41, 7  ;;  %v2647_v60 = vrot.slane %v8700_v43, 6 }
 0x4cb   :  { %v2866_v58 = vsel %vm9526_vm0, %v2858_v44, %v9302_v42  ;;  %v2706_v13 = vsel %vm2698_vm15, %v2651_v47, -1e+30  ;;  %v2810_v8 = vsel %vm2802_vm5, %v2755_v5, -1e+30  ;;  %v2971_v3 = vsel %vm2963_vm1, %v2962_v26, %v9301_v61  ;;  %vm9527_vm3 = vmmov %vm9526_vm0 }
 0x4cc   :  { %v2862_v14 = vsel %vm9527_vm3, %v2854_v22, %v2855_v54  ;;  %vm3009_vm0 = vcmp.eq.s32.totalorder %v8605_v46, 1  ;;  %vm2903_vm7 = vcmp.eq.s32.totalorder %v8594_v57, 1  ;;  %vm2902_vm15 = vcmp.eq.s32.totalorder %v8623_v55, 1  ;;  %vm9528_vm5 = vmmov %vm9527_vm3 }
 0x4cd   :  { %v2714_v63 = vmax.f32 %v8688_v12, %v2706_v13  ;;  %v2914_v47 = vsel %vm2906_vm12, %v2866_v58, -1e+30  ;;  %v2652_v5 = vsel %vm2650_vm9, %v2647_v60, %v2648_v31  ;;  %v2752_v61 = vrot.slane %v8700_v43, 7 }
 0x4ce   :  { %v2705_v42 = vsel %vm2697_vm11, %v2652_v5, -1e+30  ;;  %v2859_v45 = vsel %vm9528_vm5, %v2857_v24, %v2858_v44  ;;  %v2964_v13 = vsel %vm2963_vm1, %v2961_v29, %v2962_v26  ;;  %v2653_v28 = vsel %vm2650_vm9, %v2646_v59, %v2647_v60 }
 0x4cf   :  { %vm3008_vm12 = vcmp.eq.s32.totalorder %v8641_v35, 1  ;;  %v2818_v31 = vmax.f32 %v2714_v63, %v2810_v8  ;;  %v3019_v39 = vsel %vm3011_vm4, %v2971_v3, -1e+30  ;;  %v2713_v58 = vmax.f32 %v8662_v23, %v2705_v42 }
 0x4d0   :  { %vm9529_vm11 = vcmp.lt.s32.totalorder %v6807_v41, 1  ;;  %vm3007_vm3 = vcmp.eq.s32.totalorder %v8743_v50, 1  ;;  %v2913_v26 = vsel %vm2905_vm2, %v2859_v45, -1e+30  ;;  %v2704_v59 = vsel %vm2696_vm8, %v2653_v28, -1e+30 }
 0x4d1   :  { %v2756_v5 = vsel %vm9529_vm11, %v2752_v61, %v2753_v11  ;;  %vm9530_vm5 = vmmov %vm9529_vm11  ;;  %vm2693_vm4 = vcmp.eq.s32.totalorder %v8590_v48, 1  ;;  %v2922_v42 = vmax.f32 %v2818_v31, %v2914_v47  ;;  %v3018_v11 = vsel %vm3010_vm14, %v2964_v13, -1e+30  ;;  %v8811_v47 = vpop.permute.xlu1 %2879 }
 0x4d2   :  { %v2809_v44 = vsel %vm2801_vm13, %v2756_v5, -1e+30  ;;  %v2757_v6 = vsel %vm9530_vm5, %v2751_v0, %v2752_v61  ;;  %v2712_v8 = vmax.f32 %v8700_v43, %v2704_v59  ;;  %vm2797_vm13 = vcmp.eq.s32.totalorder %v8620_v49, 1  ;;  %v8792_v0 = vpop.permute.xlu0 %2987 }
 0x4d3   :  { %v2817_v60 = vmax.f32 %v2713_v58, %v2809_v44  ;;  %vm2901_vm11 = vcmp.eq.s32.totalorder %v8686_v1, 1  ;;  %v2808_v18 = vsel %vm2800_vm10, %v2757_v6, -1e+30  ;;  %v2856_v40 = vrot.slane %v8700_v43, 1 }
 0x4d4   :  { %v2960_v25 = vrot.slane %v8700_v43, 2  ;;  %vm9531_vm8 = vcmp.eq.s32.totalorder %v8574_v36, 1  ;;  %v3027_v9 = vmax.f32 %v2922_v42, %v3019_v39  ;;  %v2816_v3 = vmax.f32 %v2712_v8, %v2808_v18 }
 0x4d5   :  { %v2703_v61 = vsel %vm9531_vm8, %v2654_v52, -1e+30  ;;  %v2921_v45 = vmax.f32 %v2817_v60, %v2913_v26  ;;  %vm2692_vm2 = vcmp.eq.s32.totalorder %v8612_v62, 1  ;;  %vm9532_vm14 = vcmp.lt.s32.totalorder %v6807_v41, 7  ;;  %v2877_v59 = vpop.permute.xlu1 %2876 }
 0x4d6   :  { %v2711_v63 = vmax.f32 %v8675_v53, %v2703_v61  ;;  %v2860_v16 = vsel %vm9532_vm14, %v2856_v40, %v2857_v24  ;;  %v2965_v36 = vsel %vm2963_vm1, %v2960_v25, %v2961_v29  ;;  %v2807_v43 = vsel %vm2799_vm6, %v2758_v38, -1e+30  ;;  %vm9533_vm10 = vmmov %vm9532_vm14  ;;  %5970 = vmatpush3.msra.mxu1 %v3027_v9 }
 0x4d7   :  { %v2861_v52 = vsel %vm9533_vm10, %v2855_v54, %v2856_v40  ;;  %vm2691_vm5 = vcmp.eq.s32.totalorder %v8643_v2, 1  ;;  %v3026_v13 = vmax.f32 %v2921_v45, %v3018_v11  ;;  %vm9534_vm8 = vcmp.eq.s32.totalorder %v8586_v10, 1  ;;  %5971 = vmatprep.subr.mxu1 %v6496_v30  ;;  %v2985_v40 = vpop.permute.xlu0 %2984 }
 0x4d8   :  { %v2912_v23 = vsel %vm9534_vm8, %v2860_v16, -1e+30  ;;  %v2815_v24 = vmax.f32 %v2711_v63, %v2807_v43  ;;  %v2966_v33 = vsel %vm2963_vm1, %v2959_v32, %v2960_v25  ;;  %vm2796_vm6 = vcmp.eq.s32.totalorder %v8684_v15, 1 }
 0x4d9   :  { %vm3006_vm14 = vcmp.eq.s32.totalorder %v8792_v0, 1  ;;  %v2920_v29 = vmax.f32 %v2816_v3, %v2912_v23  ;;  %v3017_v54 = vsel %vm3009_vm0, %v2965_v36, -1e+30  ;;  %v2911_v10 = vsel %vm2903_vm7, %v2861_v52, -1e+30  ;;  %5972 = vmatpush3.msra.mxu1 %v3026_v13  ;;  %v2982_v63 = vpop.permute.xlu1 %2981 }
 0x4da   :  { %v2910_v38 = vsel %vm2902_vm15, %v2862_v14, -1e+30  ;;  %v2919_v28 = vmax.f32 %v2815_v24, %v2911_v10  ;;  %v2967_v39 = vsel %vm2963_vm1, %v2958_v21, %v2959_v32  ;;  %v2643_v46 = vrot.slane %v8648_v37, 6  ;;  %5973 = vmatprep.subr.mxu1 %v6496_v30 }
 0x4db   :  { %v2918_v31 = vmax.f32 %v8696_v7, %v2910_v38  ;;  %vm2900_vm0 = vcmp.eq.s32.totalorder %v8811_v47, 1  ;;  %vm2795_vm7 = vcmp.eq.s32.totalorder %v8745_v17, 1  ;;  %v3025_v57 = vmax.f32 %v2920_v29, %v3017_v54  ;;  %v6054_v54 = vld [vmem:[%s9253_s16 + $0xf4] ss:$8 sps:$4 sm:$0xff]   ;;  %v6052_v38 = vld [vmem:[%s9253_s16 + $0xf0] ss:$8 sps:$4 sm:$0xff]  }
 0x4dc   :  { %v3016_v55 = vsel %vm3008_vm12, %v2966_v33, -1e+30  ;;  %v2748_v7 = vrot.slane %v8648_v37, 7  ;;  %v2853_v53 = vrot.slane %v8625_v4, 1  ;;  %v3015_v32 = vsel %vm3007_vm3, %v2967_v39, -1e+30  ;;  %vm9536_vm12 = vmmov %vm9533_vm10 }
 0x4dd   :  { %v3024_v14 = vmax.f32 %v2919_v28, %v3016_v55  ;;  %v2656_v58 = vsel %vm2650_vm9, %v2643_v46, %v2644_v27  ;;  %v2957_v5 = vrot.slane %v8625_v4, 2  ;;  %5974 = vmatpush3.msra.mxu1 %v3025_v57  ;;  %vm9535_vm15 = vcmp.lt.s32.totalorder %v6807_v41, 1  ;;  %v6057_v28 = vld [vmem:[%s9253_s16 + $0xe4] ss:$8 sps:$4 sm:$0xff]   ;;  %v6055_v39 = vld [vmem:[%s9253_s16 + $0xe0] ss:$8 sps:$4 sm:$0xff]  }
 0x4de   :  { %v2701_v35 = vsel %vm2693_vm4, %v2656_v58, -1e+30  ;;  %v2760_v44 = vsel %vm9535_vm15, %v2748_v7, %v2749_v56  ;;  %v2863_v50 = vsel %vm9536_vm12, %v2853_v53, %v2854_v22  ;;  %v2642_v26 = vrot.slane %v8630_v51, 6  ;;  %5975 = vmatprep.subr.mxu1 %v6496_v30  ;;  %vm9537_vm3 = vmmov %vm9535_vm15  ;;  %v2609_v57 = vld [vmem:[%s9544_s23 + $0x10] sm:$0xff]  ;;  %v6081_v58 = vld [vmem:[%s9253_s16 + $0xa4] ss:$8 sps:$4 sm:$0xff]  }
 0x4df   :  { %v3023_v27 = vmax.f32 %v2918_v31, %v3015_v32  ;;  %v2709_v6 = vmax.f32 %v8625_v4, %v2701_v35  ;;  %v2805_v48 = vsel %vm2797_vm13, %v2760_v44, -1e+30  ;;  %v2909_v42 = vsel %vm2901_vm11, %v2863_v50, -1e+30  ;;  %5976 = vmatpush3.msra.mxu1 %v3024_v14  ;;  %vm9538_vm4 = vmmov %vm9533_vm10  ;;  %v2608_v31 = vld [vmem:[%s9544_s23 + $0x8] sm:$0xff] }
 0x4e0   :  { %v2968_v56 = vsel %vm2963_vm1, %v2957_v5, %v2958_v21  ;;  %v2657_v22 = vsel %vm2650_vm9, %v2642_v26, %v2643_v46  ;;  %v2747_v60 = vrot.slane %v8630_v51, 7  ;;  %v2852_v11 = vrot.slane %v8648_v37, 1  ;;  %5977 = vmatprep.subr.mxu1 %v6496_v30  ;;  %vm9542_vm11 = vmmov %vm9538_vm4  ;;  %v6063_v46 = vld [vmem:[%s9253_s16 + $0xd4] ss:$8 sps:$4 sm:$0xff]   ;;  %v6061_v55 = vld [vmem:[%s9253_s16 + $0xd0] ss:$8 sps:$4 sm:$0xff]  }
 0x4e1   :  { %v2813_v49 = vmax.f32 %v2709_v6, %v2805_v48  ;;  %v2700_v4 = vsel %vm2692_vm2, %v2657_v22, -1e+30  ;;  %v2956_v1 = vrot.slane %v8648_v37, 2  ;;  %v2658_v19 = vsel %vm2650_vm9, %v2649_v34, %v2642_v26  ;;  %5978 = vmatpush3.msra.mxu1 %v3023_v27  ;;  %vm9540_vm9 = vmmov %vm9537_vm3  ;;  %v6075_v14 = vld [vmem:[%s9253_s16 + $0xb4] ss:$8 sps:$4 sm:$0xff]  }
 0x4e2   :  { %v2708_v21 = vmax.f32 %v8648_v37, %v2700_v4  ;;  %v2761_v8 = vsel %vm9537_vm3, %v2747_v60, %v2748_v7  ;;  %v2864_v18 = vsel %vm9538_vm4, %v2852_v11, %v2853_v53  ;;  %v2699_v62 = vsel %vm2691_vm5, %v2658_v19, -1e+30  ;;  %5979 = vmatprep.subr.mxu1 %v6496_v30  ;;  %v6069_v7 = vld [vmem:[%s9253_s16 + $0xc4] ss:$8 sps:$4 sm:$0xff]   ;;  %v6067_v53 = vld [vmem:[%s9253_s16 + $0xc0] ss:$8 sps:$4 sm:$0xff]   ;;  %vm9550_vm15 = vmmov %vm9537_vm3 }
 0x4e3   :  { %vm2899_vm13 = vcmp.eq.s32.totalorder %v2877_v59, 1  ;;  %v2917_v25 = vmax.f32 %v2813_v49, %v2909_v42  ;;  %v3014_v34 = vsel %vm3006_vm14, %v2968_v56, -1e+30  ;;  %v2804_v37 = vsel %vm2796_vm6, %v2761_v8, -1e+30  ;;  %v3134_v8 = vpop.permute.xlu1 %3133 }
 0x4e4   :  { %v2812_v61 = vmax.f32 %v2708_v21, %v2804_v37  ;;  %v2969_v9 = vsel %vm2963_vm1, %v2956_v1, %v2957_v5  ;;  %v2707_v45 = vmax.f32 %v8630_v51, %v2699_v62  ;;  %v9539_v2 = vrot.slane %v8688_v12, 7  ;;  %v6073_v32 = vld [vmem:[%s9253_s16 + $0xb0] ss:$8 sps:$4 sm:$0xff]   ;;  %v6079_v5 = vld [vmem:[%s9253_s16 + $0xa0] ss:$8 sps:$4 sm:$0xff]  }
 0x4e5   :  { %v3022_v16 = vmax.f32 %v2917_v25, %v3014_v34  ;;  %v2908_v0 = vsel %vm2900_vm0, %v2864_v18, -1e+30  ;;  %v9541_v36 = vrot.slane %v8630_v51, 1  ;;  %vm3005_vm2 = vcmp.eq.s32.totalorder %v2985_v40, 1  ;;  %v6087_v35 = vld [vmem:[%s9253_s16 + $0x94] ss:$8 sps:$4 sm:$0xff]   ;;  %v3131_v18 = vpop.permute.xlu0 %3130 }
 0x4e6   :  { %v2762_v3 = vsel %vm9540_vm9, %v9539_v2, %v2747_v60  ;;  %v2916_v52 = vmax.f32 %v2812_v61, %v2908_v0  ;;  %v9543_v12 = vrot.slane %v8630_v51, 2  ;;  %v3013_v24 = vsel %vm3005_vm2, %v2969_v9, -1e+30  ;;  %v2607_v51 = vld [vmem:[%s9544_s23] sm:$0xff]  ;;  %v6085_v44 = vld [vmem:[%s9253_s16 + $0x90] ss:$8 sps:$4 sm:$0xff]   ;;  %vm9555_vm9 = vmmov %vm9542_vm11 }
 0x4e7   :  { %v2803_v15 = vsel %vm2795_vm7, %v2762_v3, -1e+30  ;;  %v2865_v43 = vsel %vm9542_vm11, %v9541_v36, %v2852_v11  ;;  %5980 = vmatpush3.msra.mxu1 %v3022_v16  ;;  %vm3004_vm10 = vcmp.eq.s32.totalorder %v2982_v63, 1  ;;  %vm9546_vm5 = vmmov 0   ;;  %v6088_v50 = vld [vmem:[%s9253_s16 + $0x20] ss:$8 sps:$4 sm:$0xff]   ;;  %vm9549_vm7 = vmmov %vm9537_vm3 }
 0x4e8   :  { %v2811_v13 = vmax.f32 %v2707_v45, %v2803_v15  ;;  %v2970_v23 = vsel %vm2963_vm1, %v9543_v12, %v2956_v1  ;;  %v2907_v47 = vsel %vm2899_vm13, %v2865_v43, -1e+30  ;;  %5981 = vmatprep.subr.mxu1 %v6496_v30  ;;  %v3021_v17 = vmax.f32 %v2916_v52, %v3013_v24  ;;  %v6090_v26 = vld [vmem:[%s9253_s16 + $0x24] ss:$8 sps:$4 sm:$0xff]   ;;  %v6091_v59 = vld [vmem:[%s9253_s16 + $0x80] ss:$8 sps:$4 sm:$0xff]   ;;  %vm9556_vm2 = vmmov %vm9555_vm9 }
 0x4e9   :  { %v3012_v29 = vsel %vm3004_vm10, %v2970_v23, -1e+30  ;;  %vm9545_vm1 = vcmask 523264   ;;  %v6093_v27 = vld [vmem:[%s9253_s16 + $0x84] ss:$8 sps:$4 sm:$0xff]   ;;  %3300 = vmatprep.subr.bf16.mxu0 %v6090_v26  ;;  %vm3139_vm14 = vcmp.eq.s32.totalorder %v3134_v8, 1  ;;  %v3137_v0 = vpop.permute.xlu0 %3136 }
 0x4ea   :  { %v2915_v33 = vmax.f32 %v2811_v13, %v2907_v47  ;;  %5982 = vmatpush3.msra.mxu1 %v3021_v17  ;;  %vm9547_vm8 = vmmov %vm9545_vm1  ;;  %3301 = vmatpush1.bf16.msra.mxu0 %v6088_v50  ;;  %v6094_v6 = vld [vmem:[%s9253_s16 + $0x10] ss:$8 sps:$4 sm:$0xff]   ;;  %v6096_v48 = vld [vmem:[%s9253_s16 + $0x14] ss:$8 sps:$4 sm:$0xff]   ;;  %vm3138_vm0 = vcmp.eq.s32.totalorder %v3131_v18, 1  ;;  %vm3140_vm4 = vcmp.eq.s32.totalorder %v3137_v0, 1 }
 0x4eb   :  { %5983 = vmatprep.subr.mxu1 %v6496_v30  ;;  %vm9548_vm6 = vmmov %vm9545_vm1  ;;  %3302 = vmatprep.subr.bf16.mxu0 %v6096_v48  ;;  %v6097_v42 = vld [vmem:[%s9253_s16] ss:$8 sps:$4 sm:$0xff]   ;;  %v6099_v56 = vld [vmem:[%s9253_s16 + $0x4] ss:$8 sps:$4 sm:$0xff]  }
 0x4ec   :  { %v3020_v10 = vmax.f32 %v2915_v33, %v3012_v29  ;;  %v6102_v22 = vld [vmem:[%s9253_s16 + $0x174] ss:$8 sps:$4 sm:$0xff]   ;;  %v6130_v1 = vld [vmem:[#allocation6 + $0x70] ss:$8 sps:$4 sm:$0xff]   ;;  %v6105_v3 = vld [vmem:[%s9253_s16 + $0x164] ss:$8 sps:$4 sm:$0xff]  }
 0x4ed   :  { %v6132_v60 = vld [vmem:[#allocation6 + $0x74] ss:$8 sps:$4 sm:$0xff]   ;;  %v6100_v45 = vld [vmem:[%s9253_s16 + $0x170] ss:$8 sps:$4 sm:$0xff]   ;;  %vm9028_vm12 = vmpackc.low %vm3139_vm14, %vm3138_vm0 }
 0x4ee   :  { %5984 = vmatpush3.msra.mxu1 %v3020_v10  ;;  %3303 = vmatpush1.bf16.msra.mxu0 %v6094_v6  ;;  %v6103_v15 = vld [vmem:[%s9253_s16 + $0x160] ss:$8 sps:$4 sm:$0xff]   ;;  %v6108_v36 = vld [vmem:[%s9253_s16 + $0x154] ss:$8 sps:$4 sm:$0xff]   ;;  %v6106_v52 = vld [vmem:[%s9253_s16 + $0x150] ss:$8 sps:$4 sm:$0xff]  }
 0x4ef   :  { %5986 = vmatmul.mubr.msk.f32.vlgmr.msra.gmra.mxu1 %vm9545_vm1, %v2607_v51  ;;  %3421 = vmatprep.subr.bf16.mxu1 %v6054_v54  ;;  %v6111_v12 = vld [vmem:[%s9253_s16 + $0x144] ss:$8 sps:$4 sm:$0xff]   ;;  %vm9054_vm13 = vmpackc.low %vm3140_vm4, %vm3140_vm4  ;;  %v6109_v24 = vld [vmem:[%s9253_s16 + $0x140] ss:$8 sps:$4 sm:$0xff]  }
 0x4f0   :  { %5988 = vmatprep.mubr.msk.f32.mxu1 %vm9546_vm5, %v6496_v30  ;;  %3422 = vmatpush1.bf16.msra.mxu1 %v6052_v38  ;;  %v6114_v47 = vld [vmem:[%s9253_s16 + $0x134] ss:$8 sps:$4 sm:$0xff]   ;;  %v6112_v17 = vld [vmem:[%s9253_s16 + $0x130] ss:$8 sps:$4 sm:$0xff]   ;;  %v6117_v33 = vld [vmem:[%s9253_s16 + $0x124] ss:$8 sps:$4 sm:$0xff]  }
 0x4f1   :  { %3423 = vmatprep.subr.bf16.mxu1 %v6057_v28  ;;  %3304 = vmatprep.subr.bf16.mxu0 %v6099_v56  ;;  %v6115_v29 = vld [vmem:[%s9253_s16 + $0x120] ss:$8 sps:$4 sm:$0xff]   ;;  %v6120_v54 = vld [vmem:[%s9253_s16 + $0x114] ss:$8 sps:$4 sm:$0xff]   ;;  %v6118_v10 = vld [vmem:[%s9253_s16 + $0x110] ss:$8 sps:$4 sm:$0xff]   ;;  %v3163_v28 = vpop.permute.xlu0 %3162 }
 0x4f2   :  { %3305 = vmatpush1.bf16.msra.mxu0 %v6097_v42  ;;  %v6123_v51 = vld [vmem:[%s9253_s16 + $0x104] ss:$8 sps:$4 sm:$0xff]   ;;  %vm3168_vm11 = vcmp.eq.s32.totalorder %v3163_v28, 1  ;;  %v6135_v50 = vld [vmem:[#allocation6 + $0x154] ss:$8 sps:$4 sm:$0xff]   ;;  %vm9562_vm14 = vmmov %vm9556_vm2 }
 0x4f3   :  { %5989 = vmatmul.mubr.msk.f32.gmra.mxu1 %vm9547_vm8, %v2608_v31  ;;  %3569 = vmatprep.subr.bf16.mxu0 %v6102_v22  ;;  %v6136_v48 = vld [vmem:[#allocation6 + $0x60] ss:$8 sps:$4 sm:$0xff]   ;;  %v6138_v42 = vld [vmem:[#allocation6 + $0x64] ss:$8 sps:$4 sm:$0xff]   ;;  %v6169_v0 = vld [vmem:[#allocation6 + $0x1f0] ss:$8 sps:$4 sm:$0xff]  }
 0x4f4   :  { %5991 = vmatprep.mubr.msk.f32.mxu1 %vm9546_vm5, %v6496_v30  ;;  %3424 = vmatpush1.bf16.msra.mxu1 %v6055_v39  ;;  %v6121_v39 = vld [vmem:[%s9253_s16 + $0x100] ss:$8 sps:$4 sm:$0xff]   ;;  %vm9559_vm5 = vmmov %vm9556_vm2  ;;  %v6141_v22 = vld [vmem:[#allocation6 + $0x144] ss:$8 sps:$4 sm:$0xff]  }
 0x4f5   :  { %3425 = vmatprep.subr.bf16.mxu1 %v6063_v46  ;;  %v6126_v46 = vld [vmem:[#allocation6 + $0x174] ss:$8 sps:$4 sm:$0xff]   ;;  %v6139_v56 = vld [vmem:[#allocation6 + $0x140] ss:$8 sps:$4 sm:$0xff]   ;;  %v6153_v18 = vld [vmem:[#allocation6 + $0x124] ss:$8 sps:$4 sm:$0xff]  }
 0x4f6   :  { %v6151_v8 = vld [vmem:[#allocation6 + $0x120] ss:$8 sps:$4 sm:$0xff]   ;;  %v6190_v28 = vld [vmem:[#allocation6 + $0xd0] ss:$8 sps:$4 sm:$0xff]   ;;  %vm9563_vm0 = vmmov %vm9556_vm2 }
 0x4f7   :  { %5992 = vmatmul.mubr.msk.f32.gmra.mxu1 %vm9548_vm6, %v2609_v57  ;;  %v3160_v57 = vpop.permute.xlu1 %3159  ;;  %vm9566_vm4 = vmmov %vm9537_vm3  ;;  %v6253_v23 = vld [vmem:[#allocation7 + $0x10] ss:$8 sps:$4 sm:$0xff]   ;;  %v6309_v6 = vld [vmem:[#allocation9 + $0x24] ss:$8 sps:$4 sm:$0xff]  }
 0x4f8   :  { %3426 = vmatpush1.bf16.msra.mxu1 %v6061_v55  ;;  %3453 = vmatprep.mubr.bf16.mxu1 %v9523_v20  ;;  %vm3167_vm10 = vcmp.eq.s32.totalorder %v3160_v57, 1  ;;  %v6199_v57 = vld [vmem:[#allocation6 + $0x1a0] ss:$8 sps:$4 sm:$0xff]  }
 0x4f9   :  { %3427 = vmatprep.subr.bf16.mxu1 %v6069_v7  ;;  %vm9095_vm1 = vmpackc.low %vm3168_vm11, %vm3167_vm10 }
 0x4fa   :  { %vm9568_vm11 = vmmov %vm9537_vm3 }
 0x4fb   :  { %vm9571_vm10 = vmmov %vm9563_vm0 }
 0x4fc   :  { %3428 = vmatpush1.bf16.msra.mxu1 %v6067_v53 }
 0x4fd   :  { %3429 = vmatprep.subr.bf16.mxu1 %v6075_v14  ;;  %v6124_v14 = vld [vmem:[#allocation6 + $0x170] ss:$8 sps:$4 sm:$0xff]  }
 0x500   :  { %3430 = vmatpush1.bf16.msra.mxu1 %v6073_v32 }
 0x501   :  { %3431 = vmatprep.subr.bf16.mxu1 %v6081_v58  ;;  %v6129_v58 = vld [vmem:[#allocation6 + $0x164] ss:$8 sps:$4 sm:$0xff]  }
 0x504   :  { %3432 = vmatpush1.bf16.msra.mxu1 %v6079_v5  ;;  %v6298_v5 = vld [vmem:[#allocation9 + $0x50] ss:$8 sps:$4 sm:$0xff]  }
 0x505   :  { %3433 = vmatprep.subr.bf16.mxu1 %v6087_v35  ;;  %v3166_v35 = vpop.permute.xlu1 %3165 }
 0x506   :  { %vm3169_vm8 = vcmp.eq.s32.totalorder %v3166_v35, 1  ;;  %v6210_v35 = vld [vmem:[#allocation6 + $0xa4] ss:$8 sps:$4 sm:$0xff]  }
 0x507   :  { %vm9104_vm6 = vmpackc.low %vm3169_vm8, %vm3169_vm8 }
 0x508   :  { %3434 = vmatpush1.bf16.msra.mxu1 %v6085_v44  ;;  %v6127_v44 = vld [vmem:[#allocation6 + $0x160] ss:$8 sps:$4 sm:$0xff]  }
 0x509   :  { %3435 = vmatprep.subr.bf16.mxu1 %v6093_v27 }
 0x50c   :  { %3436 = vmatpush1.bf16.msra.mxu1 %v6091_v59  ;;  %v6133_v59 = vld [vmem:[#allocation6 + $0x150] ss:$8 sps:$4 sm:$0xff]  }
 0x50d   :  { %3923 = vmatprep.subr.bf16.mxu1 %v6132_v60  ;;  %v6142_v60 = vld [vmem:[#allocation6 + $0x50] ss:$8 sps:$4 sm:$0xff]  }
 0x5af   :  { %v9003_v11 = vpop.f32.mrf.mxu1 }
 0x5b0   :  { %v3120_v25 = vrot.slane %v9003_v11, 7  ;;  %v3149_v55 = vrot.slane %v9003_v11, 1 }
 0x5b1   :  { %v5987_v49 = vpop.f32.mrf.mxu1 }
 0x5b2   :  { %v6145_v49 = vld [vmem:[#allocation6 + $0x130] ss:$8 sps:$4 sm:$0xff]  }
 0x5b3   :  { %v9005_v4 = vpop.f32.mrf.mxu1 }
 0x5b4   :  { %v9009_v19 = vpack.c.bf16 %v9005_v4, %v9003_v11  ;;  %v3121_v62 = vrot.slane %v9005_v4, 7  ;;  %v3150_v31 = vrot.slane %v9005_v4, 1  ;;  %v6144_v11 = vld [vmem:[#allocation6 + $0x54] ss:$8 sps:$4 sm:$0xff]  }
 0x5b5   :  { %v5990_v21 = vpop.f32.mrf.mxu1  ;;  %v6147_v4 = vld [vmem:[#allocation6 + $0x134] ss:$8 sps:$4 sm:$0xff]  }
 0x5b6   :  { %3454 = vmatmul.mubr.bf16.vlgmr.msra.gmra.mxu1 %v9009_v19  ;;  %v3124_v61 = vsel %vm9549_vm7, %v3120_v25, %v3121_v62  ;;  %v3153_v53 = vsel %vm9556_vm2, %v3149_v55, %v3150_v31  ;;  %v6150_v21 = vld [vmem:[#allocation6 + $0x44] ss:$8 sps:$4 sm:$0xff]   ;;  %vm9564_vm7 = vmmov %vm9563_vm0 }
 0x5b7   :  { %v9013_v40 = vpop.f32.mrf.mxu1  ;;  %3463 = vmatprep.mubr.bf16.mxu1 %v9523_v20  ;;  %3924 = vmatpush1.bf16.msra.mxu1 %v6130_v1  ;;  %v6148_v1 = vld [vmem:[#allocation6 + $0x40] ss:$8 sps:$4 sm:$0xff]   ;;  %vm9569_vm2 = vmmov %vm9537_vm3 }
 0x5b8   :  { %v3122_v34 = vrot.slane %v9013_v40, 7  ;;  %v9034_v16 = vpack.c.bf16 %v9013_v40, %v9013_v40  ;;  %v3151_v38 = vrot.slane %v9013_v40, 1  ;;  %3925 = vmatprep.subr.bf16.mxu1 %v6138_v42  ;;  %v6156_v40 = vld [vmem:[#allocation6 + $0x34] ss:$8 sps:$4 sm:$0xff]   ;;  %v6220_v42 = vld [vmem:[#allocation6 + $0x80] ss:$8 sps:$4 sm:$0xff]  }
 0x5b9   :  { %v5993_v37 = vpop.f32.mrf.mxu1 }
 0x5ba   :  { %v3125_v9 = vsel %vm9550_vm15, %v3122_v34, %v3120_v25  ;;  %v3123_v43 = vsel %vm9537_vm3, %v3121_v62, %v3122_v34  ;;  %v3152_v7 = vsel %vm9555_vm9, %v3150_v31, %v3151_v38  ;;  %v3154_v26 = vsel %vm9559_vm5, %v3151_v38, %v3149_v55  ;;  %v6154_v62 = vld [vmem:[#allocation6 + $0x30] ss:$8 sps:$4 sm:$0xff]   ;;  %v6159_v34 = vld [vmem:[#allocation6 + $0x114] ss:$8 sps:$4 sm:$0xff]   ;;  %v6160_v37 = vld [vmem:[#allocation6 + $0x20] ss:$8 sps:$4 sm:$0xff]  }
 0x5bb   :  { %v5338_v2 = vpack.c.bf16 %v3124_v61, %v3125_v9  ;;  %v5341_v13 = vpack.c.bf16 %v3123_v43, %v3123_v43  ;;  %v5392_v32 = vpack.c.bf16 %v3152_v7, %v3153_v53  ;;  %v5395_v27 = vpack.c.bf16 %v3154_v26, %v3154_v26  ;;  %3926 = vmatpush1.bf16.msra.mxu1 %v6136_v48  ;;  %v6157_v25 = vld [vmem:[#allocation6 + $0x110] ss:$8 sps:$4 sm:$0xff]   ;;  %v6162_v61 = vld [vmem:[#allocation6 + $0x24] ss:$8 sps:$4 sm:$0xff]   ;;  %v6163_v9 = vld [vmem:[#allocation6 + $0x100] ss:$8 sps:$4 sm:$0xff]  }
 0x5bc   :  { %3927 = vmatprep.subr.bf16.mxu1 %v6144_v11  ;;  %v6177_v43 = vld [vmem:[#allocation6 + $0x1e4] ss:$8 sps:$4 sm:$0xff]   ;;  %v6195_v38 = vld [vmem:[#allocation6 + $0x1b4] ss:$8 sps:$4 sm:$0xff]   ;;  %v6193_v31 = vld [vmem:[#allocation6 + $0x1b0] ss:$8 sps:$4 sm:$0xff]  }
 0x5bd   :  { %5339 = vmatmul.mubr.msk.bf16.vlgmr.msra.gmra.mxu0 %vm9028_vm12, %v5338_v2  ;;  %v6166_v2 = vld [vmem:[#allocation6 + $0x10] ss:$8 sps:$4 sm:$0xff]   ;;  %v6201_v55 = vld [vmem:[#allocation6 + $0x1a4] ss:$8 sps:$4 sm:$0xff]   ;;  %v6204_v53 = vld [vmem:[#allocation6 + $0xb4] ss:$8 sps:$4 sm:$0xff]  }
 0x5be   :  { %3570 = vmatpush1.bf16.msra.mxu0 %v6100_v45  ;;  %3464 = vmatmul.mubr.bf16.gmra.mxu1 %v9034_v16  ;;  %v6165_v45 = vld [vmem:[#allocation6 + $0x104] ss:$8 sps:$4 sm:$0xff]   ;;  %v6202_v7 = vld [vmem:[#allocation6 + $0xb0] ss:$8 sps:$4 sm:$0xff]   ;;  %v6216_v26 = vld [vmem:[#allocation6 + $0x94] ss:$8 sps:$4 sm:$0xff]  }
 0x5bf   :  { %3571 = vmatprep.subr.bf16.mxu0 %v6105_v3  ;;  %3332 = vmatprep.mubr.bf16.mxu0 %v9523_v20  ;;  %v6168_v3 = vld [vmem:[#allocation6 + $0x14] ss:$8 sps:$4 sm:$0xff]   ;;  %v6222_v48 = vld [vmem:[#allocation6 + $0x84] ss:$8 sps:$4 sm:$0xff]   ;;  %vm9565_vm15 = vmmov %vm9537_vm3 }
 0x5c0   :  { %3928 = vmatpush1.bf16.msra.mxu1 %v6142_v60  ;;  %vm9567_vm9 = vmmov %vm9537_vm3 }
 0x5c1   :  { %3929 = vmatprep.subr.bf16.mxu1 %v6150_v21 }
 0x5c2   :  { %3572 = vmatpush1.bf16.msra.mxu0 %v6103_v15  ;;  %v6171_v15 = vld [vmem:[#allocation6 + $0x1f4] ss:$8 sps:$4 sm:$0xff]  }
 0x5c3   :  { %3573 = vmatprep.subr.bf16.mxu0 %v6108_v36  ;;  %v6174_v36 = vld [vmem:[#allocation6 + $0x4] ss:$8 sps:$4 sm:$0xff]  }
 0x5c4   :  { %3930 = vmatpush1.bf16.msra.mxu1 %v6148_v1 }
 0x5c5   :  { %5342 = vmatmul.mubr.msk.bf16.gmra.mxu0 %vm9054_vm13, %v5341_v13  ;;  %3931 = vmatprep.subr.bf16.mxu1 %v6156_v40  ;;  %v6180_v13 = vld [vmem:[#allocation6 + $0xf4] ss:$8 sps:$4 sm:$0xff]  }
 0x5c6   :  { %3574 = vmatpush1.bf16.msra.mxu0 %v6106_v52  ;;  %3601 = vmatprep.mubr.bf16.mxu0 %v9523_v20  ;;  %v6172_v52 = vld [vmem:[#allocation6] ss:$8 sps:$4 sm:$0xff]  }
 0x5c7   :  { %3575 = vmatprep.subr.bf16.mxu0 %v6111_v12  ;;  %v6175_v12 = vld [vmem:[#allocation6 + $0x1e0] ss:$8 sps:$4 sm:$0xff]  }
 0x5c8   :  { %3932 = vmatpush1.bf16.msra.mxu1 %v6154_v62 }
 0x5c9   :  { %3933 = vmatprep.subr.bf16.mxu1 %v6162_v61 }
 0x5ca   :  { %3576 = vmatpush1.bf16.msra.mxu0 %v6109_v24  ;;  %v6183_v24 = vld [vmem:[#allocation6 + $0x1d4] ss:$8 sps:$4 sm:$0xff]  }
 0x5cb   :  { %3577 = vmatprep.subr.bf16.mxu0 %v6114_v47  ;;  %v6178_v47 = vld [vmem:[#allocation6 + $0xf0] ss:$8 sps:$4 sm:$0xff]  }
 0x5cc   :  { %3934 = vmatpush1.bf16.msra.mxu1 %v6160_v37 }
 0x5cd   :  { %3935 = vmatprep.subr.bf16.mxu1 %v6168_v3 }
 0x5ce   :  { %3578 = vmatpush1.bf16.msra.mxu0 %v6112_v17  ;;  %v6186_v17 = vld [vmem:[#allocation6 + $0xe4] ss:$8 sps:$4 sm:$0xff]  }
 0x5cf   :  { %3579 = vmatprep.subr.bf16.mxu0 %v6117_v33  ;;  %v6181_v33 = vld [vmem:[#allocation6 + $0x1d0] ss:$8 sps:$4 sm:$0xff]  }
 0x5d0   :  { %3936 = vmatpush1.bf16.msra.mxu1 %v6166_v2  ;;  %v3626_v2 = vld [vmem:[%s9254_s17] sm:$0x3] }
 0x5d1   :  { %3937 = vmatprep.subr.bf16.mxu1 %v6174_v36  ;;  %v9118_v36 = vsub.s32 1, %v6807_v41 }
 0x5d2   :  { %3580 = vmatpush1.bf16.msra.mxu0 %v6115_v29  ;;  %v6189_v29 = vld [vmem:[#allocation6 + $0x1c4] ss:$8 sps:$4 sm:$0xff]  }
 0x5d3   :  { %3581 = vmatprep.subr.bf16.mxu0 %v6120_v54  ;;  %v6184_v54 = vld [vmem:[#allocation6 + $0xe0] ss:$8 sps:$4 sm:$0xff]  }
 0x5d4   :  { %3938 = vmatpush1.bf16.msra.mxu1 %v6172_v52 }
 0x5d5   :  { %3939 = vmatprep.subr.bf16.mxu1 %v6180_v13 }
 0x5d6   :  { %3582 = vmatpush1.bf16.msra.mxu0 %v6118_v10  ;;  %v6192_v10 = vld [vmem:[#allocation6 + $0xd4] ss:$8 sps:$4 sm:$0xff]  }
 0x5d7   :  { %3583 = vmatprep.subr.bf16.mxu0 %v6123_v51  ;;  %v6187_v51 = vld [vmem:[#allocation6 + $0x1c0] ss:$8 sps:$4 sm:$0xff]  }
 0x5d8   :  { %3940 = vmatpush2.bf16.msra.mxu1 %v6178_v47 }
 0x5d9   :  { %3941 = vmatprep.subr.bf16.mxu1 %v6186_v17  ;;  %v3635_v17 = vrot.slane %v3626_v2, %v9118_v36 }
 0x5da   :  { %3584 = vmatpush1.bf16.msra.mxu0 %v6121_v39  ;;  %v6196_v39 = vld [vmem:[#allocation6 + $0xc0] ss:$8 sps:$4 sm:$0xff]  }
 0x5db   :  { %4134 = vmatprep.subr.bf16.mxu0 %v6126_v46  ;;  %v6198_v46 = vld [vmem:[#allocation6 + $0xc4] ss:$8 sps:$4 sm:$0xff]  }
 0x5dc   :  { %3942 = vmatpush2.bf16.msra.mxu1 %v6184_v54 }
 0x5dd   :  { %5393 = vmatmul.mubr.msk.bf16.vlgmr.msra.gmra.mxu0 %vm9095_vm1, %v5392_v32  ;;  %3943 = vmatprep.subr.bf16.mxu1 %v6192_v10  ;;  %v6207_v32 = vld [vmem:[#allocation6 + $0x194] ss:$8 sps:$4 sm:$0xff]  }
 0x5de   :  { %3611 = vmatprep.mubr.bf16.mxu0 %v9523_v20  ;;  %4135 = vmatpush1.bf16.msra.mxu0 %v6124_v14  ;;  %v6205_v14 = vld [vmem:[#allocation6 + $0x190] ss:$8 sps:$4 sm:$0xff]  }
 0x5df   :  { %4136 = vmatprep.subr.bf16.mxu0 %v6129_v58  ;;  %v6208_v58 = vld [vmem:[#allocation6 + $0xa0] ss:$8 sps:$4 sm:$0xff]  }
 0x5e0   :  { %3944 = vmatpush2.bf16.msra.mxu1 %v6190_v28 }
 0x5e1   :  { %3945 = vmatprep.subr.bf16.mxu1 %v6198_v46 }
 0x5e2   :  { %4137 = vmatpush1.bf16.msra.mxu0 %v6127_v44  ;;  %v6211_v44 = vld [vmem:[#allocation6 + $0x180] ss:$8 sps:$4 sm:$0xff]  }
 0x5e3   :  { %4138 = vmatprep.subr.bf16.mxu0 %v6135_v50  ;;  %v6213_v50 = vld [vmem:[#allocation6 + $0x184] ss:$8 sps:$4 sm:$0xff]  }
 0x5e4   :  { %3946 = vmatpush2.bf16.msra.mxu1 %v6196_v39 }
 0x5e5   :  { %5396 = vmatmul.mubr.msk.bf16.gmra.mxu0 %vm9104_vm6, %v5395_v27  ;;  %3947 = vmatprep.subr.bf16.mxu1 %v6204_v53  ;;  %v6214_v27 = vld [vmem:[#allocation6 + $0x90] ss:$8 sps:$4 sm:$0xff]  }
 0x5e6   :  { %4139 = vmatpush1.bf16.msra.mxu0 %v6133_v59  ;;  %v6219_v59 = vld [vmem:[#allocation7 + $0x74] ss:$8 sps:$4 sm:$0xff]  }
 0x5e7   :  { %4140 = vmatprep.subr.bf16.mxu0 %v6141_v22 }
 0x5e8   :  { %3948 = vmatpush2.bf16.msra.mxu1 %v6202_v7 }
 0x5e9   :  { %3949 = vmatprep.subr.bf16.mxu1 %v6210_v35 }
 0x5ea   :  { %4141 = vmatpush1.bf16.msra.mxu0 %v6139_v56  ;;  %v6228_v56 = vld [vmem:[#allocation6 + $0x274] ss:$8 sps:$4 sm:$0xff]  }
 0x5eb   :  { %4142 = vmatprep.subr.bf16.mxu0 %v6147_v4 }
 0x5ec   :  { %3950 = vmatpush2.bf16.msra.mxu1 %v6208_v58 }
 0x5ed   :  { %3951 = vmatprep.subr.bf16.mxu1 %v6216_v26 }
 0x5ee   :  { %4143 = vmatpush1.bf16.msra.mxu0 %v6145_v49 }
 0x5ef   :  { %4144 = vmatprep.subr.bf16.mxu0 %v6153_v18 }
 0x5f0   :  { %3952 = vmatpush2.bf16.msra.mxu1 %v6214_v27 }
 0x5f1   :  { %3953 = vmatprep.subr.bf16.mxu1 %v6222_v48 }
 0x5f2   :  { %4145 = vmatpush1.bf16.msra.mxu0 %v6151_v8 }
 0x5f3   :  { %4146 = vmatprep.subr.bf16.mxu0 %v6159_v34 }
 0x5f4   :  { %3954 = vmatpush2.bf16.msra.mxu1 %v6220_v42 }
 0x5f5   :  { %4378 = vmatprep.subr.bf16.mxu1 %v6228_v56 }
 0x5f6   :  { %4147 = vmatpush1.bf16.msra.mxu0 %v6157_v25 }
 0x5f7   :  { %4148 = vmatprep.subr.bf16.mxu0 %v6165_v45  ;;  %v9111_v45 = vsub.s32 0, %v6807_v41  ;;  %v6294_v41 = vld [vmem:[#allocation9 + $0x74] ss:$8 sps:$4 sm:$0xff]  }
 0x5fa   :  { %4149 = vmatpush1.bf16.msra.mxu0 %v6163_v9 }
 0x5fb   :  { %4150 = vmatprep.subr.bf16.mxu0 %v6171_v15 }
 0x5fe   :  { %4151 = vmatpush2.bf16.msra.mxu0 %v6169_v0  ;;  %v3631_v0 = vrot.slane %v3626_v2, %v9111_v45 }
 0x5ff   :  { %4152 = vmatprep.subr.bf16.mxu0 %v6177_v43 }
 0x602   :  { %4153 = vmatpush2.bf16.msra.mxu0 %v6175_v12 }
 0x603   :  { %4154 = vmatprep.subr.bf16.mxu0 %v6183_v24 }
 0x606   :  { %4155 = vmatpush2.bf16.msra.mxu0 %v6181_v33 }
 0x607   :  { %4156 = vmatprep.subr.bf16.mxu0 %v6189_v29 }
 0x60a   :  { %4157 = vmatpush2.bf16.msra.mxu0 %v6187_v51 }
 0x60b   :  { %4158 = vmatprep.subr.bf16.mxu0 %v6195_v38 }
 0x60e   :  { %4159 = vmatpush2.bf16.msra.mxu0 %v6193_v31 }
 0x60f   :  { %4160 = vmatprep.subr.bf16.mxu0 %v6201_v55 }
 0x612   :  { %4161 = vmatpush2.bf16.msra.mxu0 %v6199_v57 }
 0x613   :  { %4162 = vmatprep.subr.bf16.mxu0 %v6207_v32 }
 0x616   :  { %4163 = vmatpush2.bf16.msra.mxu0 %v6205_v14 }
 0x617   :  { %4164 = vmatprep.subr.bf16.mxu0 %v6213_v50 }
 0x61a   :  { %4165 = vmatpush2.bf16.msra.mxu0 %v6211_v44 }
 0x61b   :  { %4567 = vmatprep.subr.bf16.mxu0 %v6219_v59 }
 0x676   :  { %v3455_v22 = vpop.f32.mrf.mxu1 }
 0x678   :  { %v3457_v60 = vpop.f32.mrf.mxu1 }
 0x67a   :  { %v3459_v11 = vpop.f32.mrf.mxu1 }
 0x67c   :  { %v3461_v49 = vpop.f32.mrf.mxu1 }
 0x67d   :  { %v3324_v4 = vpop.f32.mrf.mxu0 }
 0x67e   :  { %v3465_v1 = vpop.f32.mrf.mxu1  ;;  %v3456_v3 = vadd.f32 %v3455_v22, %v3324_v4 }
 0x67f   :  { %v3326_v21 = vpop.f32.mrf.mxu0 }
 0x680   :  { %v3467_v8 = vpop.f32.mrf.mxu1  ;;  %v3458_v52 = vadd.f32 %v3457_v60, %v3326_v21  ;;  %v6217_v60 = vld [vmem:[#allocation7 + $0x70] ss:$8 sps:$4 sm:$0xff]  }
 0x681   :  { %v3328_v18 = vpop.f32.mrf.mxu0 }
 0x682   :  { %v3469_v62 = vpop.f32.mrf.mxu1  ;;  %v3460_v12 = vadd.f32 %v3459_v11, %v3328_v18 }
 0x683   :  { %v3330_v40 = vpop.f32.mrf.mxu0 }
 0x684   :  { %v3470_v25 = vpop.f32.mrf.mxu1  ;;  %v3462_v54 = vadd.f32 %v3461_v49, %v3330_v40 }
 0x685   :  { %v3334_v34 = vpop.f32.mrf.mxu0 }
 0x686   :  { %v3466_v51 = vadd.f32 %v3465_v1, %v3334_v34  ;;  %v6225_v1 = vld [vmem:[#allocation7 + $0x64] ss:$8 sps:$4 sm:$0xff]  }
 0x687   :  { %v3336_v37 = vpop.f32.mrf.mxu0 }
 0x688   :  { %v3468_v7 = vadd.f32 %v3467_v8, %v3336_v37 }
 0x689   :  { %v3338_v61 = vpop.f32.mrf.mxu0 }
 0x68b   :  { %v3339_v9 = vpop.f32.mrf.mxu0 }
 0x68c   :  { %v6223_v9 = vld [vmem:[#allocation7 + $0x60] ss:$8 sps:$4 sm:$0xff]  }
 0x69d   :  { %v3603_v15 = vpop.f32.mrf.mxu0 }
 0x69e   :  { %v3620_v43 = vadd.f32 %v3603_v15, %v3456_v3 }
 0x69f   :  { %v3605_v13 = vpop.f32.mrf.mxu0 }
 0x6a0   :  { %v3638_v24 = vadd.f32 %v3631_v0, %v3620_v43  ;;  %v3621_v47 = vadd.f32 %v3605_v13, %v3458_v52 }
 0x6a1   :  { %v3607_v33 = vpop.f32.mrf.mxu0 }
 0x6a2   :  { %v3622_v29 = vadd.f32 %v3607_v33, %v3460_v12  ;;  %v3644_v38 = vmax.f32 %v3638_v24, 0.0  ;;  %v3639_v31 = vadd.f32 %v3635_v17, %v3621_v47  ;;  %v6226_v24 = vld [vmem:[#allocation6 + $0x270] ss:$8 sps:$4 sm:$0xff]  }
 0x6a3   :  { %v3609_v10 = vpop.f32.mrf.mxu0  ;;  %v6229_v33 = vld [vmem:[#allocation7 + $0x50] ss:$8 sps:$4 sm:$0xff]  }
 0x6a4   :  { %v3640_v28 = vadd.f32 %v3631_v0, %v3622_v29  ;;  %v3623_v39 = vadd.f32 %v3609_v10, %v3462_v54  ;;  %v3672_v32 = vrot.slane %v3644_v38, 1  ;;  %v9124_v44 = vmax.f32 %v3639_v31, 0.0  ;;  %v6240_v31 = vld [vmem:[#allocation6 + $0x254] ss:$8 sps:$4 sm:$0xff]  }
 0x6a5   :  { %v3613_v46 = vpop.f32.mrf.mxu0  ;;  %v3650_v18 = vrot.slane %v3644_v38, 7 }
 0x6a6   :  { %v9121_v57 = vmax.f32 %v3640_v28, 0.0  ;;  %v3624_v55 = vadd.f32 %v3613_v46, %v3466_v51  ;;  %v3641_v53 = vadd.f32 %v3635_v17, %v3623_v39  ;;  %v3651_v34 = vrot.slane %v9124_v44, 7  ;;  %v6237_v51 = vld [vmem:[#allocation7 + $0x44] ss:$8 sps:$4 sm:$0xff]   ;;  %v6235_v39 = vld [vmem:[#allocation7 + $0x40] ss:$8 sps:$4 sm:$0xff]  }
 0x6a7   :  { %v3615_v14 = vpop.f32.mrf.mxu0  ;;  %v3673_v63 = vrot.slane %v9124_v44, 1 }
 0x6a8   :  { %v3674_v58 = vrot.slane %v9121_v57, 1  ;;  %v3642_v35 = vadd.f32 %v3631_v0, %v3624_v55  ;;  %v9126_v50 = vmax.f32 %v3641_v53, 0.0  ;;  %v3625_v26 = vadd.f32 %v3615_v14, %v3468_v7  ;;  %v6231_v0 = vld [vmem:[#allocation7 + $0x54] ss:$8 sps:$4 sm:$0xff]   ;;  %v6238_v7 = vld [vmem:[#allocation6 + $0x250] ss:$8 sps:$4 sm:$0xff]  }
 0x6a9   :  { %v3617_v59 = vpop.f32.mrf.mxu0  ;;  %v3694_v11 = vpack.c.bf16 %v9121_v57, %v3644_v38  ;;  %v3652_v62 = vrot.slane %v9121_v57, 7  ;;  %v6232_v38 = vld [vmem:[#allocation6 + $0x260] ss:$8 sps:$4 sm:$0xff]   ;;  %v6243_v57 = vld [vmem:[#allocation7 + $0x34] ss:$8 sps:$4 sm:$0xff]  }
 0x6aa   :  { %v9130_v27 = vsel %vm9562_vm14, %v3672_v32, %v3674_v58  ;;  %v3648_v48 = vmax.f32 %v3642_v35, 0.0  ;;  %v3643_v42 = vadd.f32 %v3635_v17, %v3625_v26  ;;  %v3695_v22 = vpack.c.bf16 %v9126_v50, %v9124_v44  ;;  %v6234_v17 = vld [vmem:[#allocation6 + $0x264] ss:$8 sps:$4 sm:$0xff]   ;;  %v6244_v26 = vld [vmem:[#allocation6 + $0x240] ss:$8 sps:$4 sm:$0xff]  }
 0x6ab   :  { %v3618_v56 = vpop.f32.mrf.mxu0  ;;  %v3653_v21 = vrot.slane %v9126_v50, 7  ;;  %v3658_v13 = vsel %vm9568_vm11, %v3650_v18, %v3652_v62  ;;  %v3675_v28 = vrot.slane %v9126_v50, 1  ;;  %v6249_v50 = vld [vmem:[#allocation7 + $0x24] ss:$8 sps:$4 sm:$0xff]   ;;  %v6252_v59 = vld [vmem:[#allocation6 + $0x234] ss:$8 sps:$4 sm:$0xff]  }
 0x6ac   :  { %v3654_v49 = vrot.slane %v3648_v48, 7  ;;  %v3676_v4 = vrot.slane %v3648_v48, 1  ;;  %v9136_v8 = vmax.f32 %v3643_v42, 0.0  ;;  %4166 = vmatprep.mubr.bf16.mxu0 %v3695_v22  ;;  %v3696_v10 = vpack.c.bf16 %v3648_v48, %v3648_v48  ;;  %v6247_v48 = vld [vmem:[#allocation7 + $0x20] ss:$8 sps:$4 sm:$0xff]  }
 0x6ad   :  { %4167 = vmatmul.mubr.bf16.vlgmr.msra.gmra.mxu0 %v3694_v11  ;;  %v3659_v15 = vsel %vm9537_vm3, %v3651_v34, %v3653_v21  ;;  %v3681_v14 = vsel %vm9571_vm10, %v3673_v63, %v3675_v28  ;;  %v6255_v42 = vld [vmem:[#allocation7 + $0x14] ss:$8 sps:$4 sm:$0xff]   ;;  %v6250_v56 = vld [vmem:[#allocation6 + $0x230] ss:$8 sps:$4 sm:$0xff]   ;;  %v6258_v22 = vld [vmem:[#allocation6 + $0x224] ss:$8 sps:$4 sm:$0xff]  }
 0x6ae   :  { %v9141_v40 = vsel %vm9563_vm0, %v3674_v58, %v3676_v4  ;;  %v9145_v25 = vsel %vm9564_vm7, %v3676_v4, %v3672_v32  ;;  %v3655_v61 = vrot.slane %v9136_v8, 7  ;;  %4568 = vmatpush1.bf16.msra.mxu0 %v6217_v60  ;;  %v3660_v2 = vsel %vm9565_vm15, %v3654_v49, %v3650_v18  ;;  %v6246_v32 = vld [vmem:[#allocation6 + $0x244] ss:$8 sps:$4 sm:$0xff]   ;;  %v6241_v58 = vld [vmem:[#allocation7 + $0x30] ss:$8 sps:$4 sm:$0xff]  }
 0x6af   :  { %v5509_v37 = vpack.c.bf16 %v9141_v40, %v9130_v27  ;;  %v3697_v3 = vpack.c.bf16 %v9136_v8, %v9136_v8  ;;  %4569 = vmatprep.subr.bf16.mxu0 %v6225_v1  ;;  %v5433_v47 = vpack.c.bf16 %v3658_v13, %v3660_v2  ;;  %v3677_v54 = vrot.slane %v9136_v8, 1  ;;  %v6261_v60 = vld [vmem:[#allocation7 + $0x4] ss:$8 sps:$4 sm:$0xff]   ;;  %v6256_v11 = vld [vmem:[#allocation6 + $0x220] ss:$8 sps:$4 sm:$0xff]  }
 0x6b0   :  { %v3661_v43 = vsel %vm9566_vm4, %v3655_v61, %v3651_v34  ;;  %v3657_v52 = vsel %vm9567_vm9, %v3653_v21, %v3655_v61  ;;  %v3656_v46 = vsel %vm9569_vm2, %v3652_v62, %v3654_v49  ;;  %v6264_v49 = vld [vmem:[#allocation6 + $0x214] ss:$8 sps:$4 sm:$0xff]   ;;  %v6259_v4 = vld [vmem:[#allocation7] ss:$8 sps:$4 sm:$0xff]   ;;  %v6262_v1 = vld [vmem:[#allocation6 + $0x210] ss:$8 sps:$4 sm:$0xff]  }
 0x6b1   :  { %4176 = vmatprep.mubr.bf16.mxu0 %v3697_v3  ;;  %v5430_v12 = vpack.c.bf16 %v3659_v15, %v3661_v43  ;;  %v5436_v29 = vpack.c.bf16 %v3657_v52, %v3657_v52  ;;  %v5439_v53 = vpack.c.bf16 %v3656_v46, %v3656_v46  ;;  %v6267_v21 = vld [vmem:[#allocation6 + $0x204] ss:$8 sps:$4 sm:$0xff]   ;;  %v6265_v18 = vld [vmem:[#allocation6 + $0x200] ss:$8 sps:$4 sm:$0xff]   ;;  %v6270_v62 = vld [vmem:[#allocation6 + $0x2f4] ss:$8 sps:$4 sm:$0xff]  }
 0x6b2   :  { %4570 = vmatpush1.bf16.msra.mxu0 %v6223_v9  ;;  %v6268_v34 = vld [vmem:[#allocation6 + $0x2f0] ss:$8 sps:$4 sm:$0xff]   ;;  %v6273_v61 = vld [vmem:[#allocation6 + $0x2e4] ss:$8 sps:$4 sm:$0xff]   ;;  %v6271_v9 = vld [vmem:[#allocation6 + $0x2e0] ss:$8 sps:$4 sm:$0xff]  }
 0x6b3   :  { %5431 = vmatprep.mubr.msk.bf16.mxu1 %vm9028_vm12, %v5430_v12  ;;  %4571 = vmatprep.subr.bf16.mxu0 %v6231_v0  ;;  %v6276_v2 = vld [vmem:[#allocation6 + $0x2d4] ss:$8 sps:$4 sm:$0xff]   ;;  %v6274_v3 = vld [vmem:[#allocation6 + $0x2d0] ss:$8 sps:$4 sm:$0xff]   ;;  %v6277_v0 = vld [vmem:[#allocation6 + $0x2c0] ss:$8 sps:$4 sm:$0xff]  }
 0x6b4   :  { %5434 = vmatmul.mubr.msk.bf16.vlgmr.msra.gmra.mxu1 %vm9028_vm12, %v5433_v47  ;;  %vm9570_vm12 = vmmov %vm9563_vm0  ;;  %v6280_v15 = vld [vmem:[#allocation6 + $0x2b0] ss:$8 sps:$4 sm:$0xff]   ;;  %v6285_v43 = vld [vmem:[#allocation6 + $0x2a4] ss:$8 sps:$4 sm:$0xff]  }
 0x6b5   :  { %4379 = vmatpush1.bf16.msra.mxu1 %v6226_v24  ;;  %5437 = vmatprep.mubr.msk.bf16.mxu1 %vm9054_vm13, %v5436_v29  ;;  %v3679_v55 = vsel %vm9570_vm12, %v3675_v28, %v3677_v54  ;;  %v6283_v52 = vld [vmem:[#allocation6 + $0x2a0] ss:$8 sps:$4 sm:$0xff]   ;;  %v6286_v13 = vld [vmem:[#allocation6 + $0x290] ss:$8 sps:$4 sm:$0xff]   ;;  %v6297_v8 = vld [vmem:[#allocation9 + $0x64] ss:$8 sps:$4 sm:$0xff]  }
 0x6b6   :  { %4177 = vmatmul.mubr.bf16.gmra.mxu0 %v3696_v10  ;;  %4380 = vmatprep.subr.bf16.mxu1 %v6234_v17  ;;  %v5506_v35 = vpack.c.bf16 %v3679_v55, %v3681_v14  ;;  %v6289_v12 = vld [vmem:[#allocation6 + $0x280] ss:$8 sps:$4 sm:$0xff]   ;;  %v5515_v17 = vpack.c.bf16 %v9145_v25, %v9145_v25  ;;  %v6292_v44 = vld [vmem:[#allocation9 + $0x70] ss:$8 sps:$4 sm:$0xff]   ;;  %v6300_v27 = vld [vmem:[#allocation9 + $0x54] ss:$8 sps:$4 sm:$0xff]  }
 0x6b7   :  { %4572 = vmatpush1.bf16.msra.mxu0 %v6229_v33  ;;  %4599 = vmatprep.mubr.bf16.mxu0 %v9523_v20  ;;  %v6295_v33 = vld [vmem:[#allocation9 + $0x60] ss:$8 sps:$4 sm:$0xff]   ;;  %v6303_v40 = vld [vmem:[#allocation9 + $0x44] ss:$8 sps:$4 sm:$0xff]   ;;  %v6306_v29 = vld [vmem:[#allocation9 + $0x34] ss:$8 sps:$4 sm:$0xff]  }
 0x6b8   :  { %4573 = vmatprep.subr.bf16.mxu0 %v6237_v51  ;;  %v6304_v25 = vld [vmem:[#allocation9 + $0x30] ss:$8 sps:$4 sm:$0xff]   ;;  %v6312_v10 = vld [vmem:[#allocation9 + $0x14] ss:$8 sps:$4 sm:$0xff]   ;;  %v6313_v28 = vld [vmem:[#allocation9] ss:$8 sps:$4 sm:$0xff]  }
 0x6b9   :  { %4381 = vmatpush1.bf16.msra.mxu1 %v6232_v38  ;;  %v6310_v51 = vld [vmem:[#allocation9 + $0x10] ss:$8 sps:$4 sm:$0xff]   ;;  %v6315_v38 = vld [vmem:[#allocation9 + $0x4] ss:$8 sps:$4 sm:$0xff]   ;;  %v6319_v14 = vld [vmem:[#allocation9 + $0xe0] ss:$8 sps:$4 sm:$0xff]  }
 0x6ba   :  { %4382 = vmatprep.subr.bf16.mxu1 %v6240_v31  ;;  %v6321_v55 = vld [vmem:[#allocation9 + $0xe4] ss:$8 sps:$4 sm:$0xff]  }
 0x6bb   :  { %4574 = vmatpush1.bf16.msra.mxu0 %v6235_v39  ;;  %v6318_v39 = vld [vmem:[#allocation9 + $0xf4] ss:$8 sps:$4 sm:$0xff]  }
 0x6bc   :  { %5440 = vmatmul.mubr.msk.bf16.gmra.mxu1 %vm9054_vm13, %v5439_v53  ;;  %4575 = vmatprep.subr.bf16.mxu0 %v6243_v57  ;;  %vm9572_vm13 = vmmov %vm9563_vm0 }
 0x6bd   :  { %4383 = vmatpush1.bf16.msra.mxu1 %v6238_v7  ;;  %5507 = vmatprep.mubr.msk.bf16.mxu1 %vm9095_vm1, %v5506_v35  ;;  %v3683_v24 = vsel %vm9572_vm13, %v3677_v54, %v3673_v63  ;;  %v6307_v54 = vld [vmem:[#allocation9 + $0x20] ss:$8 sps:$4 sm:$0xff]   ;;  %v6316_v63 = vld [vmem:[#allocation9 + $0xf0] ss:$8 sps:$4 sm:$0xff]  }
 0x6be   :  { %4384 = vmatprep.subr.bf16.mxu1 %v6246_v32  ;;  %v5512_v47 = vpack.c.bf16 %v3683_v24, %v3683_v24 }
 0x6bf   :  { %4576 = vmatpush1.bf16.msra.mxu0 %v6241_v58  ;;  %v6324_v58 = vld [vmem:[#allocation9 + $0xd4] ss:$8 sps:$4 sm:$0xff]  }
 0x6c0   :  { %4577 = vmatprep.subr.bf16.mxu0 %v6249_v50 }
 0x6c1   :  { %4385 = vmatpush1.bf16.msra.mxu1 %v6244_v26 }
 0x6c2   :  { %4386 = vmatprep.subr.bf16.mxu1 %v6252_v59 }
 0x6c3   :  { %4578 = vmatpush1.bf16.msra.mxu0 %v6247_v48 }
 0x6c4   :  { %4579 = vmatprep.subr.bf16.mxu0 %v6255_v42  ;;  %v6322_v42 = vld [vmem:[#allocation9 + $0xd0] ss:$8 sps:$4 sm:$0xff]  }
 0x6c5   :  { %4387 = vmatpush1.bf16.msra.mxu1 %v6250_v56 }
 0x6c6   :  { %4388 = vmatprep.subr.bf16.mxu1 %v6258_v22  ;;  %v6327_v22 = vld [vmem:[#allocation9 + $0xc4] ss:$8 sps:$4 sm:$0xff]  }
 0x6c7   :  { %4580 = vmatpush1.bf16.msra.mxu0 %v6253_v23 }
 0x6c8   :  { %4581 = vmatprep.subr.bf16.mxu0 %v6261_v60 }
 0x6c9   :  { %4389 = vmatpush1.bf16.msra.mxu1 %v6256_v11 }
 0x6ca   :  { %4390 = vmatprep.subr.bf16.mxu1 %v6264_v49 }
 0x6cb   :  { %4582 = vmatpush1.bf16.msra.mxu0 %v6259_v4 }
 0x6cd   :  { %4391 = vmatpush1.bf16.msra.mxu1 %v6262_v1  ;;  %v6325_v1 = vld [vmem:[#allocation9 + $0xc0] ss:$8 sps:$4 sm:$0xff]  }
 0x6ce   :  { %4600 = vmatmul.mubr.bf16.vlgmr.msra.gmra.mxu0 %v9009_v19  ;;  %4392 = vmatprep.subr.bf16.mxu1 %v6267_v21  ;;  %v6279_v19 = vld [vmem:[#allocation6 + $0x2c4] ss:$8 sps:$4 sm:$0xff]  }
 0x6cf   :  { %4609 = vmatprep.mubr.bf16.mxu0 %v9523_v20  ;;  %v6282_v20 = vld [vmem:[#allocation6 + $0x2b4] ss:$8 sps:$4 sm:$0xff]  }
 0x6d1   :  { %4393 = vmatpush1.bf16.msra.mxu1 %v6265_v18  ;;  %v6330_v18 = vld [vmem:[#allocation9 + $0xb4] ss:$8 sps:$4 sm:$0xff]  }
 0x6d2   :  { %4394 = vmatprep.subr.bf16.mxu1 %v6270_v62 }
 0x6d5   :  { %4395 = vmatpush2.bf16.msra.mxu1 %v6268_v34 }
 0x6d6   :  { %4610 = vmatmul.mubr.bf16.gmra.mxu0 %v9034_v16  ;;  %4396 = vmatprep.subr.bf16.mxu1 %v6273_v61  ;;  %v6288_v16 = vld [vmem:[#allocation6 + $0x294] ss:$8 sps:$4 sm:$0xff]   ;;  %v6328_v61 = vld [vmem:[#allocation9 + $0xb0] ss:$8 sps:$4 sm:$0xff]  }
 0x6d7   :  { %4717 = vmatprep.mubr.f32.mxu0 %v6496_v30  ;;  %v6291_v30 = vld [vmem:[#allocation6 + $0x284] ss:$8 sps:$4 sm:$0xff]  }
 0x6d9   :  { %4397 = vmatpush2.bf16.msra.mxu1 %v6271_v9  ;;  %v6333_v9 = vld [vmem:[#allocation9 + $0xa4] ss:$8 sps:$4 sm:$0xff]  }
 0x6da   :  { %4398 = vmatprep.subr.bf16.mxu1 %v6276_v2 }
 0x6dd   :  { %4399 = vmatpush2.bf16.msra.mxu1 %v6274_v3  ;;  %v6331_v3 = vld [vmem:[#allocation9 + $0xa0] ss:$8 sps:$4 sm:$0xff]  }
 0x6de   :  { %4400 = vmatprep.subr.bf16.mxu1 %v6279_v19  ;;  %v6336_v19 = vld [vmem:[#allocation9 + $0x94] ss:$8 sps:$4 sm:$0xff]  }
 0x6e1   :  { %4401 = vmatpush2.bf16.msra.mxu1 %v6277_v0  ;;  %v6334_v0 = vld [vmem:[#allocation9 + $0x90] ss:$8 sps:$4 sm:$0xff]  }
 0x6e2   :  { %4402 = vmatprep.subr.bf16.mxu1 %v6282_v20 }
 0x6e5   :  { %4403 = vmatpush2.bf16.msra.mxu1 %v6280_v15 }
 0x6e6   :  { %4404 = vmatprep.subr.bf16.mxu1 %v6285_v43 }
 0x6e9   :  { %4405 = vmatpush2.bf16.msra.mxu1 %v6283_v52 }
 0x6ea   :  { %4406 = vmatprep.subr.bf16.mxu1 %v6288_v16 }
 0x6ed   :  { %4407 = vmatpush2.bf16.msra.mxu1 %v6286_v13 }
 0x6ee   :  { %4408 = vmatprep.subr.bf16.mxu1 %v6291_v30 }
 0x6f1   :  { %4409 = vmatpush2.bf16.msra.mxu1 %v6289_v12 }
 0x6f2   :  { %4930 = vmatprep.subr.bf16.mxu1 %v6294_v41 }
 0x6f4   :  { %5510 = vmatmul.mubr.msk.bf16.vlgmr.msra.gmra.mxu1 %vm9095_vm1, %v5509_v37  ;;  %v6301_v37 = vld [vmem:[#allocation9 + $0x40] ss:$8 sps:$4 sm:$0xff]   ;;  %vm4649_vm1 = vcmask 195584  }
 0x6f5   :  { %5513 = vmatprep.mubr.msk.bf16.mxu1 %vm9104_vm6, %v5512_v47  ;;  %4931 = vmatpush1.bf16.msra.mxu1 %v6292_v44 }
 0x6f6   :  { %4932 = vmatprep.subr.bf16.mxu1 %v6297_v8 }
 0x6f9   :  { %4933 = vmatpush1.bf16.msra.mxu1 %v6295_v33 }
 0x6fa   :  { %4934 = vmatprep.subr.bf16.mxu1 %v6300_v27 }
 0x6fc   :  { %5516 = vmatmul.mubr.msk.bf16.gmra.mxu1 %vm9104_vm6, %v5515_v17  ;;  %v4435_v17 = vld [vmem:[%s9256_s19] sm:$0x3] }
 0x6fd   :  { %4935 = vmatpush1.bf16.msra.mxu1 %v6298_v5  ;;  %v4444_v8 = vrot.slane %v4435_v17, %v9118_v36  ;;  %v4440_v5 = vrot.slane %v4435_v17, %v9111_v45  ;;  %v6341_v17 = vld [vmem:[#allocation10 + $0x38] sm:$0xff]  }
 0x6fe   :  { %4936 = vmatprep.subr.bf16.mxu1 %v6303_v40 }
 0x701   :  { %4937 = vmatpush1.bf16.msra.mxu1 %v6301_v37 }
 0x702   :  { %4938 = vmatprep.subr.bf16.mxu1 %v6306_v29 }
 0x705   :  { %4939 = vmatpush1.bf16.msra.mxu1 %v6304_v25 }
 0x706   :  { %4940 = vmatprep.subr.bf16.mxu1 %v6309_v6 }
 0x709   :  { %4941 = vmatpush1.bf16.msra.mxu1 %v6307_v54 }
 0x70a   :  { %4942 = vmatprep.subr.bf16.mxu1 %v6312_v10 }
 0x70d   :  { %4943 = vmatpush1.bf16.msra.mxu1 %v6310_v51 }
 0x70e   :  { %4944 = vmatprep.subr.bf16.mxu1 %v6315_v38 }
 0x711   :  { %4945 = vmatpush1.bf16.msra.mxu1 %v6313_v28 }
 0x712   :  { %4946 = vmatprep.subr.bf16.mxu1 %v6318_v39  ;;  %v4618_v39 = vld [vmem:[%s9259_s22] sm:$0x3] }
 0x715   :  { %4947 = vmatpush2.bf16.msra.mxu1 %v6316_v63 }
 0x716   :  { %4948 = vmatprep.subr.bf16.mxu1 %v6321_v55 }
 0x719   :  { %4949 = vmatpush2.bf16.msra.mxu1 %v6319_v14  ;;  %v4627_v14 = vrot.slane %v4618_v39, %v9118_v36 }
 0x71a   :  { %4950 = vmatprep.subr.bf16.mxu1 %v6324_v58 }
 0x71d   :  { %4951 = vmatpush2.bf16.msra.mxu1 %v6322_v42 }
 0x71e   :  { %4952 = vmatprep.subr.bf16.mxu1 %v6327_v22 }
 0x721   :  { %4953 = vmatpush2.bf16.msra.mxu1 %v6325_v1 }
 0x722   :  { %4954 = vmatprep.subr.bf16.mxu1 %v6330_v18 }
 0x725   :  { %4955 = vmatpush2.bf16.msra.mxu1 %v6328_v61 }
 0x726   :  { %4956 = vmatprep.subr.bf16.mxu1 %v6333_v9 }
 0x729   :  { %4957 = vmatpush2.bf16.msra.mxu1 %v6331_v3 }
 0x72a   :  { %4958 = vmatprep.subr.bf16.mxu1 %v6336_v19 }
 0x72d   :  { %4959 = vmatpush2.bf16.msra.mxu1 %v6334_v0 }
 0x76d   :  { %v4168_v31 = vpop.f32.mrf.mxu0 }
 0x76f   :  { %v4170_v46 = vpop.f32.mrf.mxu0 }
 0x771   :  { %v4172_v57 = vpop.f32.mrf.mxu0 }
 0x773   :  { %v4174_v7 = vpop.f32.mrf.mxu0 }
 0x774   :  { %v3957_v53 = vpop.f32.mrf.mxu1 }
 0x775   :  { %v4169_v32 = vadd.f32 %v4168_v31, %v3957_v53  ;;  %v4475_v31 = vld [vmem:[%s9258_s21] sm:$0x3] }
 0x776   :  { %v4178_v35 = vpop.f32.mrf.mxu0  ;;  %v3959_v50 = vpop.f32.mrf.mxu1  ;;  %v4480_v58 = vrot.slane %v4475_v31, %v9111_v45 }
 0x777   :  { %v4171_v26 = vadd.f32 %v4170_v46, %v3959_v50  ;;  %v4623_v50 = vrot.slane %v4618_v39, %v9111_v45  ;;  %v6355_v39 = vld [vmem:[#allocation10] sm:$0xff]  }
 0x778   :  { %v4180_v59 = vpop.f32.mrf.mxu0  ;;  %v3961_v48 = vpop.f32.mrf.mxu1 }
 0x779   :  { %v4173_v56 = vadd.f32 %v4172_v57, %v3961_v48  ;;  %v4484_v48 = vrot.slane %v4475_v31, %v9118_v36  ;;  %v6354_v31 = vld [vmem:[#allocation10 + $0x40] sm:$0xff]  }
 0x77a   :  { %v4182_v23 = vpop.f32.mrf.mxu0  ;;  %v3963_v60 = vpop.f32.mrf.mxu1 }
 0x77b   :  { %v4175_v11 = vadd.f32 %v4174_v7, %v3963_v60 }
 0x77c   :  { %v4183_v49 = vpop.f32.mrf.mxu0  ;;  %v3967_v4 = vpop.f32.mrf.mxu1 }
 0x77d   :  { %v4179_v21 = vadd.f32 %v4178_v35, %v3967_v4 }
 0x77e   :  { %v3969_v62 = vpop.f32.mrf.mxu1 }
 0x77f   :  { %v4181_v6 = vadd.f32 %v4180_v59, %v3969_v62 }
 0x780   :  { %v3971_v34 = vpop.f32.mrf.mxu1 }
 0x782   :  { %v3972_v2 = vpop.f32.mrf.mxu1 }
 0x78e   :  { %v4601_v20 = vpop.f32.mrf.mxu0 }
 0x78f   :  { %v4602_v2 = vadd.f32 %v4601_v20, %v4480_v58  ;;  %v6337_v20 = vld [vmem:[#allocation9 + $0x80] ss:$8 sps:$4 sm:$0xff]  }
 0x790   :  { %v4603_v15 = vpop.f32.mrf.mxu0 }
 0x791   :  { %v4604_v34 = vadd.f32 %v4603_v15, %v4484_v48  ;;  %v4648_v15 = vld [vmem:[%s9573_s13] sm:$0xff] }
 0x792   :  { %v4605_v43 = vpop.f32.mrf.mxu0 }
 0x794   :  { %v4607_v52 = vpop.f32.mrf.mxu0 }
 0x796   :  { %v4611_v16 = vpop.f32.mrf.mxu0 }
 0x797   :  { %v4612_v22 = vadd.f32 %v4611_v16, %v4480_v58 }
 0x798   :  { %v4613_v13 = vpop.f32.mrf.mxu0 }
 0x799   :  { %v4614_v49 = vadd.f32 %v4613_v13, %v4484_v48 }
 0x79a   :  { %v4615_v30 = vpop.f32.mrf.mxu0 }
 0x79c   :  { %v4616_v12 = vpop.f32.mrf.mxu0 }
 0x7b4   :  { %v4412_v24 = vpop.f32.mrf.mxu1 }
 0x7b5   :  { %v4429_v27 = vadd.f32 %v4412_v24, %v4169_v32 }
 0x7b6   :  { %v4414_v47 = vpop.f32.mrf.mxu1 }
 0x7b7   :  { %v4430_v41 = vadd.f32 %v4414_v47, %v4171_v26  ;;  %v4447_v51 = vadd.f32 %v4440_v5, %v4429_v27  ;;  %v6340_v47 = vld [vmem:[#allocation10 + $0x78] sm:$0xff]   ;;  %v6346_v27 = vld [vmem:[#allocation10 + $0x60] sm:$0xff]  }
 0x7b8   :  { %v4416_v44 = vpop.f32.mrf.mxu1 }
 0x7b9   :  { %v4431_v33 = vadd.f32 %v4416_v44, %v4173_v56  ;;  %v4448_v54 = vadd.f32 %v4444_v8, %v4430_v41  ;;  %v4453_v35 = vmax.f32 %v4447_v51, 0.0  ;;  %v6342_v44 = vld [vmem:[#allocation10 + $0x70] sm:$0xff]  }
 0x7ba   :  { %v4418_v40 = vpop.f32.mrf.mxu1  ;;  %v6343_v41 = vld [vmem:[#allocation10 + $0x30] sm:$0xff]  }
 0x7bb   :  { %v4432_v37 = vadd.f32 %v4418_v40, %v4175_v11  ;;  %v4449_v29 = vadd.f32 %v4440_v5, %v4431_v33  ;;  %v4454_v53 = vmax.f32 %v4448_v54, 0.0  ;;  %v4608_v11 = vadd.f32 %v4607_v52, %v4484_v48  ;;  %v6345_v33 = vld [vmem:[#allocation10 + $0x28] sm:$0xff]   ;;  %v6348_v40 = vld [vmem:[#allocation10 + $0x58] sm:$0xff]  }
 0x7bc   :  { %v4422_v25 = vpop.f32.mrf.mxu1  ;;  %v4630_v18 = vmul.f32 %v4623_v50, %v4453_v35 }
 0x7bd   :  { %v4450_v10 = vadd.f32 %v4444_v8, %v4432_v37  ;;  %v4433_v38 = vadd.f32 %v4422_v25, %v4179_v21  ;;  %v4455_v57 = vmax.f32 %v4449_v29, 0.0  ;;  %v4631_v4 = vmul.f32 %v4627_v14, %v4454_v53  ;;  %v6349_v37 = vld [vmem:[#allocation10 + $0x18] sm:$0xff]   ;;  %v6350_v29 = vld [vmem:[#allocation10 + $0x50] sm:$0xff]  }
 0x7be   :  { %v4424_v28 = vpop.f32.mrf.mxu1  ;;  %v4606_v21 = vadd.f32 %v4605_v43, %v4480_v58  ;;  %v4636_v30 = vadd.f32 %v4630_v18, %v4602_v2  ;;  %v6339_v43 = vld [vmem:[#allocation9 + $0x84] ss:$8 sps:$4 sm:$0xff]   ;;  %v6351_v25 = vld [vmem:[#allocation10 + $0x10] sm:$0xff]  }
 0x7bf   :  { %v4456_v46 = vmax.f32 %v4450_v10, 0.0  ;;  %v4434_v63 = vadd.f32 %v4424_v28, %v4181_v6  ;;  %v4451_v55 = vadd.f32 %v4440_v5, %v4433_v38  ;;  %v4632_v23 = vmul.f32 %v4623_v50, %v4455_v57  ;;  %4960 = vmatprep.subr.bf16.mxu1 %v6339_v43  ;;  %v6347_v5 = vld [vmem:[#allocation10 + $0x20] sm:$0xff]   ;;  %v6352_v38 = vld [vmem:[#allocation10 + $0x48] sm:$0xff]  }
 0x7c0   :  { %v4426_v7 = vpop.f32.mrf.mxu1  ;;  %v4637_v0 = vadd.f32 %v4631_v4, %v4604_v34  ;;  %v4642_v13 = vmax.f32 %v4636_v30, 0.0  ;;  %4961 = vmatpush2.bf16.msra.mxu1 %v6337_v20  ;;  %v6353_v28 = vld [vmem:[#allocation10 + $0x8] sm:$0xff]  }
 0x7c1   :  { %v4452_v32 = vadd.f32 %v4444_v8, %v4434_v63  ;;  %v4457_v26 = vmax.f32 %v4451_v55, 0.0  ;;  %v4633_v42 = vmul.f32 %v4627_v14, %v4456_v46  ;;  %v4638_v3 = vadd.f32 %v4632_v23, %v4606_v21  ;;  %v6344_v8 = vld [vmem:[#allocation10 + $0x68] sm:$0xff]   ;;  %v4758_v46 = vld [vmem:[%s9261_s24] sm:$0x3] }
 0x7c2   :  { %v4427_v59 = vpop.f32.mrf.mxu1  ;;  %v4643_v52 = vmax.f32 %v4637_v0, 0.0  ;;  %v4763_v63 = vrot.slane %v4758_v46, %v9111_v45  ;;  %v4767_v57 = vrot.slane %v4758_v46, %v9118_v36 }
 0x7c3   :  { %v4458_v56 = vmax.f32 %v4452_v32, 0.0  ;;  %v4634_v60 = vmul.f32 %v4623_v50, %v4457_v26  ;;  %v4639_v9 = vadd.f32 %v4633_v42, %v4608_v11  ;;  %v4644_v24 = vmax.f32 %v4638_v3, 0.0  ;;  %v5566_v42 = vld [vmem:[%s9263_s26] ss:$0 sm:$0xff] }
 0x7c5   :  { %v4635_v1 = vmul.f32 %v4627_v14, %v4458_v56  ;;  %v4640_v62 = vadd.f32 %v4634_v60, %v4612_v22  ;;  %v4645_v16 = vmax.f32 %v4639_v9, 0.0 }
 0x7c7   :  { %v4641_v61 = vadd.f32 %v4635_v1, %v4614_v49  ;;  %v4646_v12 = vmax.f32 %v4640_v62, 0.0 }
 0x7c9   :  { %v4647_v19 = vmax.f32 %v4641_v61, 0.0 }
 0x7cb   :  { %4679 = vmatprep.subr.mxu0 %v4647_v19 }
 0x7cc   :  { %4680 = vmatpush1.msra.mxu0 %v4646_v12 }
 0x7cd   :  { %4681 = vmatprep.subr.mxu0 %v4645_v16 }
 0x7ce   :  { %4682 = vmatpush1.msra.mxu0 %v4644_v24 }
 0x7cf   :  { %4683 = vmatprep.subr.mxu0 %v4643_v52 }
 0x7d0   :  { %4684 = vmatpush1.msra.mxu0 %v4642_v13 }
 0x7d1   :  { %5533 = vmatmul.mubr.msk.f32.vlgmr.msra.gmra.mxu0 %vm4649_vm1, %v4648_v15  ;;  %5713 = vmatprep.subr.bf16.mxu0 %v6340_v47 }
 0x7d2   :  { %5714 = vmatpush3.bf16.msra.mxu0 %v6341_v17 }
 0x7d3   :  { %5715 = vmatprep.subr.bf16.mxu0 %v6342_v44 }
 0x7d6   :  { %5716 = vmatpush3.bf16.msra.mxu0 %v6343_v41 }
 0x7d7   :  { %5717 = vmatprep.subr.bf16.mxu0 %v6344_v8 }
 0x7da   :  { %5718 = vmatpush3.bf16.msra.mxu0 %v6345_v33 }
 0x7db   :  { %5719 = vmatprep.subr.bf16.mxu0 %v6346_v27 }
 0x7de   :  { %5720 = vmatpush3.bf16.msra.mxu0 %v6347_v5 }
 0x7df   :  { %5721 = vmatprep.subr.bf16.mxu0 %v6348_v40 }
 0x7e2   :  { %5722 = vmatpush3.bf16.msra.mxu0 %v6349_v37 }
 0x7e3   :  { %5723 = vmatprep.subr.bf16.mxu0 %v6350_v29 }
 0x7e6   :  { %5724 = vmatpush3.bf16.msra.mxu0 %v6351_v25 }
 0x7e7   :  { %5725 = vmatprep.subr.bf16.mxu0 %v6352_v38 }
 0x7ea   :  { %5726 = vmatpush3.bf16.msra.mxu0 %v6353_v28 }
 0x7eb   :  { %5727 = vmatprep.subr.bf16.mxu0 %v6354_v31 }
 0x7ee   :  { %5728 = vmatpush3.bf16.msra.mxu0 %v6355_v39 }
 0x891   :  { %v4719_v6 = vpop.f32.mrf.mxu0 }
 0x892   :  { %v4724_v51 = vpack.c.bf16 %v4719_v6, %v4719_v6 }
 0x893   :  { %v4721_v54 = vpop.f32.mrf.mxu0 }
 0x894   :  { %v4725_v10 = vpack.c.bf16 %v4721_v54, %v4721_v54 }
 0x896   :  { %4962 = vmatprep.mubr.bf16.mxu1 %v4725_v10 }
 0x897   :  { %4963 = vmatmul.mubr.bf16.vlgmr.msra.gmra.mxu1 %v4724_v51 }
 0x957   :  { %v4964_v55 = vpop.f32.mrf.mxu1 }
 0x958   :  { %v4965_v7 = vadd.f32 %v4964_v55, %v4763_v63 }
 0x959   :  { %v4966_v53 = vpop.f32.mrf.mxu1 }
 0x95a   :  { %v4967_v14 = vadd.f32 %v4966_v53, %v4767_v57  ;;  %v4971_v32 = vmax.f32 %v4965_v7, 0.0 }
 0x95b   :  { %v4968_v58 = vpop.f32.mrf.mxu1 }
 0x95c   :  { %v4972_v35 = vmax.f32 %v4967_v14, 0.0  ;;  %v4973_v59 = vpack.c.bf16 %v4971_v32, %v4971_v32 }
 0x95d   :  { %v4969_v50 = vpop.f32.mrf.mxu1 }
 0x95e   :  { %v4974_v26 = vpack.c.bf16 %v4972_v35, %v4972_v35 }
 0x960   :  { %5142 = vmatprep.mubr.bf16.mxu0 %v4974_v26 }
 0x961   :  { %5143 = vmatmul.mubr.bf16.vlgmr.msra.gmra.mxu0 %v4973_v59 }
 0xa21   :  { %v5729_v48 = vpop.f32.mrf.mxu0 }
 0xa23   :  { %v5730_v45 = vpop.f32.mrf.mxu0 }
 0xa24   :  { %v5731_v56 = vadd.f32 %v5730_v45, %v5729_v48 }
 0xa25   :  { %v5732_v36 = vpop.f32.mrf.mxu0 }
 0xa26   :  { %v5145_v22 = vadd.f32 %v5731_v56, %v5566_v42 }
 0xa27   :  { %v5733_v23 = vpop.f32.mrf.mxu0 }
 0xa28   :  { %5150 = vst [vmem:[%s9264_s27] sm:$0xff] %v5145_v22 }
 0xa29   :  { %5155 = vsyncpa [#allocation3], 1 }
 0xa2a   :  { %5156 = vsyncpa [#allocation5], 1 }
 0xa2b   :  { %5157 = vsyncpa [#allocation8], 1 }
 0xa2c   :  { %5158 = vsyncpa [#allocation11], 1 }

</bundles_post_ra>
